<compile_context>
chip_gen: v7x
topology: tpu7x:2x2x1
jax: 0.10.0
libtpu: 0.0.40
codegen_flags: <defaults>
</compile_context>

<pallas_src>
import numpy as np

import jax
import jax.numpy as jnp
from jax import lax
from jax.experimental import pallas as pl
from jax.experimental.pallas import tpu as pltpu


# ----------------------------------------------------------------------------
# Static geometry of the three conv stages (padded-flat layout).
# ----------------------------------------------------------------------------
_WP1, _MP1 = 30, 900            # conv1 input: 30x30 zero-padded, flattened
_WP2, _MP2 = 16, 256            # conv2 input: 16x16 zero-padded, flattened
_WP3, _MP3 = 9, 81              # conv3 input:  9x9  zero-padded, flattened
_MACC1 = _MP1 - 2 * (_WP1 + 1)  # 838 conv1 output columns (covers all interior)
_MACC2 = _MP2 - 2 * (_WP2 + 1)  # 222
_MACC3 = _MP3 - 2 * (_WP3 + 1)  # 61
_L1 = _MACC1 - _WP1 - 1         # 807 pool-window top-left columns (stage 1)
_L2 = _MACC2 - _WP2 - 1         # 205 (stage 2)
_NOUT = 128                     # lane-dense padded logits width (real = 10)


# ----------------------------------------------------------------------------
# Fused kernel (one grid step = one image, end to end).  No VMEM scratch:
# every intermediate activation stays a value.
# ----------------------------------------------------------------------------
def _net_kernel(x_ref, w1_ref, b1_ref, w2_ref, b2_ref, w3_ref, b3_ref,
                s1_ref, s2_ref, w3d_ref, bf1_ref, wf2_ref, bf2_ref,
                wf3_ref, bf3_ref, o_ref):
    f32, bf16 = jnp.float32, jnp.bfloat16

    # ---- conv1 (1 -> 8) + ReLU: VPU broadcast path (Cin == 1), 3 independent
    #      accumulator chains (one per dy row of taps). ----
    row_accs = []
    for dy in range(3):
        acc = None
        for dx in range(3):
            t = dy * 3 + dx
            start = (_WP1 + 1) + (dy - 1) * _WP1 + (dx - 1)        # in [0, 62]
            term = w1_ref[t] * x_ref[:, pl.ds(start, _MACC1)]      # (8,1)*(1,838)
            acc = term if acc is None else acc + term
        row_accs.append(acc)
    r1 = jnp.maximum(row_accs[0] + row_accs[1] + row_accs[2]
                     + b1_ref[...], 0.0)                           # (8, 838) f32

    # ---- fused 2x2/stride-2 max-pool + scatter into the next conv's padded
    #      flat layout: 4 lane-shifted maxes, then one bf16 0/1 gather matmul
    #      (border/garbage columns are never gathered). ----
    def pool_gather(r, wp, length, s_ref):
        v = jnp.maximum(
            jnp.maximum(r[:, 0:length], r[:, 1:1 + length]),
            jnp.maximum(r[:, wp:wp + length], r[:, wp + 1:wp + 1 + length]))
        return jnp.dot(v.astype(bf16), s_ref[...],
                       preferred_element_type=f32)                 # (C, Mp_next)

    # ---- 3x3 conv on the MXU: 9 per-tap (Cout,Cin)@(Cin,macc) bf16 dots with
    #      3 independent accumulator chains (one per dy). ----
    def conv_mxu(a, w_ref, b_ref, wp, macc):
        accs = []
        for dy in range(3):
            acc = None
            for dx in range(3):
                t = dy * 3 + dx
                start = (wp + 1) + (dy - 1) * wp + (dx - 1)
                rhs = a[:, start:start + macc].astype(bf16)        # (Cin, macc)
                d = jnp.dot(w_ref[t], rhs, preferred_element_type=f32)
                acc = d if acc is None else acc + d
            accs.append(acc)
        return jnp.maximum(accs[0] + accs[1] + accs[2] + b_ref[...], 0.0)

    a2 = pool_gather(r1, _WP1, _L1, s1_ref)            # (8, 256)  conv2 input
    r2 = conv_mxu(a2, w2_ref, b2_ref, _WP2, _MACC2)    # (16, 222) relu(conv2)
    a3 = pool_gather(r2, _WP2, _L2, s2_ref)            # (16, 81)  conv3 input
    r3 = conv_mxu(a3, w3_ref, b3_ref, _WP3, _MACC3)    # (16, 61)  relu(conv3)

    # ---- fc1: torch's NCHW flatten is folded into w3d (per-channel (61,512)
    #      blocks, zeros on conv3 border columns).  16 bf16 row-vector dots in
    #      4 independent accumulator chains, tree-summed. ----
    gsums = []
    for g in range(4):
        acc = None
        for c in range(4 * g, 4 * g + 4):
            lhs = r3[c:c + 1, :].astype(bf16)                      # (1, 61)
            d = jnp.dot(lhs, w3d_ref[c], preferred_element_type=f32)
            acc = d if acc is None else acc + d
        gsums.append(acc)
    h1 = jnp.maximum((gsums[0] + gsums[1]) + (gsums[2] + gsums[3])
                     + bf1_ref[...], 0.0)                          # (1, 512)

    # ---- fc2 + ReLU, fc3 (f32 weights; outputs lane-dense 128 / padded). ----
    h2 = jnp.maximum(jnp.dot(h1, wf2_ref[...], preferred_element_type=f32)
                     + bf2_ref[...], 0.0)                          # (1, 128)
    o_ref[...] = (jnp.dot(h2, wf3_ref[...], preferred_element_type=f32)
                  + bf3_ref[...])                                  # (1, 128)


# ----------------------------------------------------------------------------
# Host wrapper: one pallas_call for the whole forward pass.
# ----------------------------------------------------------------------------
def net_forward(x_nchw, params):
    n = x_nchw.shape[0]
    # Zero-pad the 28x28 image to 30x30 and flatten (conv1's padded-flat input).
    xp = jnp.pad(x_nchw[:, 0, :, :], ((0, 0), (1, 1), (1, 1))).reshape(n, 1, _MP1)

    out = pl.pallas_call(
        _net_kernel,
        out_shape=jax.ShapeDtypeStruct((n, 1, _NOUT), jnp.float32),
        grid=(n,),
        in_specs=[
            pl.BlockSpec((None, 1, _MP1), lambda i: (i, 0, 0)),     # x (per image)
            pl.BlockSpec((9, 8, 1), lambda i: (0, 0, 0)),           # w1 (f32, VPU)
            pl.BlockSpec((8, 1), lambda i: (0, 0)),                 # b1
            pl.BlockSpec((9, 16, 8), lambda i: (0, 0, 0)),          # w2 (bf16)
            pl.BlockSpec((16, 1), lambda i: (0, 0)),                # b2
            pl.BlockSpec((9, 16, 16), lambda i: (0, 0, 0)),         # w3 (bf16)
            pl.BlockSpec((16, 1), lambda i: (0, 0)),                # b3
            pl.BlockSpec((_L1, _MP2), lambda i: (0, 0)),            # pool1 gather (bf16)
            pl.BlockSpec((_L2, _MP3), lambda i: (0, 0)),            # pool2 gather (bf16)
            pl.BlockSpec((16, _MACC3, 512), lambda i: (0, 0, 0)),   # fc1 scattered (bf16)
            pl.BlockSpec((1, 512), lambda i: (0, 0)),               # fc1 bias
            pl.BlockSpec((512, 128), lambda i: (0, 0)),             # fc2 w (f32)
            pl.BlockSpec((1, 128), lambda i: (0, 0)),               # fc2 b
            pl.BlockSpec((128, _NOUT), lambda i: (0, 0)),           # fc3 w (padded)
            pl.BlockSpec((1, _NOUT), lambda i: (0, 0)),             # fc3 b (padded)
        ],
        out_specs=pl.BlockSpec((None, 1, _NOUT), lambda i: (i, 0, 0)),
        compiler_params=pltpu.CompilerParams(
            dimension_semantics=("parallel",),
            vmem_limit_bytes=32 * 1024 * 1024,
        ),
    )(xp, params["w1"], params["b1"], params["w2_k"], params["b2"],
      params["w3_k"], params["b3"], params["s1"], params["s2"],
      params["w3d"], params["bf1"], params["wf2"], params["bf2"],
      params["wf3_k"], params["bf3_k"])
    return out.reshape(n, _NOUT)[:, :10]


# ----------------------------------------------------------------------------
# Constant helpers (built once at init, not per forward).
# ----------------------------------------------------------------------------
def _pool_gather_matrix(hp_in, wp_in):
    """0/1 matrix mapping pool-window-top columns of the current conv stage to
    the next stage's zero-padded flat input columns (border columns stay 0)."""
    macc = hp_in * wp_in - 2 * (wp_in + 1)
    length = macc - wp_in - 1
    h_out, w_out = (hp_in - 2) // 2, (wp_in - 2) // 2
    wp_n = w_out + 2
    s = np.zeros((length, (h_out + 2) * wp_n), np.float32)
    for yy in range(h_out):
        for xx in range(w_out):
            s[2 * yy * wp_in + 2 * xx, (yy + 1) * wp_n + (xx + 1)] = 1.0
    return jnp.asarray(s)


def _scatter_fc1(fc1_w):
    """(784, 512) fc1 weight (rows in torch NCHW-flatten order c*49+y*7+x) ->
    (16, 61, 512) indexed by (channel, conv3 output column 9*y+x); zeros at
    conv3 border columns so garbage border outputs never contribute."""
    w = fc1_w.reshape(16, 7, 7, 512)
    w = jnp.pad(w, ((0, 0), (0, 0), (0, 2), (0, 0)))     # x: 7 -> 9
    return w.reshape(16, 63, 512)[:, :_MACC3, :]


def init_params(key):
    def uni(k, shape, fan_in):
        bound = 1.0 / jnp.sqrt(jnp.float32(fan_in))
        return jax.random.uniform(k, shape, jnp.float32, -bound, bound)

    ks = jax.random.split(key, 12)
    p = {
        # canonical f32 parameters (reference path uses these)
        # conv weights: (9 taps, Cout, Cin), tap t = dy*3 + dx
        "w1": uni(ks[0], (9, 8, 1), 9),      "b1": uni(ks[1], (8, 1), 9),
        "w2": uni(ks[2], (9, 16, 8), 72),    "b2": uni(ks[3], (16, 1), 72),
        "w3": uni(ks[4], (9, 16, 16), 144),  "b3": uni(ks[5], (16, 1), 144),
        # fc weights in (in, out) layout
        "fc1_w": uni(ks[6], (784, 512), 784), "bf1": uni(ks[7], (1, 512), 784),
        "wf2": uni(ks[8], (512, 128), 512),   "bf2": uni(ks[9], (1, 128), 512),
        "wf3": uni(ks[10], (128, 10), 128),   "bf3": uni(ks[11], (1, 10), 128),
    }
    # Kernel-layout copies: bf16 MXU operands + padded lane-dense fc3.
    p["w2_k"] = p["w2"].astype(jnp.bfloat16)
    p["w3_k"] = p["w3"].astype(jnp.bfloat16)
    p["w3d"] = _scatter_fc1(p["fc1_w"]).astype(jnp.bfloat16)
    p["s1"] = _pool_gather_matrix(_WP1, _WP1).astype(jnp.bfloat16)   # (807, 256)
    p["s2"] = _pool_gather_matrix(_WP2, _WP2).astype(jnp.bfloat16)   # (205, 81)
    p["wf3_k"] = jnp.pad(p["wf3"], ((0, 0), (0, _NOUT - 10)))        # (128, 128)
    p["bf3_k"] = jnp.pad(p["bf3"], ((0, 0), (0, _NOUT - 10)))        # (1, 128)
    return p


# ----------------------------------------------------------------------------
# Pure-JAX reference (independent f32 path) for a correctness self-check.
# ----------------------------------------------------------------------------
def _reference_forward(x_nchw, params):
    def conv(x, w_taps, b):
        w = w_taps.reshape(3, 3, w_taps.shape[1], w_taps.shape[2])  # (kh,kw,co,ci)
        w = jnp.transpose(w, (2, 3, 0, 1))                          # OIHW
        y = lax.conv_general_dilated(
            x, w, (1, 1), ((1, 1), (1, 1)),
            dimension_numbers=("NCHW", "OIHW", "NCHW"))
        return jax.nn.relu(y + b.reshape(1, -1, 1, 1))

    def pool(x):
        return lax.reduce_window(x, -jnp.inf, lax.max,
                                 (1, 1, 2, 2), (1, 1, 2, 2), "VALID")

    y = pool(conv(x_nchw, params["w1"], params["b1"]))
    y = pool(conv(y, params["w2"], params["b2"]))
    y = conv(y, params["w3"], params["b3"])
    y = y.reshape(y.shape[0], 16 * 7 * 7)                 # NCHW flatten
    y = jax.nn.relu(y @ params["fc1_w"] + params["bf1"])
    y = jax.nn.relu(y @ params["wf2"] + params["bf2"])
    return y @ params["wf3"] + params["bf3"]


if __name__ == "__main__":
    key = jax.random.PRNGKey(0)
    kx, kp = jax.random.split(key)
    params = init_params(kp)

    # Spatial size must be 28 so two pools give 7x7 for fc1 (16*7*7).
    x = jax.random.normal(kx, (2, 1, 28, 28), jnp.float32)

    out = jax.block_until_ready(jax.jit(net_forward)(x, params))
    assert out.shape == (2, 10) and out.dtype == jnp.float32
    assert bool(jnp.all(jnp.isfinite(out)))

    ref = jax.block_until_ready(jax.jit(_reference_forward)(x, params))
    err = float(jnp.max(jnp.abs(out - ref)))
    # bf16 MXU operands (f32 accumulation) => looser tolerance than pure-f32.
    assert err < 5e-2, f"mismatch vs reference: {err}"
    print("KERNEL_OK")
</pallas_src>

<mosaic_0001>
module attributes {stable_mosaic.version = 11 : i64} {
  func.func @_net_kernel(%arg0: i32, %arg1: memref<1x1x900xf32, #tpu.memory_space<vmem>>, %arg2: memref<9x8x1xf32, #tpu.memory_space<vmem>>, %arg3: memref<8x1xf32, #tpu.memory_space<vmem>>, %arg4: memref<9x16x8xbf16, #tpu.memory_space<vmem>>, %arg5: memref<16x1xf32, #tpu.memory_space<vmem>>, %arg6: memref<9x16x16xbf16, #tpu.memory_space<vmem>>, %arg7: memref<16x1xf32, #tpu.memory_space<vmem>>, %arg8: memref<807x256xbf16, #tpu.memory_space<vmem>>, %arg9: memref<205x81xbf16, #tpu.memory_space<vmem>>, %arg10: memref<16x61x512xbf16, #tpu.memory_space<vmem>>, %arg11: memref<1x512xf32, #tpu.memory_space<vmem>>, %arg12: memref<512x128xf32, #tpu.memory_space<vmem>>, %arg13: memref<1x128xf32, #tpu.memory_space<vmem>>, %arg14: memref<128x128xf32, #tpu.memory_space<vmem>>, %arg15: memref<1x128xf32, #tpu.memory_space<vmem>>, %arg16: memref<1x1x128xf32, #tpu.memory_space<vmem>>) attributes {dimension_semantics = [#tpu.dimension_semantics<parallel>], iteration_bounds = array<i64: 2>, scalar_prefetch = 0 : i64, scratch_operands = 0 : i64, tpu.core_type = #tpu.core_type<tc>, window_params = [{transform_indices = @transform_0, window_bounds = array<i64: 1, 1, 900>}, {pipeline_mode = #tpu.pipeline_mode<synchronous>, transform_indices = @transform_1, window_bounds = array<i64: 9, 8, 1>}, {pipeline_mode = #tpu.pipeline_mode<synchronous>, transform_indices = @transform_2, window_bounds = array<i64: 8, 1>}, {pipeline_mode = #tpu.pipeline_mode<synchronous>, transform_indices = @transform_3, window_bounds = array<i64: 9, 16, 8>}, {pipeline_mode = #tpu.pipeline_mode<synchronous>, transform_indices = @transform_4, window_bounds = array<i64: 16, 1>}, {pipeline_mode = #tpu.pipeline_mode<synchronous>, transform_indices = @transform_5, window_bounds = array<i64: 9, 16, 16>}, {pipeline_mode = #tpu.pipeline_mode<synchronous>, transform_indices = @transform_6, window_bounds = array<i64: 16, 1>}, {pipeline_mode = #tpu.pipeline_mode<synchronous>, transform_indices = @transform_7, window_bounds = array<i64: 807, 256>}, {pipeline_mode = #tpu.pipeline_mode<synchronous>, transform_indices = @transform_8, window_bounds = array<i64: 205, 81>}, {pipeline_mode = #tpu.pipeline_mode<synchronous>, transform_indices = @transform_9, window_bounds = array<i64: 16, 61, 512>}, {pipeline_mode = #tpu.pipeline_mode<synchronous>, transform_indices = @transform_10, window_bounds = array<i64: 1, 512>}, {pipeline_mode = #tpu.pipeline_mode<synchronous>, transform_indices = @transform_11, window_bounds = array<i64: 512, 128>}, {pipeline_mode = #tpu.pipeline_mode<synchronous>, transform_indices = @transform_12, window_bounds = array<i64: 1, 128>}, {pipeline_mode = #tpu.pipeline_mode<synchronous>, transform_indices = @transform_13, window_bounds = array<i64: 128, 128>}, {pipeline_mode = #tpu.pipeline_mode<synchronous>, transform_indices = @transform_14, window_bounds = array<i64: 1, 128>}, {transform_indices = @transform_15, window_bounds = array<i64: 1, 1, 128>}]} {
    %c0 = arith.constant 0 : index
    %c0_0 = arith.constant 0 : index
    %c0_1 = arith.constant 0 : index
    %0 = vector.load %arg2[%c0, %c0_0, %c0_1] : memref<9x8x1xf32, #tpu.memory_space<vmem>>, vector<1x8x1xf32>
    %1 = vector.shape_cast %0 : vector<1x8x1xf32> to vector<8x1xf32>
    %c0_2 = arith.constant 0 : index
    %c0_3 = arith.constant 0 : index
    %c0_4 = arith.constant 0 : index
    %2 = vector.load %arg1[%c0_2, %c0_3, %c0_4] : memref<1x1x900xf32, #tpu.memory_space<vmem>>, vector<1x1x838xf32>
    %3 = vector.shape_cast %2 : vector<1x1x838xf32> to vector<1x838xf32>
    %4 = vector.broadcast %1 : vector<8x1xf32> to vector<8x838xf32>
    %5 = vector.broadcast %3 : vector<1x838xf32> to vector<8x838xf32>
    %6 = arith.mulf %4, %5 : vector<8x838xf32>
    %c1 = arith.constant 1 : index
    %c0_5 = arith.constant 0 : index
    %c0_6 = arith.constant 0 : index
    %7 = vector.load %arg2[%c1, %c0_5, %c0_6] : memref<9x8x1xf32, #tpu.memory_space<vmem>>, vector<1x8x1xf32>
    %8 = vector.shape_cast %7 : vector<1x8x1xf32> to vector<8x1xf32>
    %c0_7 = arith.constant 0 : index
    %c0_8 = arith.constant 0 : index
    %c1_9 = arith.constant 1 : index
    %9 = vector.load %arg1[%c0_7, %c0_8, %c1_9] : memref<1x1x900xf32, #tpu.memory_space<vmem>>, vector<1x1x838xf32>
    %10 = vector.shape_cast %9 : vector<1x1x838xf32> to vector<1x838xf32>
    %11 = vector.broadcast %8 : vector<8x1xf32> to vector<8x838xf32>
    %12 = vector.broadcast %10 : vector<1x838xf32> to vector<8x838xf32>
    %13 = arith.mulf %11, %12 : vector<8x838xf32>
    %14 = arith.addf %6, %13 : vector<8x838xf32>
    %c2 = arith.constant 2 : index
    %c0_10 = arith.constant 0 : index
    %c0_11 = arith.constant 0 : index
    %15 = vector.load %arg2[%c2, %c0_10, %c0_11] : memref<9x8x1xf32, #tpu.memory_space<vmem>>, vector<1x8x1xf32>
    %16 = vector.shape_cast %15 : vector<1x8x1xf32> to vector<8x1xf32>
    %c0_12 = arith.constant 0 : index
    %c0_13 = arith.constant 0 : index
    %c2_14 = arith.constant 2 : index
    %17 = vector.load %arg1[%c0_12, %c0_13, %c2_14] : memref<1x1x900xf32, #tpu.memory_space<vmem>>, vector<1x1x838xf32>
    %18 = vector.shape_cast %17 : vector<1x1x838xf32> to vector<1x838xf32>
    %19 = vector.broadcast %16 : vector<8x1xf32> to vector<8x838xf32>
    %20 = vector.broadcast %18 : vector<1x838xf32> to vector<8x838xf32>
    %21 = arith.mulf %19, %20 : vector<8x838xf32>
    %22 = arith.addf %14, %21 : vector<8x838xf32>
    %c3 = arith.constant 3 : index
    %c0_15 = arith.constant 0 : index
    %c0_16 = arith.constant 0 : index
    %23 = vector.load %arg2[%c3, %c0_15, %c0_16] : memref<9x8x1xf32, #tpu.memory_space<vmem>>, vector<1x8x1xf32>
    %24 = vector.shape_cast %23 : vector<1x8x1xf32> to vector<8x1xf32>
    %c0_17 = arith.constant 0 : index
    %c0_18 = arith.constant 0 : index
    %c30 = arith.constant 30 : index
    %25 = vector.load %arg1[%c0_17, %c0_18, %c30] : memref<1x1x900xf32, #tpu.memory_space<vmem>>, vector<1x1x838xf32>
    %26 = vector.shape_cast %25 : vector<1x1x838xf32> to vector<1x838xf32>
    %27 = vector.broadcast %24 : vector<8x1xf32> to vector<8x838xf32>
    %28 = vector.broadcast %26 : vector<1x838xf32> to vector<8x838xf32>
    %29 = arith.mulf %27, %28 : vector<8x838xf32>
    %c4 = arith.constant 4 : index
    %c0_19 = arith.constant 0 : index
    %c0_20 = arith.constant 0 : index
    %30 = vector.load %arg2[%c4, %c0_19, %c0_20] : memref<9x8x1xf32, #tpu.memory_space<vmem>>, vector<1x8x1xf32>
    %31 = vector.shape_cast %30 : vector<1x8x1xf32> to vector<8x1xf32>
    %c0_21 = arith.constant 0 : index
    %c0_22 = arith.constant 0 : index
    %c31 = arith.constant 31 : index
    %32 = vector.load %arg1[%c0_21, %c0_22, %c31] : memref<1x1x900xf32, #tpu.memory_space<vmem>>, vector<1x1x838xf32>
    %33 = vector.shape_cast %32 : vector<1x1x838xf32> to vector<1x838xf32>
    %34 = vector.broadcast %31 : vector<8x1xf32> to vector<8x838xf32>
    %35 = vector.broadcast %33 : vector<1x838xf32> to vector<8x838xf32>
    %36 = arith.mulf %34, %35 : vector<8x838xf32>
    %37 = arith.addf %29, %36 : vector<8x838xf32>
    %c5 = arith.constant 5 : index
    %c0_23 = arith.constant 0 : index
    %c0_24 = arith.constant 0 : index
    %38 = vector.load %arg2[%c5, %c0_23, %c0_24] : memref<9x8x1xf32, #tpu.memory_space<vmem>>, vector<1x8x1xf32>
    %39 = vector.shape_cast %38 : vector<1x8x1xf32> to vector<8x1xf32>
    %c0_25 = arith.constant 0 : index
    %c0_26 = arith.constant 0 : index
    %c32 = arith.constant 32 : index
    %40 = vector.load %arg1[%c0_25, %c0_26, %c32] : memref<1x1x900xf32, #tpu.memory_space<vmem>>, vector<1x1x838xf32>
    %41 = vector.shape_cast %40 : vector<1x1x838xf32> to vector<1x838xf32>
    %42 = vector.broadcast %39 : vector<8x1xf32> to vector<8x838xf32>
    %43 = vector.broadcast %41 : vector<1x838xf32> to vector<8x838xf32>
    %44 = arith.mulf %42, %43 : vector<8x838xf32>
    %45 = arith.addf %37, %44 : vector<8x838xf32>
    %c6 = arith.constant 6 : index
    %c0_27 = arith.constant 0 : index
    %c0_28 = arith.constant 0 : index
    %46 = vector.load %arg2[%c6, %c0_27, %c0_28] : memref<9x8x1xf32, #tpu.memory_space<vmem>>, vector<1x8x1xf32>
    %47 = vector.shape_cast %46 : vector<1x8x1xf32> to vector<8x1xf32>
    %c0_29 = arith.constant 0 : index
    %c0_30 = arith.constant 0 : index
    %c60 = arith.constant 60 : index
    %48 = vector.load %arg1[%c0_29, %c0_30, %c60] : memref<1x1x900xf32, #tpu.memory_space<vmem>>, vector<1x1x838xf32>
    %49 = vector.shape_cast %48 : vector<1x1x838xf32> to vector<1x838xf32>
    %50 = vector.broadcast %47 : vector<8x1xf32> to vector<8x838xf32>
    %51 = vector.broadcast %49 : vector<1x838xf32> to vector<8x838xf32>
    %52 = arith.mulf %50, %51 : vector<8x838xf32>
    %c7 = arith.constant 7 : index
    %c0_31 = arith.constant 0 : index
    %c0_32 = arith.constant 0 : index
    %53 = vector.load %arg2[%c7, %c0_31, %c0_32] : memref<9x8x1xf32, #tpu.memory_space<vmem>>, vector<1x8x1xf32>
    %54 = vector.shape_cast %53 : vector<1x8x1xf32> to vector<8x1xf32>
    %c0_33 = arith.constant 0 : index
    %c0_34 = arith.constant 0 : index
    %c61 = arith.constant 61 : index
    %55 = vector.load %arg1[%c0_33, %c0_34, %c61] : memref<1x1x900xf32, #tpu.memory_space<vmem>>, vector<1x1x838xf32>
    %56 = vector.shape_cast %55 : vector<1x1x838xf32> to vector<1x838xf32>
    %57 = vector.broadcast %54 : vector<8x1xf32> to vector<8x838xf32>
    %58 = vector.broadcast %56 : vector<1x838xf32> to vector<8x838xf32>
    %59 = arith.mulf %57, %58 : vector<8x838xf32>
    %60 = arith.addf %52, %59 : vector<8x838xf32>
    %c8 = arith.constant 8 : index
    %c0_35 = arith.constant 0 : index
    %c0_36 = arith.constant 0 : index
    %61 = vector.load %arg2[%c8, %c0_35, %c0_36] : memref<9x8x1xf32, #tpu.memory_space<vmem>>, vector<1x8x1xf32>
    %62 = vector.shape_cast %61 : vector<1x8x1xf32> to vector<8x1xf32>
    %c0_37 = arith.constant 0 : index
    %c0_38 = arith.constant 0 : index
    %c62 = arith.constant 62 : index
    %63 = vector.load %arg1[%c0_37, %c0_38, %c62] : memref<1x1x900xf32, #tpu.memory_space<vmem>>, vector<1x1x838xf32>
    %64 = vector.shape_cast %63 : vector<1x1x838xf32> to vector<1x838xf32>
    %65 = vector.broadcast %62 : vector<8x1xf32> to vector<8x838xf32>
    %66 = vector.broadcast %64 : vector<1x838xf32> to vector<8x838xf32>
    %67 = arith.mulf %65, %66 : vector<8x838xf32>
    %68 = arith.addf %60, %67 : vector<8x838xf32>
    %69 = arith.addf %22, %45 : vector<8x838xf32>
    %70 = arith.addf %69, %68 : vector<8x838xf32>
    %c0_39 = arith.constant 0 : index
    %c0_40 = arith.constant 0 : index
    %71 = vector.load %arg3[%c0_39, %c0_40] : memref<8x1xf32, #tpu.memory_space<vmem>>, vector<8x1xf32>
    %72 = vector.broadcast %71 : vector<8x1xf32> to vector<8x838xf32>
    %73 = arith.addf %70, %72 : vector<8x838xf32>
    %cst = arith.constant 0.000000e+00 : f32
    %74 = vector.broadcast %cst : f32 to vector<8x838xf32>
    %75 = arith.maximumf %73, %74 : vector<8x838xf32>
    %76 = vector.extract_strided_slice %75 {offsets = [0, 0], sizes = [8, 807], strides = [1, 1]} : vector<8x838xf32> to vector<8x807xf32>
    %77 = vector.extract_strided_slice %75 {offsets = [0, 1], sizes = [8, 807], strides = [1, 1]} : vector<8x838xf32> to vector<8x807xf32>
    %78 = arith.maximumf %76, %77 : vector<8x807xf32>
    %79 = vector.extract_strided_slice %75 {offsets = [0, 30], sizes = [8, 807], strides = [1, 1]} : vector<8x838xf32> to vector<8x807xf32>
    %80 = vector.extract_strided_slice %75 {offsets = [0, 31], sizes = [8, 807], strides = [1, 1]} : vector<8x838xf32> to vector<8x807xf32>
    %81 = arith.maximumf %79, %80 : vector<8x807xf32>
    %82 = arith.maximumf %78, %81 : vector<8x807xf32>
    %83 = arith.truncf %82 : vector<8x807xf32> to vector<8x807xbf16>
    %c0_41 = arith.constant 0 : index
    %c0_42 = arith.constant 0 : index
    %84 = vector.load %arg8[%c0_41, %c0_42] : memref<807x256xbf16, #tpu.memory_space<vmem>>, vector<807x256xbf16>
    %cst_43 = arith.constant dense<0.000000e+00> : vector<8x256xf32>
    %85 = tpu.matmul %83, %84, %cst_43 {dimension_numbers = #tpu.dot_dimension_numbers<[1], [0], [0], [1], [0, 0, 1, 1], [], []>} : vector<8x807xbf16>, vector<807x256xbf16>, vector<8x256xf32> -> vector<8x256xf32>
    %86 = vector.extract_strided_slice %85 {offsets = [0, 0], sizes = [8, 222], strides = [1, 1]} : vector<8x256xf32> to vector<8x222xf32>
    %87 = arith.truncf %86 : vector<8x222xf32> to vector<8x222xbf16>
    %c0_44 = arith.constant 0 : index
    %c0_45 = arith.constant 0 : index
    %c0_46 = arith.constant 0 : index
    %88 = vector.load %arg4[%c0_44, %c0_45, %c0_46] : memref<9x16x8xbf16, #tpu.memory_space<vmem>>, vector<1x16x8xbf16>
    %89 = vector.shape_cast %88 : vector<1x16x8xbf16> to vector<16x8xbf16>
    %cst_47 = arith.constant dense<0.000000e+00> : vector<16x222xf32>
    %90 = tpu.matmul %89, %87, %cst_47 {dimension_numbers = #tpu.dot_dimension_numbers<[1], [0], [0], [1], [0, 0, 1, 1], [], []>} : vector<16x8xbf16>, vector<8x222xbf16>, vector<16x222xf32> -> vector<16x222xf32>
    %91 = vector.extract_strided_slice %85 {offsets = [0, 1], sizes = [8, 222], strides = [1, 1]} : vector<8x256xf32> to vector<8x222xf32>
    %92 = arith.truncf %91 : vector<8x222xf32> to vector<8x222xbf16>
    %c1_48 = arith.constant 1 : index
    %c0_49 = arith.constant 0 : index
    %c0_50 = arith.constant 0 : index
    %93 = vector.load %arg4[%c1_48, %c0_49, %c0_50] : memref<9x16x8xbf16, #tpu.memory_space<vmem>>, vector<1x16x8xbf16>
    %94 = vector.shape_cast %93 : vector<1x16x8xbf16> to vector<16x8xbf16>
    %cst_51 = arith.constant dense<0.000000e+00> : vector<16x222xf32>
    %95 = tpu.matmul %94, %92, %cst_51 {dimension_numbers = #tpu.dot_dimension_numbers<[1], [0], [0], [1], [0, 0, 1, 1], [], []>} : vector<16x8xbf16>, vector<8x222xbf16>, vector<16x222xf32> -> vector<16x222xf32>
    %96 = arith.addf %90, %95 : vector<16x222xf32>
    %97 = vector.extract_strided_slice %85 {offsets = [0, 2], sizes = [8, 222], strides = [1, 1]} : vector<8x256xf32> to vector<8x222xf32>
    %98 = arith.truncf %97 : vector<8x222xf32> to vector<8x222xbf16>
    %c2_52 = arith.constant 2 : index
    %c0_53 = arith.constant 0 : index
    %c0_54 = arith.constant 0 : index
    %99 = vector.load %arg4[%c2_52, %c0_53, %c0_54] : memref<9x16x8xbf16, #tpu.memory_space<vmem>>, vector<1x16x8xbf16>
    %100 = vector.shape_cast %99 : vector<1x16x8xbf16> to vector<16x8xbf16>
    %cst_55 = arith.constant dense<0.000000e+00> : vector<16x222xf32>
    %101 = tpu.matmul %100, %98, %cst_55 {dimension_numbers = #tpu.dot_dimension_numbers<[1], [0], [0], [1], [0, 0, 1, 1], [], []>} : vector<16x8xbf16>, vector<8x222xbf16>, vector<16x222xf32> -> vector<16x222xf32>
    %102 = arith.addf %96, %101 : vector<16x222xf32>
    %103 = vector.extract_strided_slice %85 {offsets = [0, 16], sizes = [8, 222], strides = [1, 1]} : vector<8x256xf32> to vector<8x222xf32>
    %104 = arith.truncf %103 : vector<8x222xf32> to vector<8x222xbf16>
    %c3_56 = arith.constant 3 : index
    %c0_57 = arith.constant 0 : index
    %c0_58 = arith.constant 0 : index
    %105 = vector.load %arg4[%c3_56, %c0_57, %c0_58] : memref<9x16x8xbf16, #tpu.memory_space<vmem>>, vector<1x16x8xbf16>
    %106 = vector.shape_cast %105 : vector<1x16x8xbf16> to vector<16x8xbf16>
    %cst_59 = arith.constant dense<0.000000e+00> : vector<16x222xf32>
    %107 = tpu.matmul %106, %104, %cst_59 {dimension_numbers = #tpu.dot_dimension_numbers<[1], [0], [0], [1], [0, 0, 1, 1], [], []>} : vector<16x8xbf16>, vector<8x222xbf16>, vector<16x222xf32> -> vector<16x222xf32>
    %108 = vector.extract_strided_slice %85 {offsets = [0, 17], sizes = [8, 222], strides = [1, 1]} : vector<8x256xf32> to vector<8x222xf32>
    %109 = arith.truncf %108 : vector<8x222xf32> to vector<8x222xbf16>
    %c4_60 = arith.constant 4 : index
    %c0_61 = arith.constant 0 : index
    %c0_62 = arith.constant 0 : index
    %110 = vector.load %arg4[%c4_60, %c0_61, %c0_62] : memref<9x16x8xbf16, #tpu.memory_space<vmem>>, vector<1x16x8xbf16>
    %111 = vector.shape_cast %110 : vector<1x16x8xbf16> to vector<16x8xbf16>
    %cst_63 = arith.constant dense<0.000000e+00> : vector<16x222xf32>
    %112 = tpu.matmul %111, %109, %cst_63 {dimension_numbers = #tpu.dot_dimension_numbers<[1], [0], [0], [1], [0, 0, 1, 1], [], []>} : vector<16x8xbf16>, vector<8x222xbf16>, vector<16x222xf32> -> vector<16x222xf32>
    %113 = arith.addf %107, %112 : vector<16x222xf32>
    %114 = vector.extract_strided_slice %85 {offsets = [0, 18], sizes = [8, 222], strides = [1, 1]} : vector<8x256xf32> to vector<8x222xf32>
    %115 = arith.truncf %114 : vector<8x222xf32> to vector<8x222xbf16>
    %c5_64 = arith.constant 5 : index
    %c0_65 = arith.constant 0 : index
    %c0_66 = arith.constant 0 : index
    %116 = vector.load %arg4[%c5_64, %c0_65, %c0_66] : memref<9x16x8xbf16, #tpu.memory_space<vmem>>, vector<1x16x8xbf16>
    %117 = vector.shape_cast %116 : vector<1x16x8xbf16> to vector<16x8xbf16>
    %cst_67 = arith.constant dense<0.000000e+00> : vector<16x222xf32>
    %118 = tpu.matmul %117, %115, %cst_67 {dimension_numbers = #tpu.dot_dimension_numbers<[1], [0], [0], [1], [0, 0, 1, 1], [], []>} : vector<16x8xbf16>, vector<8x222xbf16>, vector<16x222xf32> -> vector<16x222xf32>
    %119 = arith.addf %113, %118 : vector<16x222xf32>
    %120 = vector.extract_strided_slice %85 {offsets = [0, 32], sizes = [8, 222], strides = [1, 1]} : vector<8x256xf32> to vector<8x222xf32>
    %121 = arith.truncf %120 : vector<8x222xf32> to vector<8x222xbf16>
    %c6_68 = arith.constant 6 : index
    %c0_69 = arith.constant 0 : index
    %c0_70 = arith.constant 0 : index
    %122 = vector.load %arg4[%c6_68, %c0_69, %c0_70] : memref<9x16x8xbf16, #tpu.memory_space<vmem>>, vector<1x16x8xbf16>
    %123 = vector.shape_cast %122 : vector<1x16x8xbf16> to vector<16x8xbf16>
    %cst_71 = arith.constant dense<0.000000e+00> : vector<16x222xf32>
    %124 = tpu.matmul %123, %121, %cst_71 {dimension_numbers = #tpu.dot_dimension_numbers<[1], [0], [0], [1], [0, 0, 1, 1], [], []>} : vector<16x8xbf16>, vector<8x222xbf16>, vector<16x222xf32> -> vector<16x222xf32>
    %125 = vector.extract_strided_slice %85 {offsets = [0, 33], sizes = [8, 222], strides = [1, 1]} : vector<8x256xf32> to vector<8x222xf32>
    %126 = arith.truncf %125 : vector<8x222xf32> to vector<8x222xbf16>
    %c7_72 = arith.constant 7 : index
    %c0_73 = arith.constant 0 : index
    %c0_74 = arith.constant 0 : index
    %127 = vector.load %arg4[%c7_72, %c0_73, %c0_74] : memref<9x16x8xbf16, #tpu.memory_space<vmem>>, vector<1x16x8xbf16>
    %128 = vector.shape_cast %127 : vector<1x16x8xbf16> to vector<16x8xbf16>
    %cst_75 = arith.constant dense<0.000000e+00> : vector<16x222xf32>
    %129 = tpu.matmul %128, %126, %cst_75 {dimension_numbers = #tpu.dot_dimension_numbers<[1], [0], [0], [1], [0, 0, 1, 1], [], []>} : vector<16x8xbf16>, vector<8x222xbf16>, vector<16x222xf32> -> vector<16x222xf32>
    %130 = arith.addf %124, %129 : vector<16x222xf32>
    %131 = vector.extract_strided_slice %85 {offsets = [0, 34], sizes = [8, 222], strides = [1, 1]} : vector<8x256xf32> to vector<8x222xf32>
    %132 = arith.truncf %131 : vector<8x222xf32> to vector<8x222xbf16>
    %c8_76 = arith.constant 8 : index
    %c0_77 = arith.constant 0 : index
    %c0_78 = arith.constant 0 : index
    %133 = vector.load %arg4[%c8_76, %c0_77, %c0_78] : memref<9x16x8xbf16, #tpu.memory_space<vmem>>, vector<1x16x8xbf16>
    %134 = vector.shape_cast %133 : vector<1x16x8xbf16> to vector<16x8xbf16>
    %cst_79 = arith.constant dense<0.000000e+00> : vector<16x222xf32>
    %135 = tpu.matmul %134, %132, %cst_79 {dimension_numbers = #tpu.dot_dimension_numbers<[1], [0], [0], [1], [0, 0, 1, 1], [], []>} : vector<16x8xbf16>, vector<8x222xbf16>, vector<16x222xf32> -> vector<16x222xf32>
    %136 = arith.addf %130, %135 : vector<16x222xf32>
    %137 = arith.addf %102, %119 : vector<16x222xf32>
    %138 = arith.addf %137, %136 : vector<16x222xf32>
    %c0_80 = arith.constant 0 : index
    %c0_81 = arith.constant 0 : index
    %139 = vector.load %arg5[%c0_80, %c0_81] : memref<16x1xf32, #tpu.memory_space<vmem>>, vector<16x1xf32>
    %140 = vector.broadcast %139 : vector<16x1xf32> to vector<16x222xf32>
    %141 = arith.addf %138, %140 : vector<16x222xf32>
    %cst_82 = arith.constant 0.000000e+00 : f32
    %142 = vector.broadcast %cst_82 : f32 to vector<16x222xf32>
    %143 = arith.maximumf %141, %142 : vector<16x222xf32>
    %144 = vector.extract_strided_slice %143 {offsets = [0, 0], sizes = [16, 205], strides = [1, 1]} : vector<16x222xf32> to vector<16x205xf32>
    %145 = vector.extract_strided_slice %143 {offsets = [0, 1], sizes = [16, 205], strides = [1, 1]} : vector<16x222xf32> to vector<16x205xf32>
    %146 = arith.maximumf %144, %145 : vector<16x205xf32>
    %147 = vector.extract_strided_slice %143 {offsets = [0, 16], sizes = [16, 205], strides = [1, 1]} : vector<16x222xf32> to vector<16x205xf32>
    %148 = vector.extract_strided_slice %143 {offsets = [0, 17], sizes = [16, 205], strides = [1, 1]} : vector<16x222xf32> to vector<16x205xf32>
    %149 = arith.maximumf %147, %148 : vector<16x205xf32>
    %150 = arith.maximumf %146, %149 : vector<16x205xf32>
    %151 = arith.truncf %150 : vector<16x205xf32> to vector<16x205xbf16>
    %c0_83 = arith.constant 0 : index
    %c0_84 = arith.constant 0 : index
    %152 = vector.load %arg9[%c0_83, %c0_84] : memref<205x81xbf16, #tpu.memory_space<vmem>>, vector<205x81xbf16>
    %cst_85 = arith.constant dense<0.000000e+00> : vector<16x81xf32>
    %153 = tpu.matmul %151, %152, %cst_85 {dimension_numbers = #tpu.dot_dimension_numbers<[1], [0], [0], [1], [0, 0, 1, 1], [], []>} : vector<16x205xbf16>, vector<205x81xbf16>, vector<16x81xf32> -> vector<16x81xf32>
    %154 = vector.extract_strided_slice %153 {offsets = [0, 0], sizes = [16, 61], strides = [1, 1]} : vector<16x81xf32> to vector<16x61xf32>
    %155 = arith.truncf %154 : vector<16x61xf32> to vector<16x61xbf16>
    %c0_86 = arith.constant 0 : index
    %c0_87 = arith.constant 0 : index
    %c0_88 = arith.constant 0 : index
    %156 = vector.load %arg6[%c0_86, %c0_87, %c0_88] : memref<9x16x16xbf16, #tpu.memory_space<vmem>>, vector<1x16x16xbf16>
    %157 = vector.shape_cast %156 : vector<1x16x16xbf16> to vector<16x16xbf16>
    %cst_89 = arith.constant dense<0.000000e+00> : vector<16x61xf32>
    %158 = tpu.matmul %157, %155, %cst_89 {dimension_numbers = #tpu.dot_dimension_numbers<[1], [0], [0], [1], [0, 0, 1, 1], [], []>} : vector<16x16xbf16>, vector<16x61xbf16>, vector<16x61xf32> -> vector<16x61xf32>
    %159 = vector.extract_strided_slice %153 {offsets = [0, 1], sizes = [16, 61], strides = [1, 1]} : vector<16x81xf32> to vector<16x61xf32>
    %160 = arith.truncf %159 : vector<16x61xf32> to vector<16x61xbf16>
    %c1_90 = arith.constant 1 : index
    %c0_91 = arith.constant 0 : index
    %c0_92 = arith.constant 0 : index
    %161 = vector.load %arg6[%c1_90, %c0_91, %c0_92] : memref<9x16x16xbf16, #tpu.memory_space<vmem>>, vector<1x16x16xbf16>
    %162 = vector.shape_cast %161 : vector<1x16x16xbf16> to vector<16x16xbf16>
    %cst_93 = arith.constant dense<0.000000e+00> : vector<16x61xf32>
    %163 = tpu.matmul %162, %160, %cst_93 {dimension_numbers = #tpu.dot_dimension_numbers<[1], [0], [0], [1], [0, 0, 1, 1], [], []>} : vector<16x16xbf16>, vector<16x61xbf16>, vector<16x61xf32> -> vector<16x61xf32>
    %164 = arith.addf %158, %163 : vector<16x61xf32>
    %165 = vector.extract_strided_slice %153 {offsets = [0, 2], sizes = [16, 61], strides = [1, 1]} : vector<16x81xf32> to vector<16x61xf32>
    %166 = arith.truncf %165 : vector<16x61xf32> to vector<16x61xbf16>
    %c2_94 = arith.constant 2 : index
    %c0_95 = arith.constant 0 : index
    %c0_96 = arith.constant 0 : index
    %167 = vector.load %arg6[%c2_94, %c0_95, %c0_96] : memref<9x16x16xbf16, #tpu.memory_space<vmem>>, vector<1x16x16xbf16>
    %168 = vector.shape_cast %167 : vector<1x16x16xbf16> to vector<16x16xbf16>
    %cst_97 = arith.constant dense<0.000000e+00> : vector<16x61xf32>
    %169 = tpu.matmul %168, %166, %cst_97 {dimension_numbers = #tpu.dot_dimension_numbers<[1], [0], [0], [1], [0, 0, 1, 1], [], []>} : vector<16x16xbf16>, vector<16x61xbf16>, vector<16x61xf32> -> vector<16x61xf32>
    %170 = arith.addf %164, %169 : vector<16x61xf32>
    %171 = vector.extract_strided_slice %153 {offsets = [0, 9], sizes = [16, 61], strides = [1, 1]} : vector<16x81xf32> to vector<16x61xf32>
    %172 = arith.truncf %171 : vector<16x61xf32> to vector<16x61xbf16>
    %c3_98 = arith.constant 3 : index
    %c0_99 = arith.constant 0 : index
    %c0_100 = arith.constant 0 : index
    %173 = vector.load %arg6[%c3_98, %c0_99, %c0_100] : memref<9x16x16xbf16, #tpu.memory_space<vmem>>, vector<1x16x16xbf16>
    %174 = vector.shape_cast %173 : vector<1x16x16xbf16> to vector<16x16xbf16>
    %cst_101 = arith.constant dense<0.000000e+00> : vector<16x61xf32>
    %175 = tpu.matmul %174, %172, %cst_101 {dimension_numbers = #tpu.dot_dimension_numbers<[1], [0], [0], [1], [0, 0, 1, 1], [], []>} : vector<16x16xbf16>, vector<16x61xbf16>, vector<16x61xf32> -> vector<16x61xf32>
    %176 = vector.extract_strided_slice %153 {offsets = [0, 10], sizes = [16, 61], strides = [1, 1]} : vector<16x81xf32> to vector<16x61xf32>
    %177 = arith.truncf %176 : vector<16x61xf32> to vector<16x61xbf16>
    %c4_102 = arith.constant 4 : index
    %c0_103 = arith.constant 0 : index
    %c0_104 = arith.constant 0 : index
    %178 = vector.load %arg6[%c4_102, %c0_103, %c0_104] : memref<9x16x16xbf16, #tpu.memory_space<vmem>>, vector<1x16x16xbf16>
    %179 = vector.shape_cast %178 : vector<1x16x16xbf16> to vector<16x16xbf16>
    %cst_105 = arith.constant dense<0.000000e+00> : vector<16x61xf32>
    %180 = tpu.matmul %179, %177, %cst_105 {dimension_numbers = #tpu.dot_dimension_numbers<[1], [0], [0], [1], [0, 0, 1, 1], [], []>} : vector<16x16xbf16>, vector<16x61xbf16>, vector<16x61xf32> -> vector<16x61xf32>
    %181 = arith.addf %175, %180 : vector<16x61xf32>
    %182 = vector.extract_strided_slice %153 {offsets = [0, 11], sizes = [16, 61], strides = [1, 1]} : vector<16x81xf32> to vector<16x61xf32>
    %183 = arith.truncf %182 : vector<16x61xf32> to vector<16x61xbf16>
    %c5_106 = arith.constant 5 : index
    %c0_107 = arith.constant 0 : index
    %c0_108 = arith.constant 0 : index
    %184 = vector.load %arg6[%c5_106, %c0_107, %c0_108] : memref<9x16x16xbf16, #tpu.memory_space<vmem>>, vector<1x16x16xbf16>
    %185 = vector.shape_cast %184 : vector<1x16x16xbf16> to vector<16x16xbf16>
    %cst_109 = arith.constant dense<0.000000e+00> : vector<16x61xf32>
    %186 = tpu.matmul %185, %183, %cst_109 {dimension_numbers = #tpu.dot_dimension_numbers<[1], [0], [0], [1], [0, 0, 1, 1], [], []>} : vector<16x16xbf16>, vector<16x61xbf16>, vector<16x61xf32> -> vector<16x61xf32>
    %187 = arith.addf %181, %186 : vector<16x61xf32>
    %188 = vector.extract_strided_slice %153 {offsets = [0, 18], sizes = [16, 61], strides = [1, 1]} : vector<16x81xf32> to vector<16x61xf32>
    %189 = arith.truncf %188 : vector<16x61xf32> to vector<16x61xbf16>
    %c6_110 = arith.constant 6 : index
    %c0_111 = arith.constant 0 : index
    %c0_112 = arith.constant 0 : index
    %190 = vector.load %arg6[%c6_110, %c0_111, %c0_112] : memref<9x16x16xbf16, #tpu.memory_space<vmem>>, vector<1x16x16xbf16>
    %191 = vector.shape_cast %190 : vector<1x16x16xbf16> to vector<16x16xbf16>
    %cst_113 = arith.constant dense<0.000000e+00> : vector<16x61xf32>
    %192 = tpu.matmul %191, %189, %cst_113 {dimension_numbers = #tpu.dot_dimension_numbers<[1], [0], [0], [1], [0, 0, 1, 1], [], []>} : vector<16x16xbf16>, vector<16x61xbf16>, vector<16x61xf32> -> vector<16x61xf32>
    %193 = vector.extract_strided_slice %153 {offsets = [0, 19], sizes = [16, 61], strides = [1, 1]} : vector<16x81xf32> to vector<16x61xf32>
    %194 = arith.truncf %193 : vector<16x61xf32> to vector<16x61xbf16>
    %c7_114 = arith.constant 7 : index
    %c0_115 = arith.constant 0 : index
    %c0_116 = arith.constant 0 : index
    %195 = vector.load %arg6[%c7_114, %c0_115, %c0_116] : memref<9x16x16xbf16, #tpu.memory_space<vmem>>, vector<1x16x16xbf16>
    %196 = vector.shape_cast %195 : vector<1x16x16xbf16> to vector<16x16xbf16>
    %cst_117 = arith.constant dense<0.000000e+00> : vector<16x61xf32>
    %197 = tpu.matmul %196, %194, %cst_117 {dimension_numbers = #tpu.dot_dimension_numbers<[1], [0], [0], [1], [0, 0, 1, 1], [], []>} : vector<16x16xbf16>, vector<16x61xbf16>, vector<16x61xf32> -> vector<16x61xf32>
    %198 = arith.addf %192, %197 : vector<16x61xf32>
    %199 = vector.extract_strided_slice %153 {offsets = [0, 20], sizes = [16, 61], strides = [1, 1]} : vector<16x81xf32> to vector<16x61xf32>
    %200 = arith.truncf %199 : vector<16x61xf32> to vector<16x61xbf16>
    %c8_118 = arith.constant 8 : index
    %c0_119 = arith.constant 0 : index
    %c0_120 = arith.constant 0 : index
    %201 = vector.load %arg6[%c8_118, %c0_119, %c0_120] : memref<9x16x16xbf16, #tpu.memory_space<vmem>>, vector<1x16x16xbf16>
    %202 = vector.shape_cast %201 : vector<1x16x16xbf16> to vector<16x16xbf16>
    %cst_121 = arith.constant dense<0.000000e+00> : vector<16x61xf32>
    %203 = tpu.matmul %202, %200, %cst_121 {dimension_numbers = #tpu.dot_dimension_numbers<[1], [0], [0], [1], [0, 0, 1, 1], [], []>} : vector<16x16xbf16>, vector<16x61xbf16>, vector<16x61xf32> -> vector<16x61xf32>
    %204 = arith.addf %198, %203 : vector<16x61xf32>
    %205 = arith.addf %170, %187 : vector<16x61xf32>
    %206 = arith.addf %205, %204 : vector<16x61xf32>
    %c0_122 = arith.constant 0 : index
    %c0_123 = arith.constant 0 : index
    %207 = vector.load %arg7[%c0_122, %c0_123] : memref<16x1xf32, #tpu.memory_space<vmem>>, vector<16x1xf32>
    %208 = vector.broadcast %207 : vector<16x1xf32> to vector<16x61xf32>
    %209 = arith.addf %206, %208 : vector<16x61xf32>
    %cst_124 = arith.constant 0.000000e+00 : f32
    %210 = vector.broadcast %cst_124 : f32 to vector<16x61xf32>
    %211 = arith.maximumf %209, %210 : vector<16x61xf32>
    %212 = vector.extract_strided_slice %211 {offsets = [0, 0], sizes = [1, 61], strides = [1, 1]} : vector<16x61xf32> to vector<1x61xf32>
    %213 = arith.truncf %212 : vector<1x61xf32> to vector<1x61xbf16>
    %c0_125 = arith.constant 0 : index
    %c0_126 = arith.constant 0 : index
    %c0_127 = arith.constant 0 : index
    %214 = vector.load %arg10[%c0_125, %c0_126, %c0_127] : memref<16x61x512xbf16, #tpu.memory_space<vmem>>, vector<1x61x512xbf16>
    %215 = vector.shape_cast %214 : vector<1x61x512xbf16> to vector<61x512xbf16>
    %cst_128 = arith.constant dense<0.000000e+00> : vector<1x512xf32>
    %216 = tpu.matmul %213, %215, %cst_128 {dimension_numbers = #tpu.dot_dimension_numbers<[1], [0], [0], [1], [0, 0, 1, 1], [], []>} : vector<1x61xbf16>, vector<61x512xbf16>, vector<1x512xf32> -> vector<1x512xf32>
    %217 = vector.extract_strided_slice %211 {offsets = [1, 0], sizes = [1, 61], strides = [1, 1]} : vector<16x61xf32> to vector<1x61xf32>
    %218 = arith.truncf %217 : vector<1x61xf32> to vector<1x61xbf16>
    %c1_129 = arith.constant 1 : index
    %c0_130 = arith.constant 0 : index
    %c0_131 = arith.constant 0 : index
    %219 = vector.load %arg10[%c1_129, %c0_130, %c0_131] : memref<16x61x512xbf16, #tpu.memory_space<vmem>>, vector<1x61x512xbf16>
    %220 = vector.shape_cast %219 : vector<1x61x512xbf16> to vector<61x512xbf16>
    %cst_132 = arith.constant dense<0.000000e+00> : vector<1x512xf32>
    %221 = tpu.matmul %218, %220, %cst_132 {dimension_numbers = #tpu.dot_dimension_numbers<[1], [0], [0], [1], [0, 0, 1, 1], [], []>} : vector<1x61xbf16>, vector<61x512xbf16>, vector<1x512xf32> -> vector<1x512xf32>
    %222 = arith.addf %216, %221 : vector<1x512xf32>
    %223 = vector.extract_strided_slice %211 {offsets = [2, 0], sizes = [1, 61], strides = [1, 1]} : vector<16x61xf32> to vector<1x61xf32>
    %224 = arith.truncf %223 : vector<1x61xf32> to vector<1x61xbf16>
    %c2_133 = arith.constant 2 : index
    %c0_134 = arith.constant 0 : index
    %c0_135 = arith.constant 0 : index
    %225 = vector.load %arg10[%c2_133, %c0_134, %c0_135] : memref<16x61x512xbf16, #tpu.memory_space<vmem>>, vector<1x61x512xbf16>
    %226 = vector.shape_cast %225 : vector<1x61x512xbf16> to vector<61x512xbf16>
    %cst_136 = arith.constant dense<0.000000e+00> : vector<1x512xf32>
    %227 = tpu.matmul %224, %226, %cst_136 {dimension_numbers = #tpu.dot_dimension_numbers<[1], [0], [0], [1], [0, 0, 1, 1], [], []>} : vector<1x61xbf16>, vector<61x512xbf16>, vector<1x512xf32> -> vector<1x512xf32>
    %228 = arith.addf %222, %227 : vector<1x512xf32>
    %229 = vector.extract_strided_slice %211 {offsets = [3, 0], sizes = [1, 61], strides = [1, 1]} : vector<16x61xf32> to vector<1x61xf32>
    %230 = arith.truncf %229 : vector<1x61xf32> to vector<1x61xbf16>
    %c3_137 = arith.constant 3 : index
    %c0_138 = arith.constant 0 : index
    %c0_139 = arith.constant 0 : index
    %231 = vector.load %arg10[%c3_137, %c0_138, %c0_139] : memref<16x61x512xbf16, #tpu.memory_space<vmem>>, vector<1x61x512xbf16>
    %232 = vector.shape_cast %231 : vector<1x61x512xbf16> to vector<61x512xbf16>
    %cst_140 = arith.constant dense<0.000000e+00> : vector<1x512xf32>
    %233 = tpu.matmul %230, %232, %cst_140 {dimension_numbers = #tpu.dot_dimension_numbers<[1], [0], [0], [1], [0, 0, 1, 1], [], []>} : vector<1x61xbf16>, vector<61x512xbf16>, vector<1x512xf32> -> vector<1x512xf32>
    %234 = arith.addf %228, %233 : vector<1x512xf32>
    %235 = vector.extract_strided_slice %211 {offsets = [4, 0], sizes = [1, 61], strides = [1, 1]} : vector<16x61xf32> to vector<1x61xf32>
    %236 = arith.truncf %235 : vector<1x61xf32> to vector<1x61xbf16>
    %c4_141 = arith.constant 4 : index
    %c0_142 = arith.constant 0 : index
    %c0_143 = arith.constant 0 : index
    %237 = vector.load %arg10[%c4_141, %c0_142, %c0_143] : memref<16x61x512xbf16, #tpu.memory_space<vmem>>, vector<1x61x512xbf16>
    %238 = vector.shape_cast %237 : vector<1x61x512xbf16> to vector<61x512xbf16>
    %cst_144 = arith.constant dense<0.000000e+00> : vector<1x512xf32>
    %239 = tpu.matmul %236, %238, %cst_144 {dimension_numbers = #tpu.dot_dimension_numbers<[1], [0], [0], [1], [0, 0, 1, 1], [], []>} : vector<1x61xbf16>, vector<61x512xbf16>, vector<1x512xf32> -> vector<1x512xf32>
    %240 = vector.extract_strided_slice %211 {offsets = [5, 0], sizes = [1, 61], strides = [1, 1]} : vector<16x61xf32> to vector<1x61xf32>
    %241 = arith.truncf %240 : vector<1x61xf32> to vector<1x61xbf16>
    %c5_145 = arith.constant 5 : index
    %c0_146 = arith.constant 0 : index
    %c0_147 = arith.constant 0 : index
    %242 = vector.load %arg10[%c5_145, %c0_146, %c0_147] : memref<16x61x512xbf16, #tpu.memory_space<vmem>>, vector<1x61x512xbf16>
    %243 = vector.shape_cast %242 : vector<1x61x512xbf16> to vector<61x512xbf16>
    %cst_148 = arith.constant dense<0.000000e+00> : vector<1x512xf32>
    %244 = tpu.matmul %241, %243, %cst_148 {dimension_numbers = #tpu.dot_dimension_numbers<[1], [0], [0], [1], [0, 0, 1, 1], [], []>} : vector<1x61xbf16>, vector<61x512xbf16>, vector<1x512xf32> -> vector<1x512xf32>
    %245 = arith.addf %239, %244 : vector<1x512xf32>
    %246 = vector.extract_strided_slice %211 {offsets = [6, 0], sizes = [1, 61], strides = [1, 1]} : vector<16x61xf32> to vector<1x61xf32>
    %247 = arith.truncf %246 : vector<1x61xf32> to vector<1x61xbf16>
    %c6_149 = arith.constant 6 : index
    %c0_150 = arith.constant 0 : index
    %c0_151 = arith.constant 0 : index
    %248 = vector.load %arg10[%c6_149, %c0_150, %c0_151] : memref<16x61x512xbf16, #tpu.memory_space<vmem>>, vector<1x61x512xbf16>
    %249 = vector.shape_cast %248 : vector<1x61x512xbf16> to vector<61x512xbf16>
    %cst_152 = arith.constant dense<0.000000e+00> : vector<1x512xf32>
    %250 = tpu.matmul %247, %249, %cst_152 {dimension_numbers = #tpu.dot_dimension_numbers<[1], [0], [0], [1], [0, 0, 1, 1], [], []>} : vector<1x61xbf16>, vector<61x512xbf16>, vector<1x512xf32> -> vector<1x512xf32>
    %251 = arith.addf %245, %250 : vector<1x512xf32>
    %252 = vector.extract_strided_slice %211 {offsets = [7, 0], sizes = [1, 61], strides = [1, 1]} : vector<16x61xf32> to vector<1x61xf32>
    %253 = arith.truncf %252 : vector<1x61xf32> to vector<1x61xbf16>
    %c7_153 = arith.constant 7 : index
    %c0_154 = arith.constant 0 : index
    %c0_155 = arith.constant 0 : index
    %254 = vector.load %arg10[%c7_153, %c0_154, %c0_155] : memref<16x61x512xbf16, #tpu.memory_space<vmem>>, vector<1x61x512xbf16>
    %255 = vector.shape_cast %254 : vector<1x61x512xbf16> to vector<61x512xbf16>
    %cst_156 = arith.constant dense<0.000000e+00> : vector<1x512xf32>
    %256 = tpu.matmul %253, %255, %cst_156 {dimension_numbers = #tpu.dot_dimension_numbers<[1], [0], [0], [1], [0, 0, 1, 1], [], []>} : vector<1x61xbf16>, vector<61x512xbf16>, vector<1x512xf32> -> vector<1x512xf32>
    %257 = arith.addf %251, %256 : vector<1x512xf32>
    %258 = vector.extract_strided_slice %211 {offsets = [8, 0], sizes = [1, 61], strides = [1, 1]} : vector<16x61xf32> to vector<1x61xf32>
    %259 = arith.truncf %258 : vector<1x61xf32> to vector<1x61xbf16>
    %c8_157 = arith.constant 8 : index
    %c0_158 = arith.constant 0 : index
    %c0_159 = arith.constant 0 : index
    %260 = vector.load %arg10[%c8_157, %c0_158, %c0_159] : memref<16x61x512xbf16, #tpu.memory_space<vmem>>, vector<1x61x512xbf16>
    %261 = vector.shape_cast %260 : vector<1x61x512xbf16> to vector<61x512xbf16>
    %cst_160 = arith.constant dense<0.000000e+00> : vector<1x512xf32>
    %262 = tpu.matmul %259, %261, %cst_160 {dimension_numbers = #tpu.dot_dimension_numbers<[1], [0], [0], [1], [0, 0, 1, 1], [], []>} : vector<1x61xbf16>, vector<61x512xbf16>, vector<1x512xf32> -> vector<1x512xf32>
    %263 = vector.extract_strided_slice %211 {offsets = [9, 0], sizes = [1, 61], strides = [1, 1]} : vector<16x61xf32> to vector<1x61xf32>
    %264 = arith.truncf %263 : vector<1x61xf32> to vector<1x61xbf16>
    %c9 = arith.constant 9 : index
    %c0_161 = arith.constant 0 : index
    %c0_162 = arith.constant 0 : index
    %265 = vector.load %arg10[%c9, %c0_161, %c0_162] : memref<16x61x512xbf16, #tpu.memory_space<vmem>>, vector<1x61x512xbf16>
    %266 = vector.shape_cast %265 : vector<1x61x512xbf16> to vector<61x512xbf16>
    %cst_163 = arith.constant dense<0.000000e+00> : vector<1x512xf32>
    %267 = tpu.matmul %264, %266, %cst_163 {dimension_numbers = #tpu.dot_dimension_numbers<[1], [0], [0], [1], [0, 0, 1, 1], [], []>} : vector<1x61xbf16>, vector<61x512xbf16>, vector<1x512xf32> -> vector<1x512xf32>
    %268 = arith.addf %262, %267 : vector<1x512xf32>
    %269 = vector.extract_strided_slice %211 {offsets = [10, 0], sizes = [1, 61], strides = [1, 1]} : vector<16x61xf32> to vector<1x61xf32>
    %270 = arith.truncf %269 : vector<1x61xf32> to vector<1x61xbf16>
    %c10 = arith.constant 10 : index
    %c0_164 = arith.constant 0 : index
    %c0_165 = arith.constant 0 : index
    %271 = vector.load %arg10[%c10, %c0_164, %c0_165] : memref<16x61x512xbf16, #tpu.memory_space<vmem>>, vector<1x61x512xbf16>
    %272 = vector.shape_cast %271 : vector<1x61x512xbf16> to vector<61x512xbf16>
    %cst_166 = arith.constant dense<0.000000e+00> : vector<1x512xf32>
    %273 = tpu.matmul %270, %272, %cst_166 {dimension_numbers = #tpu.dot_dimension_numbers<[1], [0], [0], [1], [0, 0, 1, 1], [], []>} : vector<1x61xbf16>, vector<61x512xbf16>, vector<1x512xf32> -> vector<1x512xf32>
    %274 = arith.addf %268, %273 : vector<1x512xf32>
    %275 = vector.extract_strided_slice %211 {offsets = [11, 0], sizes = [1, 61], strides = [1, 1]} : vector<16x61xf32> to vector<1x61xf32>
    %276 = arith.truncf %275 : vector<1x61xf32> to vector<1x61xbf16>
    %c11 = arith.constant 11 : index
    %c0_167 = arith.constant 0 : index
    %c0_168 = arith.constant 0 : index
    %277 = vector.load %arg10[%c11, %c0_167, %c0_168] : memref<16x61x512xbf16, #tpu.memory_space<vmem>>, vector<1x61x512xbf16>
    %278 = vector.shape_cast %277 : vector<1x61x512xbf16> to vector<61x512xbf16>
    %cst_169 = arith.constant dense<0.000000e+00> : vector<1x512xf32>
    %279 = tpu.matmul %276, %278, %cst_169 {dimension_numbers = #tpu.dot_dimension_numbers<[1], [0], [0], [1], [0, 0, 1, 1], [], []>} : vector<1x61xbf16>, vector<61x512xbf16>, vector<1x512xf32> -> vector<1x512xf32>
    %280 = arith.addf %274, %279 : vector<1x512xf32>
    %281 = vector.extract_strided_slice %211 {offsets = [12, 0], sizes = [1, 61], strides = [1, 1]} : vector<16x61xf32> to vector<1x61xf32>
    %282 = arith.truncf %281 : vector<1x61xf32> to vector<1x61xbf16>
    %c12 = arith.constant 12 : index
    %c0_170 = arith.constant 0 : index
    %c0_171 = arith.constant 0 : index
    %283 = vector.load %arg10[%c12, %c0_170, %c0_171] : memref<16x61x512xbf16, #tpu.memory_space<vmem>>, vector<1x61x512xbf16>
    %284 = vector.shape_cast %283 : vector<1x61x512xbf16> to vector<61x512xbf16>
    %cst_172 = arith.constant dense<0.000000e+00> : vector<1x512xf32>
    %285 = tpu.matmul %282, %284, %cst_172 {dimension_numbers = #tpu.dot_dimension_numbers<[1], [0], [0], [1], [0, 0, 1, 1], [], []>} : vector<1x61xbf16>, vector<61x512xbf16>, vector<1x512xf32> -> vector<1x512xf32>
    %286 = vector.extract_strided_slice %211 {offsets = [13, 0], sizes = [1, 61], strides = [1, 1]} : vector<16x61xf32> to vector<1x61xf32>
    %287 = arith.truncf %286 : vector<1x61xf32> to vector<1x61xbf16>
    %c13 = arith.constant 13 : index
    %c0_173 = arith.constant 0 : index
    %c0_174 = arith.constant 0 : index
    %288 = vector.load %arg10[%c13, %c0_173, %c0_174] : memref<16x61x512xbf16, #tpu.memory_space<vmem>>, vector<1x61x512xbf16>
    %289 = vector.shape_cast %288 : vector<1x61x512xbf16> to vector<61x512xbf16>
    %cst_175 = arith.constant dense<0.000000e+00> : vector<1x512xf32>
    %290 = tpu.matmul %287, %289, %cst_175 {dimension_numbers = #tpu.dot_dimension_numbers<[1], [0], [0], [1], [0, 0, 1, 1], [], []>} : vector<1x61xbf16>, vector<61x512xbf16>, vector<1x512xf32> -> vector<1x512xf32>
    %291 = arith.addf %285, %290 : vector<1x512xf32>
    %292 = vector.extract_strided_slice %211 {offsets = [14, 0], sizes = [1, 61], strides = [1, 1]} : vector<16x61xf32> to vector<1x61xf32>
    %293 = arith.truncf %292 : vector<1x61xf32> to vector<1x61xbf16>
    %c14 = arith.constant 14 : index
    %c0_176 = arith.constant 0 : index
    %c0_177 = arith.constant 0 : index
    %294 = vector.load %arg10[%c14, %c0_176, %c0_177] : memref<16x61x512xbf16, #tpu.memory_space<vmem>>, vector<1x61x512xbf16>
    %295 = vector.shape_cast %294 : vector<1x61x512xbf16> to vector<61x512xbf16>
    %cst_178 = arith.constant dense<0.000000e+00> : vector<1x512xf32>
    %296 = tpu.matmul %293, %295, %cst_178 {dimension_numbers = #tpu.dot_dimension_numbers<[1], [0], [0], [1], [0, 0, 1, 1], [], []>} : vector<1x61xbf16>, vector<61x512xbf16>, vector<1x512xf32> -> vector<1x512xf32>
    %297 = arith.addf %291, %296 : vector<1x512xf32>
    %298 = vector.extract_strided_slice %211 {offsets = [15, 0], sizes = [1, 61], strides = [1, 1]} : vector<16x61xf32> to vector<1x61xf32>
    %299 = arith.truncf %298 : vector<1x61xf32> to vector<1x61xbf16>
    %c15 = arith.constant 15 : index
    %c0_179 = arith.constant 0 : index
    %c0_180 = arith.constant 0 : index
    %300 = vector.load %arg10[%c15, %c0_179, %c0_180] : memref<16x61x512xbf16, #tpu.memory_space<vmem>>, vector<1x61x512xbf16>
    %301 = vector.shape_cast %300 : vector<1x61x512xbf16> to vector<61x512xbf16>
    %cst_181 = arith.constant dense<0.000000e+00> : vector<1x512xf32>
    %302 = tpu.matmul %299, %301, %cst_181 {dimension_numbers = #tpu.dot_dimension_numbers<[1], [0], [0], [1], [0, 0, 1, 1], [], []>} : vector<1x61xbf16>, vector<61x512xbf16>, vector<1x512xf32> -> vector<1x512xf32>
    %303 = arith.addf %297, %302 : vector<1x512xf32>
    %304 = arith.addf %234, %257 : vector<1x512xf32>
    %305 = arith.addf %280, %303 : vector<1x512xf32>
    %306 = arith.addf %304, %305 : vector<1x512xf32>
    %c0_182 = arith.constant 0 : index
    %c0_183 = arith.constant 0 : index
    %307 = vector.load %arg11[%c0_182, %c0_183] : memref<1x512xf32, #tpu.memory_space<vmem>>, vector<1x512xf32>
    %308 = arith.addf %306, %307 : vector<1x512xf32>
    %cst_184 = arith.constant 0.000000e+00 : f32
    %309 = vector.broadcast %cst_184 : f32 to vector<1x512xf32>
    %310 = arith.maximumf %308, %309 : vector<1x512xf32>
    %c0_185 = arith.constant 0 : index
    %c0_186 = arith.constant 0 : index
    %311 = vector.load %arg12[%c0_185, %c0_186] : memref<512x128xf32, #tpu.memory_space<vmem>>, vector<512x128xf32>
    %cst_187 = arith.constant dense<0.000000e+00> : vector<1x128xf32>
    %312 = tpu.matmul %310, %311, %cst_187 {dimension_numbers = #tpu.dot_dimension_numbers<[1], [0], [0], [1], [0, 0, 1, 1], [], []>} : vector<1x512xf32>, vector<512x128xf32>, vector<1x128xf32> -> vector<1x128xf32>
    %c0_188 = arith.constant 0 : index
    %c0_189 = arith.constant 0 : index
    %313 = vector.load %arg13[%c0_188, %c0_189] : memref<1x128xf32, #tpu.memory_space<vmem>>, vector<1x128xf32>
    %314 = arith.addf %312, %313 : vector<1x128xf32>
    %cst_190 = arith.constant 0.000000e+00 : f32
    %315 = vector.broadcast %cst_190 : f32 to vector<1x128xf32>
    %316 = arith.maximumf %314, %315 : vector<1x128xf32>
    %c0_191 = arith.constant 0 : index
    %c0_192 = arith.constant 0 : index
    %317 = vector.load %arg14[%c0_191, %c0_192] : memref<128x128xf32, #tpu.memory_space<vmem>>, vector<128x128xf32>
    %cst_193 = arith.constant dense<0.000000e+00> : vector<1x128xf32>
    %318 = tpu.matmul %316, %317, %cst_193 {dimension_numbers = #tpu.dot_dimension_numbers<[1], [0], [0], [1], [0, 0, 1, 1], [], []>} : vector<1x128xf32>, vector<128x128xf32>, vector<1x128xf32> -> vector<1x128xf32>
    %c0_194 = arith.constant 0 : index
    %c0_195 = arith.constant 0 : index
    %319 = vector.load %arg15[%c0_194, %c0_195] : memref<1x128xf32, #tpu.memory_space<vmem>>, vector<1x128xf32>
    %320 = arith.addf %318, %319 : vector<1x128xf32>
    %c0_196 = arith.constant 0 : index
    %c0_197 = arith.constant 0 : index
    %c0_198 = arith.constant 0 : index
    %321 = vector.load %arg16[%c0_196, %c0_197, %c0_198] : memref<1x1x128xf32, #tpu.memory_space<vmem>>, vector<1x1x128xf32>
    %322 = vector.shape_cast %321 : vector<1x1x128xf32> to vector<1x128xf32>
    %323 = vector.shape_cast %320 : vector<1x128xf32> to vector<1x1x128xf32>
    tpu.vector_store %arg16[%c0_196, %c0_197, %c0_198], %323 {strides = array<i32>} : memref<1x1x128xf32, #tpu.memory_space<vmem>>, vector<1x1x128xf32>,
    return
  }
  func.func @transform_0(%arg0: i32) -> (i32, i32, i32) {
    %c0_i32 = arith.constant 0 : i32
    %c0_i32_0 = arith.constant 0 : i32
    %c0_i32_1 = arith.constant 0 : i32
    return %arg0, %c0_i32, %c0_i32_0 : i32, i32, i32
  }
  func.func @transform_1(%arg0: i32) -> (i32, i32, i32) {
    %c0_i32 = arith.constant 0 : i32
    %c0_i32_0 = arith.constant 0 : i32
    %c0_i32_1 = arith.constant 0 : i32
    %c0_i32_2 = arith.constant 0 : i32
    return %c0_i32, %c0_i32_0, %c0_i32_1 : i32, i32, i32
  }
  func.func @transform_2(%arg0: i32) -> (i32, i32) {
    %c0_i32 = arith.constant 0 : i32
    %c0_i32_0 = arith.constant 0 : i32
    %c0_i32_1 = arith.constant 0 : i32
    return %c0_i32, %c0_i32_0 : i32, i32
  }
  func.func @transform_3(%arg0: i32) -> (i32, i32, i32) {
    %c0_i32 = arith.constant 0 : i32
    %c0_i32_0 = arith.constant 0 : i32
    %c0_i32_1 = arith.constant 0 : i32
    %c0_i32_2 = arith.constant 0 : i32
    return %c0_i32, %c0_i32_0, %c0_i32_1 : i32, i32, i32
  }
  func.func @transform_4(%arg0: i32) -> (i32, i32) {
    %c0_i32 = arith.constant 0 : i32
    %c0_i32_0 = arith.constant 0 : i32
    %c0_i32_1 = arith.constant 0 : i32
    return %c0_i32, %c0_i32_0 : i32, i32
  }
  func.func @transform_5(%arg0: i32) -> (i32, i32, i32) {
    %c0_i32 = arith.constant 0 : i32
    %c0_i32_0 = arith.constant 0 : i32
    %c0_i32_1 = arith.constant 0 : i32
    %c0_i32_2 = arith.constant 0 : i32
    return %c0_i32, %c0_i32_0, %c0_i32_1 : i32, i32, i32
  }
  func.func @transform_6(%arg0: i32) -> (i32, i32) {
    %c0_i32 = arith.constant 0 : i32
    %c0_i32_0 = arith.constant 0 : i32
    %c0_i32_1 = arith.constant 0 : i32
    return %c0_i32, %c0_i32_0 : i32, i32
  }
  func.func @transform_7(%arg0: i32) -> (i32, i32) {
    %c0_i32 = arith.constant 0 : i32
    %c0_i32_0 = arith.constant 0 : i32
    %c0_i32_1 = arith.constant 0 : i32
    return %c0_i32, %c0_i32_0 : i32, i32
  }
  func.func @transform_8(%arg0: i32) -> (i32, i32) {
    %c0_i32 = arith.constant 0 : i32
    %c0_i32_0 = arith.constant 0 : i32
    %c0_i32_1 = arith.constant 0 : i32
    return %c0_i32, %c0_i32_0 : i32, i32
  }
  func.func @transform_9(%arg0: i32) -> (i32, i32, i32) {
    %c0_i32 = arith.constant 0 : i32
    %c0_i32_0 = arith.constant 0 : i32
    %c0_i32_1 = arith.constant 0 : i32
    %c0_i32_2 = arith.constant 0 : i32
    return %c0_i32, %c0_i32_0, %c0_i32_1 : i32, i32, i32
  }
  func.func @transform_10(%arg0: i32) -> (i32, i32) {
    %c0_i32 = arith.constant 0 : i32
    %c0_i32_0 = arith.constant 0 : i32
    %c0_i32_1 = arith.constant 0 : i32
    return %c0_i32, %c0_i32_0 : i32, i32
  }
  func.func @transform_11(%arg0: i32) -> (i32, i32) {
    %c0_i32 = arith.constant 0 : i32
    %c0_i32_0 = arith.constant 0 : i32
    %c0_i32_1 = arith.constant 0 : i32
    return %c0_i32, %c0_i32_0 : i32, i32
  }
  func.func @transform_12(%arg0: i32) -> (i32, i32) {
    %c0_i32 = arith.constant 0 : i32
    %c0_i32_0 = arith.constant 0 : i32
    %c0_i32_1 = arith.constant 0 : i32
    return %c0_i32, %c0_i32_0 : i32, i32
  }
  func.func @transform_13(%arg0: i32) -> (i32, i32) {
    %c0_i32 = arith.constant 0 : i32
    %c0_i32_0 = arith.constant 0 : i32
    %c0_i32_1 = arith.constant 0 : i32
    return %c0_i32, %c0_i32_0 : i32, i32
  }
  func.func @transform_14(%arg0: i32) -> (i32, i32) {
    %c0_i32 = arith.constant 0 : i32
    %c0_i32_0 = arith.constant 0 : i32
    %c0_i32_1 = arith.constant 0 : i32
    return %c0_i32, %c0_i32_0 : i32, i32
  }
  func.func @transform_15(%arg0: i32) -> (i32, i32, i32) {
    %c0_i32 = arith.constant 0 : i32
    %c0_i32_0 = arith.constant 0 : i32
    %c0_i32_1 = arith.constant 0 : i32
    return %arg0, %c0_i32, %c0_i32_0 : i32, i32, i32
  }
}

</mosaic_0001>

<bundles_post_ra>
// kernel: net_forward.1
= control target key start
LH: loop header
LB: loop body
LE: loop exit
PB: predicated region body
PF: predicated region fallthrough
CT: control target
= control target key end

     0   :  { %20 = vsyncpa [#allocation3], 0  ;;  %s11058_s0 = inlined_call_operand.vmem [shape: f32[2,1,900], index: 0, kind: input, shape index: {}]   ;;  %s11059_s1 = inlined_call_operand.vmem [shape: f32[9,8,1], index: 1, kind: input, shape index: {}]   ;;  %s11060_s2 = inlined_call_operand.vmem [shape: f32[8,1], index: 2, kind: input, shape index: {}]   ;;  %s11061_s3 = inlined_call_operand.vmem [shape: bf16[9,16,8], index: 3, kind: input, shape index: {}]   ;;  %s11062_s4 = inlined_call_operand.vmem [shape: f32[16,1], index: 4, kind: input, shape index: {}]   ;;  %s11063_s5 = inlined_call_operand.vmem [shape: bf16[9,16,16], index: 5, kind: input, shape index: {}]   ;;  %s11064_s6 = inlined_call_operand.vmem [shape: f32[16,1], index: 6, kind: input, shape index: {}]   ;;  %s11065_s7 = inlined_call_operand.vmem [shape: bf16[807,256], index: 7, kind: input, shape index: {}]   ;;  %s11066_s8 = inlined_call_operand.vmem [shape: bf16[205,81], index: 8, kind: input, shape index: {}]   ;;  %s11067_s9 = inlined_call_operand.vmem [shape: bf16[16,61,512], index: 9, kind: input, shape index: {}]   ;;  %s11068_s10 = inlined_call_operand.vmem [shape: f32[1,512], index: 10, kind: input, shape index: {}]   ;;  %s11069_s11 = inlined_call_operand.vmem [shape: f32[512,128], index: 11, kind: input, shape index: {}]   ;;  %s11070_s12 = inlined_call_operand.vmem [shape: f32[1,128], index: 12, kind: input, shape index: {}]   ;;  %s11071_s13 = inlined_call_operand.vmem [shape: f32[128,128], index: 13, kind: input, shape index: {}]   ;;  %s11072_s14 = inlined_call_operand.vmem [shape: f32[1,128], index: 14, kind: input, shape index: {}]   ;;  %s11073_s15 = inlined_call_operand.hbm [shape: f32[2,1,128], index: 15, kind: output, shape index: {}]  }
   0x1   :  { %22 = vsyncpa [#allocation3 + $0x1], 0  ;;  %s8695_s18 = smov 0   ;;  %s8697_s19 = smov 0  }
   0x2   :  { %s8699_s20 = smov 0   ;;  %s8701_s21 = smov 0  }
   0x3 LB: > { %11083 = sst [smem:[#allocation5_spill]] %s8580_s18  ;;  %s8716_s22 = sadd.s32 4294967295, %s8592_s21   ;;  %s8592_s21 = sphi %s8701_s21, %s11094_s21   ;;  %s8588_s20 = sphi %s8699_s20, %s11096_s20   ;;  %s8584_s19 = sphi %s8697_s19, %s11098_s19   ;;  %s8580_s18 = sphi %s8695_s18, %s11097_s18  }
   0x4   : > { %11084 = sst [smem:[#allocation6_spill]] %s8588_s20  ;;  %s6788_s23 = sadd.s32 4294967294, %s8592_s21  }
   0x5   : > { %s8720_s24 = sadd.s32 1, %s8592_s21   ;;  %s355_s25 = sadd.s32 1, %s8588_s20 }
   0x6   : > { %11085 = sst [smem:[#allocation7_spill]] %s8720_s24  ;;  %s352_s26 = ssub.s32 %s8592_s21, %s8720_s24 }
   0x7   : > { %p365_p0 = scmp.ne.s32.totalorder %s8588_s20, %s8584_s19  ;;  %p353_p1 = scmp.eq.s32.totalorder %s352_s26, 0 }
   0x8   : > { %p366_p2 = scmp.eq.s32.totalorder %s8716_s22, 1  ;;  %p371_p3 = scmp.ne.s32.totalorder %s8584_s19, %s8580_s18 }
   0x9   : > { %p372_p4 = scmp.eq.s32.totalorder %s6788_s23, 1  ;;  %p6791_p7 = scmp.ge.s32.totalorder %s8592_s21, 1 }
   0xa   : > { %s8731_s27 = scalar_select %p353_p1, %s8588_s20, %s355_s25  }
   0xb   : > { %p8733_p5 = por %p366_p2, %p365_p0  ;;  %p8737_p6 = por %p372_p4, %p371_p3 }
   0xc   : > { %11086 = sst [smem:[#allocation8_spill]] %s8731_s27  ;;  %p439_p8 = scmp.lt.s32.totalorder %s8592_s21, 3 }
   0xd   : > { %s11088_s29 = scalar_select %p8737_p6, 1, 0 }
   0xe   : > { %p440_p9 = pnand %p6791_p7, %p439_p8 }
   0xf   : > { %11089 = sst [smem:[#allocation9_spill]] %s11088_s29  ;;  %v6796_v0 = vld [vmem:[%s11059_s1 + $0x20] sm:$0xff] (!%p440_p9)  ;;  %p485_p10 = scmp.lt.s32.totalorder (!%p440_p9), %s8716_s22, 1  ;;  %v498_v1 = vlaneseq (!%p440_p9)  ;;  %v8594_v2 = vmov (!%p440_p9), 0   ;;  %v6799_v3 = vld [vmem:[%s11059_s1 + $0x38] sm:$0xff] (!%p440_p9)  ;;  %v6797_v4 = vld [vmem:[%s11059_s1 + $0x28] sm:$0xff] (!%p440_p9) }
  0x10   : > { %443 = sbr.rel (%p440_p9) target bundleno = 3289 (0xcd9), region = 80  ;;  %7911 = vset.pattern.permute.xlu0 (!%p440_p9), %v8594_v2  ;;  %7912 = vset.pattern.permute.xlu1 (!%p440_p9), %v8594_v2  ;;  %v6800_v5 = vld [vmem:[%s11059_s1 + $0x40] sm:$0xff] (!%p440_p9)  ;;  %v6793_v7 = vld [vmem:[%s11059_s1 + $0x8] sm:$0xff] (!%p440_p9)  ;;  %v6795_v8 = vld [vmem:[%s11059_s1 + $0x18] sm:$0xff] (!%p440_p9)  ;;  %s11079_s16 = smov (!%p440_p9), 126   ;;  %vm575_vm0 = vcmask (!%p440_p9), 1039360  }
  0x11   : > { %670 = vperm.xlu0 (!%p440_p9), %7911, %v6796_v0   ;;  %837 = vperm.xlu1 (!%p440_p9), %7912, %v6799_v3   ;;  %v8759_v6 = vshrl.u32 (!%p440_p9), %v498_v1, 7  ;;  %v6794_v12 = vld [vmem:[%s11059_s1 + $0x10] sm:$0xff] (!%p440_p9)  ;;  %v490_v62 = vld [vmem:[%s11059_s1] sm:$0xff] (!%p440_p9)  ;;  %vm631_vm1 = vcmask (!%p440_p9), 1031168   ;;  %s11081_s26 = smov (!%p440_p9), 98   ;;  %s8598_s24 = smov (!%p440_p9), 68  }
  0x12   : > { %2057 = vmatprep.mubr.bf16.mxu1 (!%p440_p9), %v8594_v2  ;;  %v6798_v13 = vld [vmem:[%s11059_s1 + $0x30] sm:$0xff] (!%p440_p9)  ;;  %v1045_v0 = vld [vmem:[%s11060_s2] sm:$0xff] (!%p440_p9)  ;;  %vm978_vm2 = vcmask (!%p440_p9), 801792   ;;  %vm1023_vm3 = vcmask (!%p440_p9), 556032   ;;  %vm1764_vm4 = vcmask (!%p440_p9), 1042432   ;;  %vm1765_vm5 = vcmask (!%p440_p9), 1043456  }
  0x13   : > { %v524_v9 = vsub.s32 (!%p440_p9), 6, %v8759_v6  ;;  %v8786_v14 = vsub.s32 (!%p440_p9), 2, %v8759_v6  ;;  %v8789_v15 = vsub.s32 (!%p440_p9), 1, %v8759_v6  ;;  %v516_v18 = vsub.s32 (!%p440_p9), 4, %v8759_v6  ;;  %s11091_s23 = smov (!%p440_p9), 126   ;;  %s8600_s29 = smov (!%p440_p9), 111  }
  0x14   : > { %v8799_v19 = vsub.s32 (!%p440_p9), 3, %v8759_v6  ;;  %v520_v21 = vsub.s32 (!%p440_p9), 5, %v8759_v6  ;;  %v8805_v22 = vsub.s32 (!%p440_p9), 0, %v8759_v6  ;;  %vm1760_vm6 = vcmask (!%p440_p9), 318464   ;;  %s8604_s30 = smov (!%p440_p9), 96   ;;  %s8612_s17 = smov (!%p440_p9), 108  }
  0x15   : > { %725 = vperm.xlu0 (!%p440_p9), %7911, %v6797_v4   ;;  %899 = vperm.xlu1 (!%p440_p9), %7912, %v6800_v5   ;;  %vm1958_vm7 = vcmask (!%p440_p9), 64512   ;;  %vm2153_vm8 = vcmask (!%p440_p9), 908288   ;;  %vm2216_vm9 = vcmask (!%p440_p9), 916480   ;;  %vm2282_vm10 = vcmask (!%p440_p9), 900096  }
  0x16   : > { %vm2355_vm11 = vcmask (!%p440_p9), 777216   ;;  %vm2418_vm12 = vcmask (!%p440_p9), 785408   ;;  %vm2484_vm13 = vcmask (!%p440_p9), 769024   ;;  %vm2724_vm14 = vcmask (!%p440_p9), 1045504  }
  0x17   : > { %s486_s27 = scalar_select %p485_p10, %s8716_s22, 1  ;;  %vm2725_vm15 = vcmask 1046528  }
  0x19   : > { %s6792_s20 = sshll.u32 %s486_s27, 3  ;;  %544 = vperm.xlu0 %7911, %v6793_v7   ;;  %656 = vperm.xlu1 %7912, %v6795_v8   ;;  %s11090_s27 = smov 98  }
  0x1a   : > { %s8771_s18 = scalar_lea.vmem %s11058_s0, %s6792_s20  ;;  %s8595_s20 = smov 127  }
  0x1b   : > { %v491_v10 = vld [vmem:[%s8771_s18] sm:$0x7f] }
  0x1c   : > { %v8777_v11 = vrot.slane %v491_v10, %v524_v9  ;;  %v8792_v16 = vrot.slane %v491_v10, %v8786_v14  ;;  %v8795_v17 = vrot.slane %v491_v10, %v8789_v15  ;;  %v8811_v25 = vrot.slane %v491_v10, %v516_v18  ;;  %v8836_v34 = vld [vmem:[%s8771_s18] sm:$0xff]  ;;  %s8605_s18 = smov 94  }
  0x1d   : > { %600 = vperm.xlu0 %7911, %v6794_v12   ;;  %781 = vperm.xlu1 %7912, %v6798_v13   ;;  %v8814_v26 = vrot.slane %v491_v10, %v8799_v19  ;;  %v8822_v29 = vrot.slane %v491_v10, %v520_v21  ;;  %v8825_v30 = vrot.slane %v491_v10, %v8805_v22 }
  0x1e   : > { %v8848_v37 = vrot.slane %v8836_v34, %v8789_v15  ;;  %v8862_v42 = vrot.slane %v8836_v34, %v8786_v14  ;;  %v8866_v43 = vrot.slane %v8836_v34, %v8799_v19  ;;  %v8877_v47 = vrot.slane %v8836_v34, %v516_v18 }
  0x1f   : > { %v8880_v48 = vrot.slane %v8836_v34, %v520_v21  ;;  %v8890_v51 = vrot.slane %v8836_v34, %v8805_v22  ;;  %v8961_v21 = vrot.slane %v8836_v34, %v524_v9 }
  0x90   : > { %v8801_v20 = vpop.permute.xlu0 %670  ;;  %v8854_v40 = vpop.permute.xlu1 %837 }
  0x91   : > { %v675_v23 = vmul.f32 %v8801_v20, %v8792_v16  ;;  %v674_v24 = vmul.f32 %v8801_v20, %v8795_v17  ;;  %v677_v27 = vmul.f32 %v8801_v20, %v8811_v25  ;;  %v676_v28 = vmul.f32 %v8801_v20, %v8814_v26 }
  0x92   : > { %v678_v31 = vmul.f32 %v8801_v20, %v8822_v29  ;;  %v673_v32 = vmul.f32 %v8801_v20, %v8825_v30  ;;  %v841_v41 = vmul.f32 %v8854_v40, %v8848_v37  ;;  %v842_v45 = vmul.f32 %v8854_v40, %v8862_v42 }
  0x93   : > { %691 = vrot.lane.b32.xlu1 %v675_v23, %s8595_s20  ;;  %689 = vrot.lane.b32.xlu0 %v674_v24, %s8595_s20  ;;  %v843_v46 = vmul.f32 %v8854_v40, %v8866_v43  ;;  %v844_v49 = vmul.f32 %v8854_v40, %v8877_v47  ;;  %v845_v50 = vmul.f32 %v8854_v40, %v8880_v48 }
  0x94   : > { %v8833_v33 = vpop.permute.xlu0 %725  ;;  %v840_v53 = vmul.f32 %v8854_v40, %v8890_v51  ;;  %v8900_v54 = vpop.permute.xlu1 %899  ;;  %v679_v23 = vmul.f32 %v8801_v20, %v8777_v11  ;;  %v846_v24 = vmul.f32 %v8854_v40, %v8961_v21 }
  0x95   : > { %v729_v35 = vmul.f32 %v8833_v33, %v8795_v17  ;;  %v730_v36 = vmul.f32 %v8833_v33, %v8792_v16  ;;  %v731_v38 = vmul.f32 %v8833_v33, %v8814_v26  ;;  %v732_v39 = vmul.f32 %v8833_v33, %v8811_v25 }
  0x96   : > { %v733_v44 = vmul.f32 %v8833_v33, %v8822_v29  ;;  %v728_v52 = vmul.f32 %v8833_v33, %v8825_v30  ;;  %v903_v55 = vmul.f32 %v8900_v54, %v8848_v37  ;;  %v904_v56 = vmul.f32 %v8900_v54, %v8862_v42 }
  0x97   : > { %695 = vrot.lane.b32.xlu1 %v677_v27, %s8595_s20  ;;  %693 = vrot.lane.b32.xlu0 %v676_v28, %s8595_s20  ;;  %v905_v57 = vmul.f32 %v8900_v54, %v8866_v43  ;;  %v906_v58 = vmul.f32 %v8900_v54, %v8877_v47  ;;  %v907_v59 = vmul.f32 %v8900_v54, %v8880_v48  ;;  %v815_v27 = vsub.s32 7, %v8759_v6 }
  0x98   : > { %v902_v60 = vmul.f32 %v8900_v54, %v8890_v51  ;;  %v8918_v61 = vpop.permute.xlu0 %544  ;;  %v734_v9 = vmul.f32 %v8833_v33, %v8777_v11 }
  0x99   : > { %v548_v63 = vmul.f32 %v8918_v61, %v8795_v17  ;;  %v550_v1 = vmul.f32 %v8918_v61, %v8814_v26  ;;  %v549_v3 = vmul.f32 %v8918_v61, %v8792_v16  ;;  %v547_v4 = vmul.f32 %v8918_v61, %v8825_v30 }
  0x9a   : > { %v551_v7 = vmul.f32 %v8918_v61, %v8811_v25  ;;  %v8975_v28 = vrot.slane %v8836_v34, %v815_v27 }
  0x9b   : > { %697 = vrot.lane.b32.xlu0 %v678_v31, %s8595_s20  ;;  %687 = vrot.lane.b32.xlu1 %v673_v32, %s8595_s20  ;;  %v8981_v31 = vpop.permute.xlu1 %656 }
  0x9c   : > { %v8938_v5 = vpop.permute.xlu0 %600  ;;  %v847_v20 = vmul.f32 %v8854_v40, %v8975_v28 }
  0x9d   : > { %v605_v8 = vmul.f32 %v8938_v5, %v8792_v16  ;;  %v604_v10 = vmul.f32 %v8938_v5, %v8795_v17  ;;  %v607_v12 = vmul.f32 %v8938_v5, %v8811_v25  ;;  %v606_v13 = vmul.f32 %v8938_v5, %v8814_v26 }
  0x9e   : > { %v603_v18 = vmul.f32 %v8938_v5, %v8825_v30 }
  0x9f   : > { %744 = vrot.lane.b32.xlu0 %v729_v35, %s11079_s16  ;;  %746 = vrot.lane.b32.xlu1 %v730_v36, %s11079_s16  ;;  %v8983_v6 = vpop.permute.xlu1 %781 }
  0xa3   : > { %748 = vrot.lane.b32.xlu0 %v731_v38, %s11079_s16  ;;  %750 = vrot.lane.b32.xlu1 %v732_v39, %s11079_s16 }
  0xa7   : > { %752 = vrot.lane.b32.xlu0 %v733_v44, %s11079_s16  ;;  %858 = vrot.lane.b32.xlu1 %v841_v41, %s8595_s20  ;;  %v660_v41 = vmul.f32 %v8981_v31, %v8795_v17 }
  0xab   : > { %860 = vrot.lane.b32.xlu0 %v842_v45, %s8595_s20  ;;  %862 = vrot.lane.b32.xlu1 %v843_v46, %s8595_s20 }
  0xaf   : > { %864 = vrot.lane.b32.xlu0 %v844_v49, %s8595_s20  ;;  %866 = vrot.lane.b32.xlu1 %v845_v50, %s8595_s20 }
  0xb3   : > { %742 = vrot.lane.b32.xlu0 %v728_v52, %s11079_s16  ;;  %856 = vrot.lane.b32.xlu1 %v840_v53, %s8595_s20  ;;  %v661_v52 = vmul.f32 %v8981_v31, %v8792_v16  ;;  %v662_v53 = vmul.f32 %v8981_v31, %v8814_v26 }
  0xb7   : > { %920 = vrot.lane.b32.xlu0 %v903_v55, %s11079_s16  ;;  %922 = vrot.lane.b32.xlu1 %v904_v56, %s11079_s16 }
  0xbb   : > { %924 = vrot.lane.b32.xlu0 %v905_v57, %s11079_s16  ;;  %926 = vrot.lane.b32.xlu1 %v906_v58, %s11079_s16 }
  0xbf   : > { %928 = vrot.lane.b32.xlu0 %v907_v59, %s11079_s16  ;;  %918 = vrot.lane.b32.xlu1 %v902_v60, %s11079_s16 }
  0xc3   : > { %494 = vperm.xlu0 %7911, %v490_v62   ;;  %563 = vrot.lane.b32.xlu1 %v548_v63, %s8595_s20 }
  0xc7   : > { %1048 = vperm.xlu0 %7911, %v1045_v0   ;;  %567 = vrot.lane.b32.xlu1 %v550_v1, %s8595_s20  ;;  %v663_v0 = vmul.f32 %v8981_v31, %v8811_v25 }
  0xcb   : > { %565 = vrot.lane.b32.xlu0 %v549_v3, %s8595_s20  ;;  %561 = vrot.lane.b32.xlu1 %v547_v4, %s8595_s20 }
  0xcf   : > { %569 = vrot.lane.b32.xlu0 %v551_v7, %s8595_s20  ;;  %621 = vrot.lane.b32.xlu1 %v605_v8, %s11079_s16 }
  0xd3   : > { %619 = vrot.lane.b32.xlu0 %v604_v10, %s11079_s16  ;;  %625 = vrot.lane.b32.xlu1 %v607_v12, %s11079_s16 }
  0xd7   : > { %623 = vrot.lane.b32.xlu0 %v606_v13, %s11079_s16  ;;  %617 = vrot.lane.b32.xlu1 %v603_v18, %s11079_s16 }
  0xdb   : > { %699 = vrot.lane.b32.xlu0 %v679_v23, %s8595_s20  ;;  %868 = vrot.lane.b32.xlu1 %v846_v24, %s8595_s20 }
  0xdf   : > { %754 = vrot.lane.b32.xlu0 %v734_v9, %s11079_s16  ;;  %v659_v9 = vmul.f32 %v8981_v31, %v8825_v30 }
  0xe3   : > { %870 = vrot.lane.b32.xlu0 %v847_v20, %s8595_s20 }
 0x105   : > { %v692_v32 = vpop.permute.xlu1 %691  ;;  %v690_v35 = vpop.permute.xlu0 %689 }
 0x106   : > { %v702_v39 = vsel %vm575_vm0, %v690_v35, %v692_v32 }
 0x107   : > { %v715_v40 = vadd.f32 %v702_v39, %v660_v41  ;;  %v826_v41 = vmul.f32 %v8848_v37, %v8983_v6 }
 0x109   : > { %v696_v36 = vpop.permute.xlu1 %695  ;;  %v694_v38 = vpop.permute.xlu0 %693 }
 0x10a   : > { %v703_v46 = vsel %vm575_vm0, %v692_v32, %v694_v38  ;;  %v704_v49 = vsel %vm575_vm0, %v694_v38, %v696_v36 }
 0x10b   : > { %v716_v56 = vadd.f32 %v703_v46, %v661_v52  ;;  %v717_v57 = vadd.f32 %v704_v49, %v662_v53  ;;  %v827_v52 = vmul.f32 %v8862_v42, %v8983_v6  ;;  %v829_v42 = vmul.f32 %v8877_v47, %v8983_v6 }
 0x10c   : > { %v908_v47 = vmul.f32 %v8900_v54, %v8961_v21 }
 0x10d   : > { %v8985_v33 = vpop.permute.xlu0 %697  ;;  %v688_v34 = vpop.permute.xlu1 %687 }
 0x10e   : > { %v705_v60 = vsel %vm575_vm0, %v696_v36, %v8985_v33  ;;  %v701_v27 = vsel %vm575_vm0, %v688_v34, %v690_v35 }
 0x10f   : > { %v718_v4 = vadd.f32 %v705_v60, %v663_v0  ;;  %v714_v20 = vadd.f32 %v701_v27, %v659_v9 }
 0x111   : > { %v745_v44 = vpop.permute.xlu0 %744  ;;  %v747_v45 = vpop.permute.xlu1 %746 }
 0x112   : > { %v757_v50 = vsel %vm631_vm1, %v745_v44, %v747_v45 }
 0x113   : > { %v770_v55 = vadd.f32 %v757_v50, %v715_v40 }
 0x115   : > { %v749_v58 = vpop.permute.xlu0 %748  ;;  %966 = vrot.lane.b32.xlu0 %v770_v55, %s11081_s26  ;;  %v751_v59 = vpop.permute.xlu1 %750 }
 0x116   : > { %v758_v62 = vsel %vm631_vm1, %v747_v45, %v749_v58  ;;  %v759_v63 = vsel %vm631_vm1, %v749_v58, %v751_v59 }
 0x117   : > { %v771_v1 = vadd.f32 %v758_v62, %v716_v56  ;;  %v772_v3 = vadd.f32 %v759_v63, %v717_v57 }
 0x119   : > { %v9004_v7 = vpop.permute.xlu0 %752  ;;  %970 = vrot.lane.b32.xlu0 %v772_v3, %s11081_s26  ;;  %v859_v8 = vpop.permute.xlu1 %858  ;;  %968 = vrot.lane.b32.xlu1 %v771_v1, %s11081_s26 }
 0x11a   : > { %v760_v10 = vsel %vm631_vm1, %v751_v59, %v9004_v7 }
 0x11b   : > { %v773_v12 = vadd.f32 %v760_v10, %v718_v4  ;;  %v825_v10 = vmul.f32 %v8890_v51, %v8983_v6  ;;  %v608_v51 = vmul.f32 %v8938_v5, %v8822_v29 }
 0x11d   : > { %v861_v13 = vpop.permute.xlu0 %860  ;;  %v863_v18 = vpop.permute.xlu1 %862  ;;  %972 = vrot.lane.b32.xlu1 %v773_v12, %s11081_s26 }
 0x11e   : > { %v873_v38 = vsel %vm575_vm0, %v859_v8, %v861_v13  ;;  %v874_v35 = vsel %vm575_vm0, %v861_v13, %v863_v18 }
 0x11f   : > { %v888_v45 = vadd.f32 %v873_v38, %v826_v41  ;;  %v889_v37 = vadd.f32 %v874_v35, %v827_v52  ;;  %v609_v41 = vmul.f32 %v8938_v5, %v8777_v11  ;;  %v830_v52 = vmul.f32 %v8880_v48, %v8983_v6 }
 0x121   : > { %v865_v23 = vpop.permute.xlu0 %864  ;;  %v9011_v24 = vpop.permute.xlu1 %866 }
 0x122   : > { %v875_v34 = vsel %vm575_vm0, %v863_v18, %v865_v23  ;;  %v876_v58 = vsel %vm575_vm0, %v865_v23, %v9011_v24 }
 0x123   : > { %v891_v63 = vadd.f32 %v876_v58, %v829_v42 }
 0x125   : > { %v743_v32 = vpop.permute.xlu0 %742  ;;  %v857_v36 = vpop.permute.xlu1 %856 }
 0x126   : > { %v756_v39 = vsel %vm631_vm1, %v743_v32, %v745_v44  ;;  %v828_v44 = vmul.f32 %v8866_v43, %v8983_v6  ;;  %v872_v3 = vsel %vm575_vm0, %v857_v36, %v859_v8  ;;  %v552_v8 = vmul.f32 %v8918_v61, %v8822_v29 }
 0x127   : > { %v769_v40 = vadd.f32 %v756_v39, %v714_v20  ;;  %v887_v18 = vadd.f32 %v872_v3, %v825_v10  ;;  %v909_v20 = vmul.f32 %v8900_v54, %v8975_v28  ;;  %v553_v36 = vmul.f32 %v8918_v61, %v8777_v11 }
 0x128   : > { %v890_v55 = vadd.f32 %v875_v34, %v828_v44  ;;  %v665_v10 = vmul.f32 %v8981_v31, %v8777_v11 }
 0x129   : > { %v921_v46 = vpop.permute.xlu0 %920  ;;  %v923_v49 = vpop.permute.xlu1 %922  ;;  %964 = vrot.lane.b32.xlu1 %v769_v40, %s11081_s26 }
 0x12a   : > { %v935_v50 = vsel %vm631_vm1, %v921_v46, %v923_v49 }
 0x12b   : > { %v950_v53 = vadd.f32 %v935_v50, %v888_v45 }
 0x12d   : > { %v925_v56 = vpop.permute.xlu0 %924  ;;  %1009 = vrot.lane.b32.xlu0 %v950_v53, %s8598_s24  ;;  %v927_v57 = vpop.permute.xlu1 %926 }
 0x12e   : > { %v936_v59 = vsel %vm631_vm1, %v923_v49, %v925_v56  ;;  %v937_v60 = vsel %vm631_vm1, %v925_v56, %v927_v57 }
 0x12f   : > { %v951_v62 = vadd.f32 %v936_v59, %v889_v37  ;;  %v952_v43 = vadd.f32 %v937_v60, %v890_v55 }
 0x131   : > { %v9035_v0 = vpop.permute.xlu0 %928  ;;  %1013 = vrot.lane.b32.xlu0 %v952_v43, %s8598_s24  ;;  %v919_v1 = vpop.permute.xlu1 %918  ;;  %1011 = vrot.lane.b32.xlu1 %v951_v62, %s8598_s24 }
 0x132   : > { %v938_v4 = vsel %vm631_vm1, %v927_v57, %v9035_v0  ;;  %v934_v13 = vsel %vm631_vm1, %v919_v1, %v921_v46 }
 0x133   : > { %v953_v12 = vadd.f32 %v938_v4, %v891_v63  ;;  %v949_v27 = vadd.f32 %v934_v13, %v887_v18 }
 0x135   : > { %930 = vrot.lane.b32.xlu0 %v908_v47, %s11079_s16  ;;  %v564_v23 = vpop.permute.xlu1 %563  ;;  %1015 = vrot.lane.b32.xlu1 %v953_v12, %s8598_s24 }
 0x139   : > { %571 = vrot.lane.b32.xlu0 %v552_v8, %s8595_s20  ;;  %v568_v9 = vpop.permute.xlu1 %567  ;;  %1007 = vrot.lane.b32.xlu1 %v949_v27, %s8598_s24 }
 0x13d   : > { %627 = vrot.lane.b32.xlu0 %v608_v51, %s11079_s16  ;;  %932 = vrot.lane.b32.xlu1 %v909_v20, %s11079_s16  ;;  %v562_v32 = vpop.permute.xlu1 %561 }
 0x13e   : > { %v576_v55 = vsel %vm575_vm0, %v562_v32, %v564_v23 }
 0x141   : > { %573 = vrot.lane.b32.xlu1 %v553_v36, %s8595_s20  ;;  %v622_v38 = vpop.permute.xlu1 %621 }
 0x142   : > { %v9062_v39 = vpop.permute.xlu0 %494 }
 0x143   : > { %v534_v46 = vmul.f32 %v8795_v17, %v9062_v39  ;;  %v535_v61 = vmul.f32 %v8792_v16, %v9062_v39  ;;  %v533_v16 = vmul.f32 %v8825_v30, %v9062_v39 }
 0x145   : > { %629 = vrot.lane.b32.xlu1 %v609_v41, %s11079_s16  ;;  %v9067_v40 = vpop.permute.xlu1 %625  ;;  %v589_v57 = vadd.f32 %v576_v55, %v533_v16 }
 0x146   : > { %v9069_v54 = vpop.permute.xlu0 %1048 }
 0x149   : > { %v618_v45 = vpop.permute.xlu1 %617 }
 0x14a   : > { %v566_v49 = vpop.permute.xlu0 %565 }
 0x14b   : > { %v577_v35 = vsel %vm575_vm0, %v564_v23, %v566_v49  ;;  %v578_v34 = vsel %vm575_vm0, %v566_v49, %v568_v9 }
 0x14c   : > { %v590_v50 = vadd.f32 %v577_v35, %v534_v46  ;;  %v591_v5 = vadd.f32 %v578_v34, %v535_v61 }
 0x14d   : > { %v9079_v44 = vpop.permute.xlu1 %868 }
 0x14e   : > { %v877_v53 = vsel %vm575_vm0, %v9011_v24, %v9079_v44  ;;  %v9084_v17 = vpop.permute.xlu0 %569  ;;  %v536_v24 = vmul.f32 %v8814_v26, %v9062_v39  ;;  %v664_v26 = vmul.f32 %v8981_v31, %v8822_v29 }
 0x14f   : > { %v892_v37 = vadd.f32 %v877_v53, %v830_v52  ;;  %v579_v58 = vsel %vm575_vm0, %v568_v9, %v9084_v17 }
 0x150   : > { %v592_v62 = vadd.f32 %v579_v58, %v536_v24 }
 0x152   : > { %v620_v56 = vpop.permute.xlu0 %619 }
 0x153   : > { %v632_v48 = vsel %vm631_vm1, %v618_v45, %v620_v56  ;;  %v633_v59 = vsel %vm631_vm1, %v620_v56, %v622_v38 }
 0x154   : > { %v645_v60 = vadd.f32 %v632_v48, %v589_v57  ;;  %v646_v42 = vadd.f32 %v633_v59, %v590_v50 }
 0x156   : > { %v624_v43 = vpop.permute.xlu0 %623 }
 0x157   : > { %v634_v30 = vsel %vm631_vm1, %v622_v38, %v624_v43  ;;  %v635_v63 = vsel %vm631_vm1, %v624_v43, %v9067_v40 }
 0x158   : > { %v647_v1 = vadd.f32 %v634_v30, %v591_v5  ;;  %v648_v3 = vadd.f32 %v635_v63, %v592_v62 }
 0x15a   : > { %v700_v4 = vpop.permute.xlu0 %699 }
 0x15b   : > { %v706_v12 = vsel %vm575_vm0, %v8985_v33, %v700_v4  ;;  %v720_v47 = vadd.f32 %v700_v4, %v665_v10 }
 0x15c   : > { %v719_v13 = vadd.f32 %v706_v12, %v664_v26 }
 0x15e   : > { %v755_v18 = vpop.permute.xlu0 %754 }
 0x15f   : > { %v761_v23 = vsel %vm631_vm1, %v9004_v7, %v755_v18  ;;  %v775_v27 = vadd.f32 %v755_v18, %v720_v47 }
 0x160   : > { %v774_v8 = vadd.f32 %v761_v23, %v719_v13  ;;  %v832_v13 = vmul.f32 %v8975_v28, %v8983_v6  ;;  %v7963_v23 = vld [vmem:[%s11065_s7 + $0x4] ss:$8 sps:$4 sm:$0xff]   ;;  %v7968_v28 = vld [vmem:[%s11065_s7 + $0x10] ss:$8 sps:$4 sm:$0xff]  }
 0x161   : > { %976 = vrot.lane.b32.xlu1 %v775_v27, %s11081_s26  ;;  %v7965_v27 = vld [vmem:[%s11065_s7] ss:$8 sps:$4 sm:$0xff]   ;;  %1774 = vmatprep.subr.bf16.mxu0 %v7963_v23  ;;  %v538_v23 = vmul.f32 %v8822_v29, %v9062_v39  ;;  %v8005_v29 = vld [vmem:[%s11065_s7 + $0xe4] ss:$8 sps:$4 sm:$0xff]  }
 0x162   : > { %974 = vrot.lane.b32.xlu0 %v774_v8, %s11081_s26  ;;  %v871_v9 = vpop.permute.xlu0 %870  ;;  %v7966_v8 = vld [vmem:[%s11065_s7 + $0x14] ss:$8 sps:$4 sm:$0xff]   ;;  %1775 = vmatpush1.bf16.msra.mxu0 %v7965_v27  ;;  %s8601_s26 = smov 112  }
 0x163   : > { %v878_v63 = vsel %vm575_vm0, %v9079_v44, %v871_v9  ;;  %1776 = vmatprep.subr.bf16.mxu0 %v7966_v8 }
 0x166   : > { %1777 = vmatpush1.bf16.msra.mxu0 %v7968_v28 }
 0x187   : > { %v967_v51 = vpop.permute.xlu0 %966 }
 0x18b   : > { %v969_v20 = vpop.permute.xlu1 %968  ;;  %v971_v32 = vpop.permute.xlu0 %970 }
 0x18c   : > { %v980_v38 = vsel %vm978_vm2, %v967_v51, %v969_v20  ;;  %v981_v41 = vsel %vm978_vm2, %v969_v20, %v971_v32  ;;  %v7969_v20 = vld [vmem:[%s11065_s7 + $0x24] ss:$8 sps:$4 sm:$0xff]  }
 0x18d   : > { %v993_v7 = vadd.f32 %v980_v38, %v646_v42  ;;  %v994_v45 = vadd.f32 %v981_v41, %v647_v1  ;;  %1778 = vmatprep.subr.bf16.mxu0 %v7969_v20  ;;  %v7977_v38 = vld [vmem:[%s11065_s7 + $0x40] ss:$8 sps:$4 sm:$0xff]   ;;  %v7978_v41 = vld [vmem:[%s11065_s7 + $0x54] ss:$8 sps:$4 sm:$0xff]  }
 0x18f   : > { %v9108_v33 = vpop.permute.xlu1 %972 }
 0x190   : > { %v982_v5 = vsel %vm978_vm2, %v971_v32, %v9108_v33  ;;  %v7972_v32 = vld [vmem:[%s11065_s7 + $0x34] ss:$8 sps:$4 sm:$0xff]  }
 0x191   : > { %v995_v48 = vadd.f32 %v982_v5, %v648_v3  ;;  %v7992_v5 = vld [vmem:[%s11065_s7 + $0x90] ss:$8 sps:$4 sm:$0xff]  }
 0x19b   : > { %v965_v31 = vpop.permute.xlu1 %964 }
 0x19c   : > { %v979_v56 = vsel %vm978_vm2, %v965_v31, %v967_v51  ;;  %v894_v51 = vadd.f32 %v871_v9, %v832_v13  ;;  %v7971_v9 = vld [vmem:[%s11065_s7 + $0x20] ss:$8 sps:$4 sm:$0xff]   ;;  %v7974_v31 = vld [vmem:[%s11065_s7 + $0x30] ss:$8 sps:$4 sm:$0xff]  }
 0x19d   : > { %v992_v62 = vadd.f32 %v979_v56, %v645_v60  ;;  %1779 = vmatpush1.bf16.msra.mxu0 %v7971_v9  ;;  %v7995_v56 = vld [vmem:[%s11065_s7 + $0xa0] ss:$8 sps:$4 sm:$0xff]  }
 0x19e   : > { %1780 = vmatprep.subr.bf16.mxu0 %v7972_v32 }
 0x19f   : > { %v1010_v36 = vpop.permute.xlu0 %1009 }
 0x1a1   : > { %1781 = vmatpush1.bf16.msra.mxu0 %v7974_v31 }
 0x1a3   : > { %v1014_v46 = vpop.permute.xlu0 %1013  ;;  %v1012_v61 = vpop.permute.xlu1 %1011 }
 0x1a4   : > { %v1025_v49 = vsel %vm1023_vm3, %v1010_v36, %v1012_v61  ;;  %v1026_v35 = vsel %vm1023_vm3, %v1012_v61, %v1014_v46  ;;  %v7984_v61 = vld [vmem:[%s11065_s7 + $0x74] ss:$8 sps:$4 sm:$0xff]  }
 0x1a5   : > { %v1039_v34 = vadd.f32 %v1025_v49, %v993_v7  ;;  %v1040_v50 = vadd.f32 %v1026_v35, %v994_v45  ;;  %v7980_v7 = vld [vmem:[%s11065_s7 + $0x50] ss:$8 sps:$4 sm:$0xff]   ;;  %v7981_v45 = vld [vmem:[%s11065_s7 + $0x64] ss:$8 sps:$4 sm:$0xff]  }
 0x1a6   : > { %v7986_v49 = vld [vmem:[%s11065_s7 + $0x70] ss:$8 sps:$4 sm:$0xff]   ;;  %v7987_v35 = vld [vmem:[%s11065_s7 + $0x84] ss:$8 sps:$4 sm:$0xff]  }
 0x1a7   : > { %v9117_v52 = vadd.f32 %v9069_v54, %v1039_v34  ;;  %v9120_v53 = vadd.f32 %v9069_v54, %v1040_v50  ;;  %v931_v16 = vpop.permute.xlu0 %930  ;;  %v9122_v55 = vpop.permute.xlu1 %1015  ;;  %v7989_v34 = vld [vmem:[%s11065_s7 + $0x80] ss:$8 sps:$4 sm:$0xff]   ;;  %v7990_v50 = vld [vmem:[%s11065_s7 + $0x94] ss:$8 sps:$4 sm:$0xff]  }
 0x1a8   : > { %v939_v57 = vsel %vm631_vm1, %v9035_v0, %v931_v16  ;;  %v1027_v58 = vsel %vm1023_vm3, %v1014_v46, %v9122_v55  ;;  %v831_v0 = vmul.f32 %v8961_v21, %v8983_v6  ;;  %v7983_v46 = vld [vmem:[%s11065_s7 + $0x60] ss:$8 sps:$4 sm:$0xff]  }
 0x1a9   : > { %v1059_v59 = vmax.f32 %v9117_v52, 0.0  ;;  %v1060_v24 = vmax.f32 %v9120_v53, 0.0  ;;  %v954_v42 = vadd.f32 %v939_v57, %v892_v37  ;;  %v1041_v43 = vadd.f32 %v1027_v58, %v995_v48  ;;  %v7996_v57 = vld [vmem:[%s11065_s7 + $0xb4] ss:$8 sps:$4 sm:$0xff]   ;;  %v7998_v58 = vld [vmem:[%s11065_s7 + $0xb0] ss:$8 sps:$4 sm:$0xff]  }
 0x1aa   : > { %v893_v37 = vadd.f32 %v878_v63, %v831_v0  ;;  %v7999_v48 = vld [vmem:[%s11065_s7 + $0xc4] ss:$8 sps:$4 sm:$0xff]  }
 0x1ab   : > { %1017 = vrot.lane.b32.xlu0 %v954_v42, %s8598_s24  ;;  %v1008_v30 = vpop.permute.xlu1 %1007  ;;  %v7913_v3 = vpack.i.bf16 %v1060_v24, %v1059_v59  ;;  %v9142_v60 = vadd.f32 %v9069_v54, %v1041_v43  ;;  %v8001_v42 = vld [vmem:[%s11065_s7 + $0xc0] ss:$8 sps:$4 sm:$0xff]   ;;  %v572_v43 = vpop.permute.xlu0 %571 }
 0x1ac   : > { %v1024_v1 = vsel %vm1023_vm3, %v1008_v30, %v1010_v36  ;;  %v7975_v36 = vld [vmem:[%s11065_s7 + $0x44] ss:$8 sps:$4 sm:$0xff]   ;;  %v580_v0 = vsel %vm575_vm0, %v9084_v17, %v572_v43 }
 0x1ad   : > { %v1038_v4 = vadd.f32 %v1024_v1, %v992_v62  ;;  %v1061_v47 = vmax.f32 %v9142_v60, 0.0  ;;  %1782 = vmatprep.subr.bf16.mxu0 %v7975_v36  ;;  %v8002_v62 = vld [vmem:[%s11065_s7 + $0xd4] ss:$8 sps:$4 sm:$0xff]  }
 0x1ae   : > { %1783 = vmatpush1.bf16.msra.mxu0 %v7977_v38 }
 0x1af   : > { %v9145_v10 = vadd.f32 %v9069_v54, %v1038_v4  ;;  %7914 = vrot.lane.b32.xlu0 %v7913_v3, %s8595_s20  ;;  %v933_v44 = vpop.permute.xlu1 %932  ;;  %1784 = vmatprep.subr.bf16.mxu0 %v7978_v41  ;;  %v628_v30 = vpop.permute.xlu0 %627  ;;  %v537_v4 = vmul.f32 %v8811_v25, %v9062_v39  ;;  %v539_v41 = vmul.f32 %v8777_v11, %v9062_v39  ;;  %v8010_v11 = vld [vmem:[%s11065_s7 + $0xf0] ss:$8 sps:$4 sm:$0xff]  }
 0x1b0   : > { %v940_v12 = vsel %vm631_vm1, %v931_v16, %v933_v44  ;;  %v956_v6 = vadd.f32 %v933_v44, %v894_v51  ;;  %v7993_v16 = vld [vmem:[%s11065_s7 + $0xa4] ss:$8 sps:$4 sm:$0xff]  }
 0x1b1   : > { %v1058_v21 = vmax.f32 %v9145_v10, 0.0  ;;  %v955_v26 = vadd.f32 %v940_v12, %v893_v37  ;;  %v636_v37 = vsel %vm631_vm1, %v9067_v40, %v628_v30  ;;  %v593_v44 = vadd.f32 %v580_v0, %v537_v4 }
 0x1b2   : > { %1785 = vmatpush1.bf16.msra.mxu0 %v7980_v7 }
 0x1b3   : > { %1019 = vrot.lane.b32.xlu1 %v955_v26, %s8598_s24  ;;  %v7918_v18 = vpack.i.bf16 %v1058_v21, %v1061_v47  ;;  %1786 = vmatprep.subr.bf16.mxu0 %v7981_v45  ;;  %v574_v63 = vpop.permute.xlu1 %573 }
 0x1b4   : > { %v581_v26 = vsel %vm575_vm0, %v572_v43, %v574_v63 }
 0x1b5   : > { %v594_v8 = vadd.f32 %v581_v26, %v538_v23 }
 0x1b6   : > { %1787 = vmatpush1.bf16.msra.mxu0 %v7983_v46  ;;  %v595_v46 = vadd.f32 %v574_v63, %v539_v41  ;;  %v8023_v41 = vld [vmem:[%s11065_s7 + $0x140] ss:$8 sps:$4 sm:$0xff]  }
 0x1b7   : > { %7919 = vrot.lane.b32.xlu1 %v7918_v18, %s8595_s20  ;;  %1788 = vmatprep.subr.bf16.mxu0 %v7984_v61  ;;  %v630_v3 = vpop.permute.xlu1 %629  ;;  %v649_v18 = vadd.f32 %v636_v37, %v593_v44 }
 0x1b8   : > { %v637_v17 = vsel %vm631_vm1, %v628_v30, %v630_v3  ;;  %v8013_v30 = vld [vmem:[%s11065_s7 + $0x104] ss:$8 sps:$4 sm:$0xff]  }
 0x1b9   : > { %v650_v28 = vadd.f32 %v637_v17, %v594_v8 }
 0x1ba   : > { %1789 = vmatpush1.bf16.msra.mxu0 %v7986_v49 }
 0x1bb   : > { %1021 = vrot.lane.b32.xlu1 %v956_v6, %s8598_s24  ;;  %1790 = vmatprep.subr.bf16.mxu0 %v7987_v35  ;;  %s8602_s24 = smov 110  }
 0x1be   : > { %1791 = vmatpush1.bf16.msra.mxu0 %v7989_v34 }
 0x1bf   : > { %1792 = vmatprep.subr.bf16.mxu0 %v7990_v50  ;;  %v8008_v50 = vld [vmem:[%s11065_s7 + $0xf4] ss:$8 sps:$4 sm:$0xff]  }
 0x1c2   : > { %1793 = vmatpush1.bf16.msra.mxu0 %v7992_v5  ;;  %v651_v5 = vadd.f32 %v630_v3, %v595_v46  ;;  %v8031_v46 = vld [vmem:[%s11065_s7 + $0x164] ss:$8 sps:$4 sm:$0xff]  }
 0x1c3   : > { %1794 = vmatprep.subr.bf16.mxu0 %v7993_v16 }
 0x1c6   : > { %1795 = vmatpush1.bf16.msra.mxu0 %v7995_v56 }
 0x1c7   : > { %1796 = vmatprep.subr.bf16.mxu0 %v7996_v57 }
 0x1ca   : > { %1797 = vmatpush1.bf16.msra.mxu0 %v7998_v58 }
 0x1cb   : > { %1798 = vmatprep.subr.bf16.mxu0 %v7999_v48 }
 0x1ce   : > { %1799 = vmatpush1.bf16.msra.mxu0 %v8001_v42 }
 0x1cf   : > { %1800 = vmatprep.subr.bf16.mxu0 %v8002_v62 }
 0x1d3   : > { %v977_v27 = vpop.permute.xlu1 %976 }
 0x1d4   : > { %v975_v1 = vpop.permute.xlu0 %974  ;;  %v998_v58 = vadd.f32 %v977_v27, %v651_v5  ;;  %v8040_v5 = vld [vmem:[%s11065_s7 + $0x194] ss:$8 sps:$4 sm:$0xff]  }
 0x1d5   : > { %v983_v13 = vsel %vm978_vm2, %v9108_v33, %v975_v1  ;;  %v984_v40 = vsel %vm978_vm2, %v975_v1, %v977_v27  ;;  %v8004_v33 = vld [vmem:[%s11065_s7 + $0xd0] ss:$8 sps:$4 sm:$0xff]  }
 0x1d6   : > { %v996_v51 = vadd.f32 %v983_v13, %v649_v18  ;;  %v997_v9 = vadd.f32 %v984_v40, %v650_v28  ;;  %1801 = vmatpush1.bf16.msra.mxu0 %v8004_v33 }
 0x1d7   : > { %1802 = vmatprep.subr.bf16.mxu0 %v8005_v29  ;;  %v8016_v29 = vld [vmem:[%s11065_s7 + $0x114] ss:$8 sps:$4 sm:$0xff]  }
 0x21d   : > { %v1018_v12 = vpop.permute.xlu0 %1017 }
 0x21e   : > { %v1028_v25 = vsel %vm1023_vm3, %v9122_v55, %v1018_v12  ;;  %v8007_v55 = vld [vmem:[%s11065_s7 + $0xe0] ss:$8 sps:$4 sm:$0xff]  }
 0x21f   : > { %v1042_v6 = vadd.f32 %v1028_v25, %v996_v51  ;;  %1803 = vmatpush1.bf16.msra.mxu0 %v8007_v55  ;;  %v8017_v55 = vld [vmem:[%s11065_s7 + $0x120] ss:$8 sps:$4 sm:$0xff]  }
 0x220   : > { %1804 = vmatprep.subr.bf16.mxu0 %v8008_v50  ;;  %v8035_v50 = vld [vmem:[%s11065_s7 + $0x180] ss:$8 sps:$4 sm:$0xff]  }
 0x221   : > { %v7915_v20 = vpop.permute.xlu0 %7914  ;;  %v1055_v7 = vadd.f32 %v9069_v54, %v1042_v6  ;;  %v8011_v6 = vld [vmem:[%s11065_s7 + $0x100] ss:$8 sps:$4 sm:$0xff]  }
 0x222   : > { %v7917_v31 = vunpack.i.h.bf16 %v7915_v20  ;;  %v7916_v36 = vunpack.i.l.bf16 %v7915_v20 }
 0x223   : > { %v1062_v16 = vmax.f32 %v1055_v7, 0.0  ;;  %1805 = vmatpush1.bf16.msra.mxu0 %v8010_v11  ;;  %v8028_v7 = vld [vmem:[%s11065_s7 + $0x154] ss:$8 sps:$4 sm:$0xff]   ;;  %v8041_v11 = vld [vmem:[%s11065_s7 + $0x1a0] ss:$8 sps:$4 sm:$0xff]  }
 0x224   : > { %v1087_v35 = vsel %vm575_vm0, %v7916_v36, %v7917_v31  ;;  %1815 = vmatprep.subr.bf16.mxu0 %v8013_v30  ;;  %v8055_v30 = vld [vmem:[%s11065_s7 + $0x1e4] ss:$8 sps:$4 sm:$0xff]  }
 0x225   : > { %v1020_v32 = vpop.permute.xlu1 %1019  ;;  %v1100_v62 = vmax.f32 %v1059_v59, %v1087_v35  ;;  %v8032_v35 = vld [vmem:[%s11065_s7 + $0x170] ss:$8 sps:$4 sm:$0xff]  }
 0x226   : > { %v1029_v38 = vsel %vm1023_vm3, %v1018_v12, %v1020_v32 }
 0x227   : > { %v1043_v45 = vadd.f32 %v1029_v38, %v997_v9  ;;  %v8014_v9 = vld [vmem:[%s11065_s7 + $0x110] ss:$8 sps:$4 sm:$0xff]   ;;  %v8025_v38 = vld [vmem:[%s11065_s7 + $0x144] ss:$8 sps:$4 sm:$0xff]  }
 0x229   : > { %v1056_v61 = vadd.f32 %v9069_v54, %v1043_v45  ;;  %v7920_v49 = vpop.permute.xlu1 %7919  ;;  %v8026_v45 = vld [vmem:[%s11065_s7 + $0x150] ss:$8 sps:$4 sm:$0xff]  }
 0x22a   : > { %v7921_v34 = vunpack.i.l.bf16 %v7920_v49  ;;  %v7922_v39 = vunpack.i.h.bf16 %v7920_v49  ;;  %v8034_v49 = vld [vmem:[%s11065_s7 + $0x174] ss:$8 sps:$4 sm:$0xff]  }
 0x22b   : > { %v1063_v56 = vmax.f32 %v1056_v61, 0.0  ;;  %v8029_v61 = vld [vmem:[%s11065_s7 + $0x160] ss:$8 sps:$4 sm:$0xff]  }
 0x22c   : > { %v1088_v57 = vsel %vm575_vm0, %v7917_v31, %v7921_v34  ;;  %v1086_v52 = vsel %vm575_vm0, %v7922_v39, %v7916_v36  ;;  %v8022_v31 = vld [vmem:[%s11065_s7 + $0x134] ss:$8 sps:$4 sm:$0xff]   ;;  %v8020_v36 = vld [vmem:[%s11065_s7 + $0x130] ss:$8 sps:$4 sm:$0xff]  }
 0x22d   : > { %v1022_v48 = vpop.permute.xlu1 %1021  ;;  %v7928_v42 = vpack.i.bf16 %v1063_v56, %v1062_v16  ;;  %v9282_v43 = vmax.f32 %v1060_v24, %v1088_v57  ;;  %v1099_v24 = vmax.f32 %v1058_v21, %v1086_v52  ;;  %v8046_v39 = vld [vmem:[%s11065_s7 + $0x1b4] ss:$8 sps:$4 sm:$0xff]   ;;  %v8044_v57 = vld [vmem:[%s11065_s7 + $0x1b0] ss:$8 sps:$4 sm:$0xff]   ;;  %v8061_v52 = vld [vmem:[%s11065_s7 + $0x204] ss:$8 sps:$4 sm:$0xff]  }
 0x22e   : > { %v1030_v63 = vsel %vm1023_vm3, %v1020_v32, %v1022_v48  ;;  %v8019_v32 = vld [vmem:[%s11065_s7 + $0x124] ss:$8 sps:$4 sm:$0xff]   ;;  %v8047_v48 = vld [vmem:[%s11065_s7 + $0x1c0] ss:$8 sps:$4 sm:$0xff]   ;;  %vm3405_vm3 = vcmask 498688  }
 0x22f   : > { %v1044_v1 = vadd.f32 %v1030_v63, %v998_v58  ;;  %7929 = vrot.lane.b32.xlu1 %v7928_v42, %s8595_s20  ;;  %v7923_v0 = vpack.i.bf16 %v9282_v43, %v1100_v62  ;;  %v8049_v58 = vld [vmem:[%s11065_s7 + $0x1c4] ss:$8 sps:$4 sm:$0xff]   ;;  %v8052_v42 = vld [vmem:[%s11065_s7 + $0x1d4] ss:$8 sps:$4 sm:$0xff]   ;;  %v8053_v63 = vld [vmem:[%s11065_s7 + $0x1e0] ss:$8 sps:$4 sm:$0xff]  }
 0x231   : > { %7924 = vrot.lane.b32.xlu0 %v7923_v0, %s11090_s27  ;;  %v1057_v53 = vadd.f32 %v9069_v54, %v1044_v1  ;;  %v8058_v1 = vld [vmem:[%s11065_s7 + $0x1f4] ss:$8 sps:$4 sm:$0xff]   ;;  %v8056_v0 = vld [vmem:[%s11065_s7 + $0x1f0] ss:$8 sps:$4 sm:$0xff]  }
 0x233   : > { %v1064_v59 = vmax.f32 %v1057_v53, 0.0 }
 0x235   : > { %1084 = vrot.lane.b32.xlu1 %v1064_v59, %s8595_s20  ;;  %1113 = vrot.lane.b32.xlu0 %v1099_v24, %s11090_s27 }
 0x2a1   : > { %v7930_v4 = vpop.permute.xlu1 %7929 }
 0x2a2   : > { %v7932_v3 = vunpack.i.h.bf16 %v7930_v4  ;;  %v7931_v37 = vunpack.i.l.bf16 %v7930_v4 }
 0x2a3   : > { %v9297_v44 = vpop.permute.xlu0 %7924 }
 0x2a4   : > { %v1089_v12 = vsel %vm575_vm0, %v7921_v34, %v7931_v37  ;;  %v1090_v26 = vsel %vm575_vm0, %v7931_v37, %v7932_v3  ;;  %v7927_v13 = vunpack.i.h.bf16 %v9297_v44  ;;  %v7926_v54 = vunpack.i.l.bf16 %v9297_v44  ;;  %v8037_v34 = vld [vmem:[%s11065_s7 + $0x184] ss:$8 sps:$4 sm:$0xff]   ;;  %v8059_v44 = vld [vmem:[%s11065_s7 + $0x200] ss:$8 sps:$4 sm:$0xff]  }
 0x2a5   : > { %v9305_v10 = vmax.f32 %v1061_v47, %v1089_v12  ;;  %v9307_v21 = vmax.f32 %v1062_v16, %v1090_v26  ;;  %v8038_v16 = vld [vmem:[%s11065_s7 + $0x190] ss:$8 sps:$4 sm:$0xff]  }
 0x2a6   : > { %v1128_v18 = vsel %vm978_vm2, %v7926_v54, %v7927_v13 }
 0x2a7   : > { %v1085_v23 = vpop.permute.xlu1 %1084  ;;  %v1114_v27 = vpop.permute.xlu0 %1113  ;;  %v7933_v17 = vpack.i.bf16 %v9307_v21, %v9305_v10  ;;  %v1141_v25 = vmax.f32 %v1100_v62, %v1128_v18  ;;  %v8050_v62 = vld [vmem:[%s11065_s7 + $0x1d0] ss:$8 sps:$4 sm:$0xff]  }
 0x2a8   : > { %v1091_v8 = vsel %vm575_vm0, %v7932_v3, %v1085_v23  ;;  %v9315_v51 = vmax.f32 %v1064_v59, %v1085_v23  ;;  %v1127_v60 = vsel %vm978_vm2, %v1114_v27, %v7926_v54  ;;  %v8064_v27 = vld [vmem:[%s11065_s7 + $0x214] ss:$8 sps:$4 sm:$0xff]  }
 0x2a9   : > { %v9318_v47 = vmax.f32 %v1063_v56, %v1091_v8  ;;  %v1140_v40 = vmax.f32 %v1099_v24, %v1127_v60  ;;  %7934 = vrot.lane.b32.xlu0 %v7933_v17, %s11090_s27  ;;  %v1148_v28 = vpack.c.bf16 %v1141_v25, %v1141_v25  ;;  %v8043_v56 = vld [vmem:[%s11065_s7 + $0x1a4] ss:$8 sps:$4 sm:$0xff]   ;;  %v8062_v17 = vld [vmem:[%s11065_s7 + $0x210] ss:$8 sps:$4 sm:$0xff]   ;;  %v8065_v60 = vld [vmem:[%s11065_s7 + $0x220] ss:$8 sps:$4 sm:$0xff]  }
 0x2aa   : > { %v8067_v8 = vld [vmem:[%s11065_s7 + $0x224] ss:$8 sps:$4 sm:$0xff]  }
 0x2ab   : > { %v7938_v20 = vpack.i.bf16 %v9315_v51, %v9318_v47  ;;  %v1147_v33 = vpack.c.bf16 %v1140_v40, %v1140_v40  ;;  %1806 = vmatprep.mubr.bf16.mxu0 %v1148_v28  ;;  %v8068_v40 = vld [vmem:[%s11065_s7 + $0x230] ss:$8 sps:$4 sm:$0xff]   ;;  %v8073_v28 = vld [vmem:[%s11065_s7 + $0x244] ss:$8 sps:$4 sm:$0xff]  }
 0x2ad   : > { %7939 = vrot.lane.b32.xlu0 %v7938_v20, %s11090_s27  ;;  %1807 = vmatmul.mubr.bf16.vlgmr.msra.gmra.mrb[0].mxu0 %v1147_v33  ;;  %v8076_v20 = vld [vmem:[%s11065_s7 + $0x254] ss:$8 sps:$4 sm:$0xff]   ;;  %v8074_v33 = vld [vmem:[%s11065_s7 + $0x250] ss:$8 sps:$4 sm:$0xff]   ;;  %s8603_s27 = smov 95  }
 0x2ae   : > { %1816 = vmatpush1.bf16.msra.mxu0 %v8011_v6  ;;  %v8071_v6 = vld [vmem:[%s11065_s7 + $0x240] ss:$8 sps:$4 sm:$0xff]  }
 0x2af   : > { %1817 = vmatprep.subr.bf16.mxu0 %v8016_v29  ;;  %v8079_v29 = vld [vmem:[%s11065_s7 + $0x264] ss:$8 sps:$4 sm:$0xff]  }
 0x2b2   : > { %1818 = vmatpush1.bf16.msra.mxu0 %v8014_v9  ;;  %v8077_v9 = vld [vmem:[%s11065_s7 + $0x260] ss:$8 sps:$4 sm:$0xff]  }
 0x2b3   : > { %1819 = vmatprep.subr.bf16.mxu0 %v8019_v32  ;;  %v8082_v32 = vld [vmem:[%s11065_s7 + $0x274] ss:$8 sps:$4 sm:$0xff]  }
 0x2b6   : > { %1820 = vmatpush1.bf16.msra.mxu0 %v8017_v55  ;;  %v8080_v55 = vld [vmem:[%s11065_s7 + $0x270] ss:$8 sps:$4 sm:$0xff]  }
 0x2b7   : > { %1821 = vmatprep.subr.bf16.mxu0 %v8022_v31  ;;  %v8085_v31 = vld [vmem:[%s11065_s7 + $0x284] ss:$8 sps:$4 sm:$0xff]  }
 0x2ba   : > { %1822 = vmatpush1.bf16.msra.mxu0 %v8020_v36  ;;  %v8083_v36 = vld [vmem:[%s11065_s7 + $0x280] ss:$8 sps:$4 sm:$0xff]  }
 0x2bb   : > { %1823 = vmatprep.subr.bf16.mxu0 %v8025_v38  ;;  %v8088_v38 = vld [vmem:[%s11065_s7 + $0x294] ss:$8 sps:$4 sm:$0xff]  }
 0x2be   : > { %1824 = vmatpush1.bf16.msra.mxu0 %v8023_v41  ;;  %v8086_v41 = vld [vmem:[%s11065_s7 + $0x290] ss:$8 sps:$4 sm:$0xff]  }
 0x2bf   : > { %1825 = vmatprep.subr.bf16.mxu0 %v8028_v7  ;;  %v8091_v7 = vld [vmem:[%s11065_s7 + $0x2a4] ss:$8 sps:$4 sm:$0xff]  }
 0x2c2   : > { %1826 = vmatpush1.bf16.msra.mxu0 %v8026_v45  ;;  %v8089_v45 = vld [vmem:[%s11065_s7 + $0x2a0] ss:$8 sps:$4 sm:$0xff]  }
 0x2c3   : > { %1827 = vmatprep.subr.bf16.mxu0 %v8031_v46  ;;  %v8094_v46 = vld [vmem:[%s11065_s7 + $0x2b4] ss:$8 sps:$4 sm:$0xff]  }
 0x2c6   : > { %1828 = vmatpush1.bf16.msra.mxu0 %v8029_v61  ;;  %v8092_v61 = vld [vmem:[%s11065_s7 + $0x2b0] ss:$8 sps:$4 sm:$0xff]  }
 0x2c7   : > { %1829 = vmatprep.subr.bf16.mxu0 %v8034_v49  ;;  %v8097_v49 = vld [vmem:[%s11065_s7 + $0x2c4] ss:$8 sps:$4 sm:$0xff]  }
 0x2ca   : > { %1830 = vmatpush1.bf16.msra.mxu0 %v8032_v35  ;;  %v8095_v35 = vld [vmem:[%s11065_s7 + $0x2c0] ss:$8 sps:$4 sm:$0xff]  }
 0x2cb   : > { %1831 = vmatprep.subr.bf16.mxu0 %v8037_v34  ;;  %v8100_v34 = vld [vmem:[%s11065_s7 + $0x2d4] ss:$8 sps:$4 sm:$0xff]  }
 0x2ce   : > { %1832 = vmatpush1.bf16.msra.mxu0 %v8035_v50  ;;  %v8098_v50 = vld [vmem:[%s11065_s7 + $0x2d0] ss:$8 sps:$4 sm:$0xff]  }
 0x2cf   : > { %1833 = vmatprep.subr.bf16.mxu0 %v8040_v5  ;;  %v8103_v5 = vld [vmem:[%s11065_s7 + $0x2e4] ss:$8 sps:$4 sm:$0xff]  }
 0x2d2   : > { %1834 = vmatpush1.bf16.msra.mxu0 %v8038_v16  ;;  %v8101_v16 = vld [vmem:[%s11065_s7 + $0x2e0] ss:$8 sps:$4 sm:$0xff]  }
 0x2d3   : > { %1835 = vmatprep.subr.bf16.mxu0 %v8043_v56  ;;  %v8106_v56 = vld [vmem:[%s11065_s7 + $0x2f4] ss:$8 sps:$4 sm:$0xff]  }
 0x2d6   : > { %1836 = vmatpush1.bf16.msra.mxu0 %v8041_v11 }
 0x2d7   : > { %1837 = vmatprep.subr.bf16.mxu0 %v8046_v39  ;;  %v8104_v39 = vld [vmem:[%s11065_s7 + $0x2f0] ss:$8 sps:$4 sm:$0xff]  }
 0x2da   : > { %1838 = vmatpush1.bf16.msra.mxu0 %v8044_v57 }
 0x2db   : > { %1839 = vmatprep.subr.bf16.mxu0 %v8049_v58  ;;  %v8109_v58 = vld [vmem:[%s11065_s7 + $0x304] ss:$8 sps:$4 sm:$0xff]  }
 0x2de   : > { %1840 = vmatpush1.bf16.msra.mxu0 %v8047_v48  ;;  %v1254_v48 = vld [vmem:[%s11065_s7 + $0x320] sm:$0xff] }
 0x2df   : > { %1841 = vmatprep.subr.bf16.mxu0 %v8052_v42  ;;  %v8599_v42 = vmov 65535  }
 0x2e2   : > { %1842 = vmatpush1.bf16.msra.mxu0 %v8050_v62  ;;  %v1766_v62 = vsel %vm1764_vm4, 4294967295, %v8599_v42 }
 0x2e3   : > { %1843 = vmatprep.subr.bf16.mxu0 %v8055_v30  ;;  %v8107_v30 = vld [vmem:[%s11065_s7 + $0x300] ss:$8 sps:$4 sm:$0xff]  }
 0x2e6   : > { %1844 = vmatpush1.bf16.msra.mxu0 %v8053_v63 }
 0x2e7   : > { %1845 = vmatprep.subr.bf16.mxu0 %v8058_v1  ;;  %v6902_v1 = vcombine.high %v1254_v48, %v1254_v48 }
 0x2ea   : > { %1846 = vmatpush1.bf16.msra.mxu0 %v8056_v0  ;;  %v1767_v0 = vsel %vm1765_vm5, %v1766_v62, 0  ;;  %v8121_v62 = vld [vmem:[%s11061_s3 + $0x30] sm:$0xff]  }
 0x2eb   : > { %1856 = vmatprep.subr.bf16.mxu0 %v8061_v52  ;;  %v8110_v52 = vld [vmem:[%s11065_s7 + $0x310] ss:$8 sps:$4 sm:$0xff]  }
 0x31b   : > { %v9420_v53 = vpop.permute.xlu0 %7934 }
 0x31c   : > { %v7937_v59 = vunpack.i.h.bf16 %v9420_v53  ;;  %v7936_v24 = vunpack.i.l.bf16 %v9420_v53  ;;  %v6901_v53 = vcombine.low %v1254_v48, %v1254_v48 }
 0x31e   : > { %v1129_v4 = vsel %vm978_vm2, %v7927_v13, %v7936_v24  ;;  %v1130_v3 = vsel %vm978_vm2, %v7936_v24, %v7937_v59  ;;  %v1769_v24 = vand.u32 %v6901_v53, %v1767_v0 }
 0x31f   : > { %v1142_v37 = vmax.f32 %v9282_v43, %v1129_v4  ;;  %v9431_v12 = vpop.permute.xlu0 %7939  ;;  %v1143_v26 = vmax.f32 %v9305_v10, %v1130_v3 }
 0x320   : > { %v7942_v54 = vunpack.i.h.bf16 %v9431_v12  ;;  %v7941_v18 = vunpack.i.l.bf16 %v9431_v12  ;;  %v2550_v12 = vld [vmem:[%s11062_s4] sm:$0xff] }
 0x321   : > { %v1150_v23 = vpack.c.bf16 %v1143_v26, %v1143_v26  ;;  %v1149_v13 = vpack.c.bf16 %v1142_v37, %v1142_v37 }
 0x322   : > { %v1132_v43 = vsel %vm978_vm2, %v7941_v18, %v7942_v54  ;;  %v1131_v11 = vsel %vm978_vm2, %v7937_v59, %v7941_v18  ;;  %v1772_v59 = vand.u32 %v6902_v1, %v1767_v0  ;;  %v1146_v4 = vmax.f32 %v9315_v51, %v7942_v54  ;;  %v8115_v51 = vld [vmem:[%s11061_s3] sm:$0xff]   ;;  %v2551_v54 = vld [vmem:[%s11062_s4 + $0x8] sm:$0xff] }
 0x323   : > { %1847 = vmatprep.mubr.bf16.mxu0 %v1150_v23  ;;  %v1145_v10 = vmax.f32 %v9318_v47, %v1132_v43  ;;  %v8070_v47 = vld [vmem:[%s11065_s7 + $0x234] ss:$8 sps:$4 sm:$0xff]   ;;  %v1144_v57 = vmax.f32 %v9307_v21, %v1131_v11  ;;  %vm2787_vm2 = vcmask 130048  }
 0x324   : > { %1848 = vmatmul.mubr.bf16.vlgmr.msra.gmra.mrb[0].mxu0 %v1149_v13  ;;  %v8112_v21 = vld [vmem:[%s11065_s7 + $0x314] ss:$8 sps:$4 sm:$0xff]   ;;  %v1153_v3 = vpack.c.bf16 %v1146_v4, %v1146_v4 }
 0x325   : > { %1857 = vmatpush1.bf16.msra.mxu0 %v8059_v44  ;;  %v1152_v25 = vpack.c.bf16 %v1145_v10, %v1145_v10  ;;  %v1151_v63 = vpack.c.bf16 %v1144_v57, %v1144_v57  ;;  %v8120_v11 = vld [vmem:[%s11061_s3 + $0x38] sm:$0xff]  }
 0x326   : > { %1858 = vmatprep.subr.bf16.mxu0 %v8064_v27 }
 0x327   : > { %1888 = vmatprep.mubr.bf16.mxu0 %v1152_v25 }
 0x329   : > { %1859 = vmatpush1.bf16.msra.mxu0 %v8062_v17 }
 0x32a   : > { %1860 = vmatprep.subr.bf16.mxu0 %v8067_v8  ;;  %v8116_v8 = vld [vmem:[%s11061_s3 + $0x10] sm:$0xff]  }
 0x32d   : > { %1861 = vmatpush1.bf16.msra.mxu0 %v8065_v60 }
 0x32e   : > { %1862 = vmatprep.subr.bf16.mxu0 %v8070_v47 }
 0x331   : > { %1863 = vmatpush1.bf16.msra.mxu0 %v8068_v40 }
 0x332   : > { %1864 = vmatprep.subr.bf16.mxu0 %v8073_v28 }
 0x335   : > { %1865 = vmatpush1.bf16.msra.mxu0 %v8071_v6 }
 0x336   : > { %1866 = vmatprep.subr.bf16.mxu0 %v8076_v20 }
 0x339   : > { %1867 = vmatpush1.bf16.msra.mxu0 %v8074_v33 }
 0x33a   : > { %1868 = vmatprep.subr.bf16.mxu0 %v8079_v29 }
 0x33d   : > { %1869 = vmatpush1.bf16.msra.mxu0 %v8077_v9  ;;  %v8117_v9 = vld [vmem:[%s11061_s3 + $0x20] sm:$0xff]  }
 0x33e   : > { %1870 = vmatprep.subr.bf16.mxu0 %v8082_v32 }
 0x341   : > { %1871 = vmatpush1.bf16.msra.mxu0 %v8080_v55 }
 0x342   : > { %1872 = vmatprep.subr.bf16.mxu0 %v8085_v31 }
 0x345   : > { %1873 = vmatpush1.bf16.msra.mxu0 %v8083_v36 }
 0x346   : > { %1874 = vmatprep.subr.bf16.mxu0 %v8088_v38 }
 0x349   : > { %1875 = vmatpush1.bf16.msra.mxu0 %v8086_v41 }
 0x34a   : > { %1876 = vmatprep.subr.bf16.mxu0 %v8091_v7 }
 0x34d   : > { %1877 = vmatpush1.bf16.msra.mxu0 %v8089_v45 }
 0x34e   : > { %1878 = vmatprep.subr.bf16.mxu0 %v8094_v46 }
 0x351   : > { %1879 = vmatpush1.bf16.msra.mxu0 %v8092_v61 }
 0x352   : > { %1880 = vmatprep.subr.bf16.mxu0 %v8097_v49  ;;  %v8118_v49 = vld [vmem:[%s11061_s3 + $0x18] sm:$0xff]  }
 0x355   : > { %1881 = vmatpush1.bf16.msra.mxu0 %v8095_v35  ;;  %v8122_v35 = vld [vmem:[%s11061_s3 + $0x8] sm:$0xff]  }
 0x356   : > { %1882 = vmatprep.subr.bf16.mxu0 %v8100_v34 }
 0x359   : > { %1883 = vmatpush1.bf16.msra.mxu0 %v8098_v50 }
 0x35a   : > { %1884 = vmatprep.subr.bf16.mxu0 %v8103_v5  ;;  %v8119_v5 = vld [vmem:[%s11061_s3 + $0x28] sm:$0xff]  }
 0x35d   : > { %1885 = vmatpush1.bf16.msra.mxu0 %v8101_v16 }
 0x35e   : > { %1886 = vmatprep.subr.bf16.mxu0 %v8106_v56 }
 0x361   : > { %1887 = vmatpush1.bf16.msra.mxu0 %v8104_v39 }
 0x362   : > { %1897 = vmatprep.subr.bf16.mxu0 %v8109_v58 }
 0x364   : > { %1889 = vmatmul.mubr.bf16.vlgmr.msra.gmra.mrb[0].mxu0 %v1151_v63 }
 0x365   : > { %1898 = vmatpush1.bf16.msra.mxu0 %v8107_v30  ;;  %1929 = vmatprep.mubr.bf16.mxu0 %v8594_v2 }
 0x366   : > { %1899 = vmatprep.subr.bf16.mxu0 %v8112_v21  ;;  %v8123_v21 = vld [vmem:[%s11061_s3 + $0x40] sm:$0xff]  }
 0x369   : > { %1900 = vmatpush1.bf16.msra.mxu0 %v8110_v52 }
 0x36a   : > { %1901 = vmatprep.subr.bf16.mxu0 %v1772_v59 }
 0x36d   : > { %1902 = vmatpush1.bf16.msra.mxu0 %v1769_v24 }
 0x370   : > { %6903 = vmatmul.mubr.msk.bf16.vlgmr.msra.gmra.mrb[0].mxu0 %vm1760_vm6, %v1153_v3 }
 0x371   : > { %2000 = vmatprep.mubr.bf16.mxu0 %v8594_v2 }
 0x443   : > { %v1931_v37 = vpop.f32.mrb[0].mxu0 }
 0x444   : > { %v1938_v26 = vpack.c.bf16 %v1931_v37, %v1931_v37  ;;  %v1933_v18 = vpop.f32.mrb[1].mxu0 }
 0x445   : > { %v1939_v23 = vpack.c.bf16 %v1933_v18, %v1933_v18  ;;  %v1935_v44 = vpop.f32.mrb[2].mxu0 }
 0x446   : > { %2076 = vrot.lane.b32.xlu1 %v1938_v26, %s11091_s23  ;;  %v1936_v13 = vpop.f32.mrb[3].mxu0  ;;  %v2020_v27 = vsel %vm1765_vm5, %v1938_v26, 0 }
 0x447   : > { %2078 = vrot.lane.b32.xlu0 %v1939_v23, %s11091_s23  ;;  %6910 = vmatprep.subr.msk.bf16.mxu1 %vm1765_vm5, %v1939_v23 }
 0x448   : > { %2026 = vmatpush1.bf16.msra.mxu1 %v2020_v27 }
 0x44a   : > { %2149 = vrot.lane.b32.xlu1 %v1938_v26, %s8600_s29 }
 0x44b   : > { %2151 = vrot.lane.b32.xlu0 %v1939_v23, %s8600_s29  ;;  %6911 = vmatmul.mubr.msk.bf16.vlgmr.msra.gmra.mrb[0].mxu1 %vm1958_vm7, %v8115_v51 }
 0x44c   : > { %2123 = vmatprep.mubr.bf16.mxu1 %v8594_v2 }
 0x44e   : > { %2212 = vrot.lane.b32.xlu1 %v1938_v26, %s8601_s26 }
 0x44f   : > { %2214 = vrot.lane.b32.xlu0 %v1939_v23, %s8601_s26 }
 0x452   : > { %2278 = vrot.lane.b32.xlu1 %v1938_v26, %s8602_s24 }
 0x453   : > { %2280 = vrot.lane.b32.xlu0 %v1939_v23, %s8602_s24 }
 0x456   : > { %2351 = vrot.lane.b32.xlu1 %v1938_v26, %s8603_s27 }
 0x457   : > { %2353 = vrot.lane.b32.xlu0 %v1939_v23, %s8603_s27  ;;  %s8609_s27 = smov 118  }
 0x45a   : > { %2414 = vrot.lane.b32.xlu1 %v1938_v26, %s8604_s30 }
 0x45b   : > { %2416 = vrot.lane.b32.xlu0 %v1939_v23, %s8604_s30  ;;  %s8610_s30 = smov 109  }
 0x45e   : > { %1952 = vrot.lane.b32.xlu1 %v1938_v26, %s8595_s20 }
 0x45f   : > { %1954 = vrot.lane.b32.xlu0 %v1939_v23, %s8595_s20 }
 0x462   : > { %2480 = vrot.lane.b32.xlu1 %v1938_v26, %s8605_s18 }
 0x463   : > { %2482 = vrot.lane.b32.xlu0 %v1939_v23, %s8605_s18  ;;  %s8611_s18 = smov 117  }
 0x466   : > { %2554 = vperm.xlu1 %7912, %v2550_v12  }
 0x467   : > { %2559 = vperm.xlu0 %7911, %v2551_v54  }
 0x4b8   : > { %v2077_v43 = vpop.permute.xlu1 %2076 }
 0x4b9   : > { %v2079_v10 = vpop.permute.xlu0 %2078 }
 0x4ba   : > { %v2081_v17 = vsel %vm631_vm1, %v2077_v43, %v2079_v10  ;;  %6915 = vmatprep.subr.msk.bf16.mxu1 %vm1765_vm5, %v2079_v10  ;;  %vm8607_vm1 = vmmov 0  }
 0x4bb   : > { %v2086_v25 = vsel %vm1765_vm5, %v2081_v17, 0  ;;  %v8124_v17 = vld [vmem:[%s11066_s8] sm:$0xff]  }
 0x4bc   : > { %v2150_v60 = vpop.permute.xlu1 %2149  ;;  %2092 = vmatpush1.bf16.msra.mxu1 %v2086_v25 }
 0x4bd   : > { %v2152_v47 = vpop.permute.xlu0 %2151 }
 0x4be   : > { %v2154_v40 = vsel %vm2153_vm8, %v2150_v60, %v2152_v47  ;;  %6922 = vmatprep.subr.msk.bf16.mxu1 %vm1765_vm5, %v2152_v47  ;;  %v8125_v47 = vld [vmem:[%s11066_s8 + $0x8] sm:$0xff]  }
 0x4bf   : > { %v2159_v28 = vsel %vm1765_vm5, %v2154_v40, 0  ;;  %6916 = vmatmul.mubr.msk.bf16.vlgmr.msra.gmra.mrb[0].mxu1 %vm1958_vm7, %v8116_v8 }
 0x4c0   : > { %v2213_v6 = vpop.permute.xlu1 %2212  ;;  %2165 = vmatpush1.bf16.msra.mxu1 %v2159_v28  ;;  %2196 = vmatprep.mubr.bf16.mxu1 %v8594_v2  ;;  %v8126_v28 = vld [vmem:[%s11066_s8 + $0x10] sm:$0xff]  }
 0x4c1   : > { %v2215_v20 = vpop.permute.xlu0 %2214 }
 0x4c2   : > { %6925 = vmatprep.subr.msk.bf16.mxu1 %vm1765_vm5, %v2215_v20  ;;  %v2217_v32 = vsel %vm2216_vm9, %v2213_v6, %v2215_v20  ;;  %v8127_v6 = vld [vmem:[%s11066_s8 + $0x18] sm:$0xff]   ;;  %v8128_v20 = vld [vmem:[%s11066_s8 + $0x20] sm:$0xff]  }
 0x4c3   : > { %v2222_v36 = vsel %vm1765_vm5, %v2217_v32, 0  ;;  %v8132_v32 = vld [vmem:[%s11066_s8 + $0x40] sm:$0xff]  }
 0x4c4   : > { %v2279_v33 = vpop.permute.xlu1 %2278 }
 0x4c5   : > { %v2281_v29 = vpop.permute.xlu0 %2280 }
 0x4c6   : > { %v2283_v34 = vsel %vm2282_vm10, %v2279_v33, %v2281_v29  ;;  %v8129_v33 = vld [vmem:[%s11066_s8 + $0x28] sm:$0xff]  }
 0x4c7   : > { %v2288_v50 = vsel %vm1765_vm5, %v2283_v34, 0 }
 0x4c8   : > { %v2352_v55 = vpop.permute.xlu1 %2351 }
 0x4c9   : > { %v2354_v31 = vpop.permute.xlu0 %2353 }
 0x4ca   : > { %v2356_v16 = vsel %vm2355_vm11, %v2352_v55, %v2354_v31  ;;  %v8133_v55 = vld [vmem:[%s11066_s8 + $0x48] sm:$0xff]  }
 0x4cb   : > { %6923 = vmatmul.mubr.msk.bf16.vlgmr.msra.gmra.mrb[0].mxu1 %vm1958_vm7, %v8117_v9  ;;  %v2361_v56 = vsel %vm1765_vm5, %v2356_v16, 0  ;;  %v8131_v9 = vld [vmem:[%s11066_s8 + $0x38] sm:$0xff]  }
 0x4cc   : > { %2228 = vmatpush1.bf16.msra.mxu1 %v2222_v36  ;;  %v2415_v38 = vpop.permute.xlu1 %2414  ;;  %2259 = vmatprep.mubr.bf16.mxu1 %v8594_v2  ;;  %v2726_v36 = vsel %vm2724_vm14, 4294967295, %v8599_v42 }
 0x4cd   : > { %6930 = vmatprep.subr.msk.bf16.mxu1 %vm1765_vm5, %v2281_v29  ;;  %v2417_v41 = vpop.permute.xlu0 %2416  ;;  %v8130_v29 = vld [vmem:[%s11066_s8 + $0x30] sm:$0xff]  }
 0x4ce   : > { %v2419_v39 = vsel %vm2418_vm12, %v2415_v38, %v2417_v41  ;;  %v8135_v38 = vld [vmem:[%s11066_s8 + $0x58] sm:$0xff]  }
 0x4cf   : > { %v2424_v57 = vsel %vm1765_vm5, %v2419_v39, 0 }
 0x4d0   : > { %v1953_v7 = vpop.permute.xlu1 %1952 }
 0x4d1   : > { %v1955_v45 = vpop.permute.xlu0 %1954 }
 0x4d2   : > { %v1957_v46 = vsel %vm575_vm0, %v1953_v7, %v1955_v45  ;;  %6907 = vmatprep.subr.msk.bf16.mxu0 %vm1765_vm5, %v1955_v45  ;;  %v8136_v7 = vld [vmem:[%s11066_s8 + $0x60] sm:$0x7f]  }
 0x4d3   : > { %v1963_v61 = vsel %vm1765_vm5, %v1957_v46, 0 }
 0x4d4   : > { %1969 = vmatpush1.bf16.msra.mxu0 %v1963_v61  ;;  %v2481_v48 = vpop.permute.xlu1 %2480 }
 0x4d5   : > { %v2483_v58 = vpop.permute.xlu0 %2482 }
 0x4d6   : > { %v2485_v30 = vsel %vm2484_vm13, %v2481_v48, %v2483_v58 }
 0x4d7   : > { %6926 = vmatmul.mubr.msk.bf16.vlgmr.msra.gmra.mrb[0].mxu1 %vm1958_vm7, %v8118_v49  ;;  %6908 = vmatmul.mubr.msk.bf16.vlgmr.msra.gmra.mrb[4].mxu0 %vm1958_vm7, %v8122_v35  ;;  %v2490_v63 = vsel %vm1765_vm5, %v2485_v30, 0 }
 0x4d8   : > { %2294 = vmatpush1.bf16.msra.mxu1 %v2288_v50  ;;  %2325 = vmatprep.mubr.bf16.mxu1 %v8594_v2 }
 0x4d9   : > { %6937 = vmatprep.subr.msk.bf16.mxu1 %vm1765_vm5, %v2354_v31  ;;  %3494 = vmatprep.mubr.bf16.mxu0 %v8594_v2  ;;  %v8134_v31 = vld [vmem:[%s11066_s8 + $0x50] sm:$0xff]  }
 0x4e3   : > { %6931 = vmatmul.mubr.msk.bf16.vlgmr.msra.gmra.mrb[0].mxu1 %vm1958_vm7, %v8119_v5 }
 0x4e4   : > { %2367 = vmatpush1.bf16.msra.mxu1 %v2361_v56  ;;  %2398 = vmatprep.mubr.bf16.mxu1 %v8594_v2 }
 0x4e5   : > { %6940 = vmatprep.subr.msk.bf16.mxu1 %vm1765_vm5, %v2417_v41  ;;  %v2555_v3 = vpop.permute.xlu1 %2554  ;;  %v9699_v41 = vsel %vm2725_vm15, %v2726_v36, 0  ;;  %v8148_v36 = vld [vmem:[%s11067_s9 + $0x84] ss:$16 sps:$4 sm:$0xff]  }
 0x4e6   : > { %v2560_v13 = vpop.permute.xlu0 %2559  ;;  %v2729_v49 = vand.u32 %v8136_v7, %v9699_v41  ;;  %v8151_v7 = vld [vmem:[%s11067_s9 + $0x8c] ss:$16 sps:$4 sm:$0xff]  }
 0x4e7   : > { %3462 = vmatprep.subr.bf16.mxu0 %v8151_v7 }
 0x4ef   : > { %6938 = vmatmul.mubr.msk.bf16.vlgmr.msra.gmra.mrb[0].mxu1 %vm1958_vm7, %v8120_v11 }
 0x4f0   : > { %2430 = vmatpush1.bf16.msra.mxu1 %v2424_v57  ;;  %2461 = vmatprep.mubr.bf16.mxu1 %v8594_v2 }
 0x4f1   : > { %6945 = vmatprep.subr.msk.bf16.mxu1 %vm1765_vm5, %v2483_v58 }
 0x4fb   : > { %6941 = vmatmul.mubr.msk.bf16.vlgmr.msra.gmra.mrb[0].mxu1 %vm1958_vm7, %v8121_v62 }
 0x4fc   : > { %2496 = vmatpush1.bf16.msra.mxu1 %v2490_v63  ;;  %2527 = vmatprep.mubr.bf16.mxu1 %v8594_v2 }
 0x4fd   : > { %2731 = vmatprep.subr.bf16.mxu1 %v8594_v2 }
 0x507   : > { %6946 = vmatmul.mubr.msk.bf16.vlgmr.msra.gmra.mrb[0].mxu1 %vm1958_vm7, %v8123_v21 }
 0x508   : > { %2732 = vmatpush1.bf16.msra.mxu1 %v8124_v17 }
 0x509   : > { %2733 = vmatprep.subr.bf16.mxu1 %v8594_v2 }
 0x50c   : > { %2734 = vmatpush1.bf16.msra.mxu1 %v8125_v47 }
 0x50d   : > { %2735 = vmatprep.subr.bf16.mxu1 %v8594_v2 }
 0x510   : > { %2736 = vmatpush1.bf16.msra.mxu1 %v8126_v28 }
 0x511   : > { %2737 = vmatprep.subr.bf16.mxu1 %v8594_v2 }
 0x514   : > { %2738 = vmatpush1.bf16.msra.mxu1 %v8127_v6  ;;  %v8142_v6 = vld [vmem:[%s11063_s5 + $0x28] sm:$0xff]  }
 0x515   : > { %2739 = vmatprep.subr.bf16.mxu1 %v8594_v2 }
 0x518   : > { %2740 = vmatpush1.bf16.msra.mxu1 %v8128_v20 }
 0x519   : > { %2741 = vmatprep.subr.bf16.mxu1 %v8594_v2 }
 0x51c   : > { %2742 = vmatpush1.bf16.msra.mxu1 %v8129_v33  ;;  %v8143_v33 = vld [vmem:[%s11063_s5 + $0x38] sm:$0xff]  }
 0x51d   : > { %2743 = vmatprep.subr.bf16.mxu1 %v8594_v2 }
 0x520   : > { %2744 = vmatpush1.bf16.msra.mxu1 %v8130_v29 }
 0x521   : > { %2745 = vmatprep.subr.bf16.mxu1 %v8594_v2 }
 0x524   : > { %2746 = vmatpush1.bf16.msra.mxu1 %v8131_v9  ;;  %v8144_v9 = vld [vmem:[%s11063_s5 + $0x30] sm:$0xff]  }
 0x525   : > { %2747 = vmatprep.subr.bf16.mxu1 %v8594_v2 }
 0x528   : > { %2748 = vmatpush1.bf16.msra.mxu1 %v8132_v32 }
 0x529   : > { %2749 = vmatprep.subr.bf16.mxu1 %v8594_v2 }
 0x52c   : > { %2750 = vmatpush1.bf16.msra.mxu1 %v8133_v55  ;;  %v8145_v55 = vld [vmem:[%s11063_s5 + $0x40] sm:$0xff]  }
 0x52d   : > { %2751 = vmatprep.subr.bf16.mxu1 %v8594_v2 }
 0x530   : > { %2752 = vmatpush1.bf16.msra.mxu1 %v8134_v31  ;;  %v8146_v31 = vld [vmem:[%s11067_s9 + $0x80] ss:$16 sps:$4 sm:$0xff]  }
 0x531   : > { %2753 = vmatprep.subr.bf16.mxu1 %v8594_v2 }
 0x534   : > { %2754 = vmatpush1.bf16.msra.mxu1 %v8135_v38  ;;  %v8149_v38 = vld [vmem:[%s11067_s9 + $0x88] ss:$16 sps:$4 sm:$0xff]  }
 0x535   : > { %2755 = vmatprep.subr.bf16.mxu1 %v8594_v2  ;;  %3463 = vmatpush1.bf16.msra.mxu0 %v8149_v38 }
 0x538   : > { %2756 = vmatpush1.bf16.msra.mxu1 %v2729_v49  ;;  %v8155_v49 = vld [vmem:[%s11067_s9 + $0xa8] ss:$16 sps:$4 sm:$0xff]  }
 0x5aa   : > { %v2002_v1 = vpop.f32.mrb[4].mxu0 }
 0x5ab   : > { %v2004_v0 = vpop.f32.mrb[5].mxu0 }
 0x5ac   : > { %v2006_v52 = vpop.f32.mrb[6].mxu0 }
 0x5ad   : > { %v2008_v53 = vpop.f32.mrb[7].mxu0 }
 0x5da   : > { %v2529_v59 = vpop.f32.mrb[0].mxu1 }
 0x5db   : > { %v7808_v24 = vadd.f32 %v2529_v59, %v2002_v1  ;;  %v2531_v4 = vpop.f32.mrb[1].mxu1 }
 0x5dc   : > { %v7809_v37 = vadd.f32 %v2531_v4, %v2004_v0  ;;  %v2533_v26 = vpop.f32.mrb[2].mxu1 }
 0x5dd   : > { %v9643_v18 = vadd.f32 %v7808_v24, %v2555_v3  ;;  %v7810_v23 = vadd.f32 %v2533_v26, %v2006_v52  ;;  %v2535_v44 = vpop.f32.mrb[3].mxu1  ;;  %v8606_v26 = vmov 0.0  }
 0x5de   : > { %v2563_v27 = vadd.f32 %v7809_v37, %v2555_v3  ;;  %v7811_v51 = vadd.f32 %v2535_v44, %v2008_v53  ;;  %7631 = vmatprep.subr.bf16.mxu1 %v8606_v26 }
 0x5df   : > { %v2566_v12 = vmax.f32 %v9643_v18, 0.0  ;;  %v9646_v54 = vadd.f32 %v7810_v23, %v2560_v13 }
 0x5e0   : > { %v2567_v43 = vmax.f32 %v2563_v27, 0.0  ;;  %v2565_v10 = vadd.f32 %v7811_v51, %v2560_v13  ;;  %v3277_v51 = vld [vmem:[%s11064_s6 + $0x8] sm:$0xff] }
 0x5e1   : > { %v2568_v25 = vmax.f32 %v9646_v54, 0.0 }
 0x5e2   : > { %v2569_v8 = vmax.f32 %v2565_v10, 0.0  ;;  %v7943_v60 = vpack.i.bf16 %v2567_v43, %v2566_v12  ;;  %v8138_v10 = vld [vmem:[%s11063_s5] sm:$0xff]  }
 0x5e4   : > { %7944 = vrot.lane.b32.xlu1 %v7943_v60, %s8595_s20  ;;  %v7948_v40 = vpack.i.bf16 %v2569_v8, %v2568_v25  ;;  %v8140_v60 = vld [vmem:[%s11063_s5 + $0x20] sm:$0xff]  }
 0x5e6   : > { %7949 = vrot.lane.b32.xlu0 %v7948_v40, %s8595_s20  ;;  %v8141_v40 = vld [vmem:[%s11063_s5 + $0x18] sm:$0xff]  }
 0x656   : > { %v7945_v45 = vpop.permute.xlu1 %7944 }
 0x657   : > { %v7947_v46 = vunpack.i.h.bf16 %v7945_v45  ;;  %v7946_v61 = vunpack.i.l.bf16 %v7945_v45  ;;  %v8154_v45 = vld [vmem:[%s11067_s9 + $0xa4] ss:$16 sps:$4 sm:$0xff]  }
 0x658   : > { %v7950_v35 = vpop.permute.xlu0 %7949 }
 0x659   : > { %v2589_v42 = vmax.f32 %v2567_v43, %v7947_v46  ;;  %v2582_v34 = vsel %vm575_vm0, %v7946_v61, %v7947_v46  ;;  %v7952_v50 = vunpack.i.h.bf16 %v7950_v35  ;;  %v7951_v5 = vunpack.i.l.bf16 %v7950_v35  ;;  %v8137_v43 = vld [vmem:[%s11063_s5 + $0x8] sm:$0xff]   ;;  %v8152_v61 = vld [vmem:[%s11067_s9 + $0xa0] ss:$16 sps:$4 sm:$0xff]   ;;  %v8160_v35 = vld [vmem:[%s11067_s9 + $0xc4] ss:$16 sps:$4 sm:$0xff]  }
 0x65a   : > { %v2588_v16 = vmax.f32 %v2566_v12, %v2582_v34  ;;  %v3276_v12 = vld [vmem:[%s11064_s6] sm:$0xff]  ;;  %v8157_v46 = vld [vmem:[%s11067_s9 + $0xac] ss:$16 sps:$4 sm:$0xff]  }
 0x65b   : > { %v2591_v56 = vmax.f32 %v2569_v8, %v7952_v50  ;;  %v2583_v11 = vsel %vm575_vm0, %v7951_v5, %v7952_v50  ;;  %vm2720_vm0 = vcmask 629760   ;;  %3464 = vmatprep.subr.bf16.mxu0 %v8157_v46  ;;  %v8158_v34 = vld [vmem:[%s11067_s9 + $0xc0] ss:$16 sps:$4 sm:$0xff]   ;;  %v8161_v50 = vld [vmem:[%s11067_s9 + $0xc8] ss:$16 sps:$4 sm:$0xff]  }
 0x65c   : > { %v2590_v39 = vmax.f32 %v2568_v25, %v2583_v11  ;;  %v7953_v57 = vpack.i.bf16 %v2589_v42, %v2588_v16  ;;  %v8139_v25 = vld [vmem:[%s11063_s5 + $0x10] sm:$0xff]   ;;  %3465 = vmatpush1.bf16.msra.mxu0 %v8155_v49  ;;  %v8167_v11 = vld [vmem:[%s11067_s9 + $0xe8] ss:$16 sps:$4 sm:$0x7f]  }
 0x65d   : > { %v8166_v5 = vld [vmem:[%s11067_s9 + $0xe4] ss:$16 sps:$4 sm:$0x7f]  }
 0x65e   : > { %v7958_v58 = vpack.i.bf16 %v2591_v56, %v2590_v39  ;;  %7954 = vrot.lane.b32.xlu1 %v7953_v57, %s8601_s26 }
 0x660   : > { %7959 = vrot.lane.b32.xlu0 %v7958_v58, %s8601_s26  ;;  %s8608_s26 = smov 119  }
 0x6d0   : > { %v7955_v48 = vpop.permute.xlu1 %7954 }
 0x6d1   : > { %v7957_v62 = vunpack.i.h.bf16 %v7955_v48  ;;  %v7956_v30 = vunpack.i.l.bf16 %v7955_v48  ;;  %v3416_v48 = vand.u32 %v8167_v11, %v9699_v41 }
 0x6d2   : > { %v7960_v63 = vpop.permute.xlu0 %7959 }
 0x6d3   : > { %v2605_v21 = vsel %vm2216_vm9, %v7956_v30, %v7957_v62  ;;  %v7962_v1 = vunpack.i.h.bf16 %v7960_v63  ;;  %v7961_v0 = vunpack.i.l.bf16 %v7960_v63  ;;  %v2612_v52 = vmax.f32 %v2589_v42, %v7957_v62  ;;  %v8163_v42 = vld [vmem:[%s11067_s9 + $0xcc] ss:$16 sps:$4 sm:$0xff]   ;;  %v8172_v62 = vld [vmem:[%s11067_s9 + $0x4] ss:$16 sps:$4 sm:$0xff]  }
 0x6d4   : > { %v2611_v24 = vmax.f32 %v2588_v16, %v2605_v21  ;;  %3466 = vmatprep.subr.bf16.mxu0 %v8163_v42  ;;  %v8169_v16 = vld [vmem:[%s11067_s9 + $0xec] ss:$16 sps:$4 sm:$0x7f]  }
 0x6d5   : > { %v2614_v53 = vmax.f32 %v2591_v56, %v7962_v1  ;;  %v2606_v59 = vsel %vm2216_vm9, %v7961_v0, %v7962_v1  ;;  %3467 = vmatpush1.bf16.msra.mxu0 %v8161_v50  ;;  %v8164_v56 = vld [vmem:[%s11067_s9 + $0xe0] ss:$16 sps:$4 sm:$0x7f]   ;;  %v3419_v57 = vand.u32 %v8169_v16, %v9699_v41  ;;  %v8175_v30 = vld [vmem:[%s11067_s9 + $0xc] ss:$16 sps:$4 sm:$0xff]  }
 0x6d6   : > { %v2613_v4 = vmax.f32 %v2590_v39, %v2606_v59  ;;  %v3413_v39 = vand.u32 %v8166_v5, %v9699_v41  ;;  %v3410_v58 = vand.u32 %v8164_v56, %v9699_v41 }
 0x6d7   : > { %v2616_v3 = vpack.c.bf16 %v2614_v53, %v2612_v52  ;;  %3468 = vmatprep.subr.bf16.mxu0 %v3419_v57 }
 0x6d8   : > { %v2615_v37 = vpack.c.bf16 %v2613_v4, %v2611_v24 }
 0x6d9   : > { %6960 = vmatprep.mubr.msk.bf16.mxu1 %vm2720_vm0, %v2616_v3  ;;  %3469 = vmatpush1.bf16.msra.mxu0 %v3416_v48 }
 0x6da   : > { %2764 = vmatmul.mubr.bf16.vlgmr.msra.gmra.mrb[4].mxu1 %v2615_v37  ;;  %3634 = vmatprep.subr.bf16.mxu0 %v8175_v30  ;;  %v8170_v30 = vld [vmem:[%s11067_s9] ss:$16 sps:$4 sm:$0xff]  }
 0x6db   : > { %7633 = vmatprep.mubr.msk.bf16.mxu1 %vm8607_vm1, %v8606_v26 }
 0x7ad   : > { %v2765_v18 = vpop.f32.mrb[4].mxu1 }
 0x7ae   : > { %v2767_v23 = vpop.f32.mrb[5].mxu1 }
 0x7af   : > { %v2768_v44 = vpop.f32.mrb[6].mxu1 }
 0x7b0   : > { %v2772_v13 = vpack.c.bf16 %v2768_v44, %v2765_v18  ;;  %v2770_v27 = vpop.f32.mrb[7].mxu1 }
 0x7b2   : > { %2889 = vrot.lane.b32.xlu0 %v2772_v13, %s11091_s23  ;;  %2784 = vrot.lane.b32.xlu1 %v2772_v13, %s8595_s20 }
 0x7b6   : > { %3001 = vrot.lane.b32.xlu0 %v2772_v13, %s8608_s26  ;;  %2949 = vrot.lane.b32.xlu1 %v2772_v13, %s8609_s27  ;;  %s483_s26 = sand.u32 1, %s8584_s19  }
 0x7b7   : > { %s6721_s23 = scalar_lea.sflag [#allocation3], %s483_s26 }
 0x7ba   : > { %3116 = vrot.lane.b32.xlu0 %v2772_v13, %s8610_s30  ;;  %3056 = vrot.lane.b32.xlu1 %v2772_v13, %s8611_s18  ;;  %s7523_s30 = sshll.u32 %s8716_s22, 4  ;;  %s484_s18 = scalar_lea.vmem [#allocation2], %s483_s26 }
 0x7bb   : > { %s11016_s29 = scalar_lea.hbm %s11073_s15, %s7523_s30  ;;  %s8614_s22 = smov [#allocation2]  }
 0x7be   : > { %3223 = vrot.lane.b32.xlu0 %v2772_v13, %s8612_s17  ;;  %3168 = vrot.lane.b32.xlu1 %v2772_v13, %s8602_s24  ;;  %s6733_s17 = sshll.u32 %s484_s18, 4  ;;  %s8534_s24 = sshll.u32 %s8614_s22, 4  ;;  %s11018_s17 = int_to_ptr.vmem [resolvable:$true] %s6733_s17  ;;  %s8535_s24 = int_to_ptr.vmem [resolvable:$false] %s8534_s24 }
 0x7bf   : > { %s8530_s20 = scalar_lea.vmem %s11018_s17, 16  ;;  %s8536_s27 = scalar_lea.vmem %s8535_s24, 32 }
 0x7c0   : > { %p8531_p11 = scmp.ne.s32.totalorder %s11018_s17, %s8530_s20  ;;  %p8537_p0 = scmp.lt.s32.totalorder %s11018_s17, %s8535_s24 }
 0x7c1   : > { %p8538_p1 = scmp.lt.s32.totalorder %s8536_s27, %s8530_s20 }
 0x7c2   : > { %3285 = vperm.xlu0 %7911, %v3277_v51   ;;  %3280 = vperm.xlu1 %7912, %v3276_v12   ;;  %p8532_p12 = pnand %p8531_p11, %p8733_p5 }
 0x7c3   : > { %p8539_p2 = por %p8538_p1, %p8537_p0 }
 0x7c4   : > { %p8533_p13 = pneg %p8532_p12 }
 0x7c6   : > { %p8540_p3 = pnand %p8539_p2, %p8533_p13 }
 0x824   : > { %v2785_v54 = vpop.permute.xlu1 %2784  ;;  %v2890_v17 = vpop.permute.xlu0 %2889 }
 0x825   : > { %7632 = vmatpush3.bf16.msra.mxu1 %v2785_v54 }
 0x826   : > { %7637 = vmatprep.subr.bf16.mxu1 %v8606_v26 }
 0x828   : > { %7634 = vmatmul.mubr.msk.bf16.vlgmr.msra.gmra.mrb[8].mxu1 %vm2787_vm2, %v8137_v43  ;;  %v2950_v8 = vpop.permute.xlu1 %2949  ;;  %v3002_v47 = vpop.permute.xlu0 %3001 }
 0x829   : > { %7638 = vmatpush3.bf16.msra.mxu1 %v2772_v13  ;;  %7639 = vmatprep.mubr.msk.bf16.mxu1 %vm8607_vm1, %v8606_v26 }
 0x82a   : > { %7643 = vmatprep.subr.bf16.mxu1 %v8606_v26 }
 0x82c   : > { %v3057_v28 = vpop.permute.xlu1 %3056  ;;  %v3117_v20 = vpop.permute.xlu0 %3116 }
 0x830   : > { %7640 = vmatmul.mubr.msk.bf16.vlgmr.msra.gmra.mrb[12].mxu1 %vm2787_vm2, %v8138_v10  ;;  %v3169_v29 = vpop.permute.xlu1 %3168  ;;  %v3224_v32 = vpop.permute.xlu0 %3223 }
 0x831   : > { %7644 = vmatpush3.bf16.msra.mxu1 %v2890_v17  ;;  %7645 = vmatprep.mubr.msk.bf16.mxu1 %vm8607_vm1, %v8606_v26 }
 0x832   : > { %7649 = vmatprep.subr.bf16.mxu1 %v8606_v26 }
 0x838   : > { %7646 = vmatmul.mubr.msk.bf16.vlgmr.msra.gmra.mrb[16].mxu1 %vm2787_vm2, %v8139_v25 }
 0x839   : > { %7650 = vmatpush3.bf16.msra.mxu1 %v2950_v8  ;;  %7651 = vmatprep.mubr.msk.bf16.mxu1 %vm8607_vm1, %v8606_v26 }
 0x83a   : > { %7655 = vmatprep.subr.bf16.mxu1 %v8606_v26 }
 0x840   : > { %7652 = vmatmul.mubr.msk.bf16.vlgmr.msra.gmra.mrb[20].mxu1 %vm2787_vm2, %v8140_v60 }
 0x841   : > { %7656 = vmatpush3.bf16.msra.mxu1 %v3002_v47  ;;  %7657 = vmatprep.mubr.msk.bf16.mxu1 %vm8607_vm1, %v8606_v26 }
 0x842   : > { %7661 = vmatprep.subr.bf16.mxu1 %v8606_v26 }
 0x848   : > { %7658 = vmatmul.mubr.msk.bf16.vlgmr.msra.gmra.mrb[24].mxu1 %vm2787_vm2, %v8141_v40 }
 0x849   : > { %7662 = vmatpush3.bf16.msra.mxu1 %v3057_v28  ;;  %7663 = vmatprep.mubr.msk.bf16.mxu1 %vm8607_vm1, %v8606_v26 }
 0x84a   : > { %7667 = vmatprep.subr.bf16.mxu1 %v8606_v26 }
 0x850   : > { %7664 = vmatmul.mubr.msk.bf16.vlgmr.msra.gmra.mrb[28].mxu1 %vm2787_vm2, %v8142_v6 }
 0x851   : > { %7668 = vmatpush3.bf16.msra.mxu1 %v3117_v20  ;;  %7669 = vmatprep.mubr.msk.bf16.mxu1 %vm8607_vm1, %v8606_v26 }
 0x852   : > { %7673 = vmatprep.subr.bf16.mxu1 %v8606_v26 }
 0x858   : > { %7670 = vmatmul.mubr.msk.bf16.vlgmr.msra.gmra.mrb[32].mxu1 %vm2787_vm2, %v8143_v33 }
 0x859   : > { %7674 = vmatpush3.bf16.msra.mxu1 %v3169_v29  ;;  %7675 = vmatprep.mubr.msk.bf16.mxu1 %vm8607_vm1, %v8606_v26 }
 0x85a   : > { %7679 = vmatprep.subr.bf16.mxu1 %v8606_v26 }
 0x860   : > { %7676 = vmatmul.mubr.msk.bf16.vlgmr.msra.gmra.mrb[36].mxu1 %vm2787_vm2, %v8144_v9 }
 0x861   : > { %7680 = vmatpush3.bf16.msra.mxu1 %v3224_v32  ;;  %7681 = vmatprep.mubr.msk.bf16.mxu1 %vm8607_vm1, %v8606_v26 }
 0x862   : > { %3421 = vmatprep.subr.bf16.mxu1 %v8148_v36 }
 0x868   : > { %7682 = vmatmul.mubr.msk.bf16.vlgmr.msra.gmra.mrb[40].mxu1 %vm2787_vm2, %v8145_v55 }
 0x869   : > { %3453 = vmatprep.mubr.bf16.mxu1 %v8594_v2  ;;  %3422 = vmatpush1.bf16.msra.mxu1 %v8146_v31 }
 0x86a   : > { %3423 = vmatprep.subr.bf16.mxu1 %v8154_v45 }
 0x86d   : > { %3424 = vmatpush1.bf16.msra.mxu1 %v8152_v61 }
 0x86e   : > { %3425 = vmatprep.subr.bf16.mxu1 %v8160_v35 }
 0x871   : > { %3426 = vmatpush1.bf16.msra.mxu1 %v8158_v34 }
 0x872   : > { %3427 = vmatprep.subr.bf16.mxu1 %v3413_v39  ;;  %v3281_v39 = vpop.permute.xlu1 %3280 }
 0x875   : > { %3428 = vmatpush1.bf16.msra.mxu1 %v3410_v58 }
 0x876   : > { %3593 = vmatprep.subr.bf16.mxu1 %v8172_v62 }
 0x8fb   : > { %v2825_v63 = vpop.f32.mrb[8].mxu1 }
 0x8fc   : > { %v7635_v21 = vpop.f32.mrb[9].mxu1 }
 0x8fd   : > { %v2828_v1 = vpop.f32.mrb[10].mxu1 }
 0x8fe   : > { %v7636_v0 = vpop.f32.mrb[11].mxu1 }
 0x8ff   : > { %v8181_v0 = vld [vmem:[%s11067_s9 + $0x2c] ss:$16 sps:$4 sm:$0xff]  }
 0x903   : > { %v2874_v52 = vpop.f32.mrb[12].mxu1 }
 0x904   : > { %v2875_v53 = vadd.f32 %v2874_v52, %v2825_v63  ;;  %v7641_v59 = vpop.f32.mrb[13].mxu1  ;;  %v8173_v63 = vld [vmem:[%s11067_s9 + $0x8] ss:$16 sps:$4 sm:$0xff]   ;;  %v8176_v52 = vld [vmem:[%s11067_s9 + $0x20] ss:$16 sps:$4 sm:$0xff]  }
 0x905   : > { %v2877_v24 = vpop.f32.mrb[14].mxu1  ;;  %v8184_v59 = vld [vmem:[%s11067_s9 + $0x44] ss:$16 sps:$4 sm:$0xff]  }
 0x906   : > { %v2878_v4 = vadd.f32 %v2877_v24, %v2828_v1  ;;  %v7642_v3 = vpop.f32.mrb[15].mxu1  ;;  %v8178_v1 = vld [vmem:[%s11067_s9 + $0x24] ss:$16 sps:$4 sm:$0xff]   ;;  %v8187_v24 = vld [vmem:[%s11067_s9 + $0x4c] ss:$16 sps:$4 sm:$0xff]  }
 0x907   : > { %v8193_v3 = vld [vmem:[%s11067_s9 + $0x6c] ss:$16 sps:$4 sm:$0x7f]  }
 0x90b   : > { %v2929_v37 = vpop.f32.mrb[16].mxu1 }
 0x90c   : > { %v2936_v18 = vadd.f32 %v2929_v37, %v2875_v53  ;;  %v7647_v23 = vpop.f32.mrb[17].mxu1  ;;  %v8179_v53 = vld [vmem:[%s11067_s9 + $0x28] ss:$16 sps:$4 sm:$0xff]   ;;  %v8182_v37 = vld [vmem:[%s11067_s9 + $0x40] ss:$16 sps:$4 sm:$0xff]  }
 0x90d   : > { %v2932_v44 = vpop.f32.mrb[18].mxu1  ;;  %v8188_v23 = vld [vmem:[%s11067_s9 + $0x60] ss:$16 sps:$4 sm:$0x7f]  }
 0x90e   : > { %v2937_v13 = vadd.f32 %v2932_v44, %v2878_v4  ;;  %v7648_v27 = vpop.f32.mrb[19].mxu1  ;;  %v8190_v4 = vld [vmem:[%s11067_s9 + $0x64] ss:$16 sps:$4 sm:$0x7f]  }
 0x90f   : > { %v8191_v44 = vld [vmem:[%s11067_s9 + $0x68] ss:$16 sps:$4 sm:$0x7f]   ;;  %v3591_v27 = vand.u32 %v8193_v3, %v9699_v41 }
 0x913   : > { %v2989_v51 = vpop.f32.mrb[20].mxu1 }
 0x914   : > { %v7653_v12 = vpop.f32.mrb[21].mxu1 }
 0x915   : > { %v2992_v54 = vpop.f32.mrb[22].mxu1  ;;  %v3588_v12 = vand.u32 %v8191_v44, %v9699_v41  ;;  %v8251_v44 = vld [vmem:[%s11067_s9 + $0x2a8] ss:$16 sps:$4 sm:$0xff]  }
 0x916   : > { %v7654_v43 = vpop.f32.mrb[23].mxu1 }
 0x917   : > { %v8199_v43 = vld [vmem:[%s11067_s9 + $0x10c] ss:$16 sps:$4 sm:$0xff]  }
 0x91b   : > { %v3041_v10 = vpop.f32.mrb[24].mxu1 }
 0x91c   : > { %v3042_v17 = vadd.f32 %v3041_v10, %v2989_v51  ;;  %v7659_v25 = vpop.f32.mrb[25].mxu1  ;;  %v3582_v51 = vand.u32 %v8188_v23, %v9699_v41  ;;  %v8194_v10 = vld [vmem:[%s11067_s9 + $0x100] ss:$16 sps:$4 sm:$0xff]  }
 0x91d   : > { %v3044_v8 = vpop.f32.mrb[26].mxu1  ;;  %v8202_v25 = vld [vmem:[%s11067_s9 + $0x124] ss:$16 sps:$4 sm:$0xff]   ;;  %v8248_v23 = vld [vmem:[%s11067_s9 + $0x2a0] ss:$16 sps:$4 sm:$0xff]  }
 0x91e   : > { %v3045_v60 = vadd.f32 %v3044_v8, %v2992_v54  ;;  %v7660_v47 = vpop.f32.mrb[27].mxu1  ;;  %v8196_v54 = vld [vmem:[%s11067_s9 + $0x104] ss:$16 sps:$4 sm:$0xff]   ;;  %v8205_v8 = vld [vmem:[%s11067_s9 + $0x12c] ss:$16 sps:$4 sm:$0xff]  }
 0x91f   : > { %v8203_v47 = vld [vmem:[%s11067_s9 + $0x128] ss:$16 sps:$4 sm:$0xff]  }
 0x923   : > { %v3096_v40 = vpop.f32.mrb[28].mxu1 }
 0x924   : > { %v3103_v28 = vadd.f32 %v3096_v40, %v3042_v17  ;;  %v7665_v6 = vpop.f32.mrb[29].mxu1  ;;  %v8197_v17 = vld [vmem:[%s11067_s9 + $0x108] ss:$16 sps:$4 sm:$0xff]   ;;  %v8208_v40 = vld [vmem:[%s11067_s9 + $0x144] ss:$16 sps:$4 sm:$0xff]  }
 0x925   : > { %v3099_v20 = vpop.f32.mrb[30].mxu1  ;;  %v8214_v6 = vld [vmem:[%s11067_s9 + $0x164] ss:$16 sps:$4 sm:$0x7f]  }
 0x926   : > { %v3272_v33 = vadd.f32 %v3103_v28, %v2936_v18  ;;  %v3104_v29 = vadd.f32 %v3099_v20, %v3045_v60  ;;  %v7666_v9 = vpop.f32.mrb[31].mxu1  ;;  %v8185_v18 = vld [vmem:[%s11067_s9 + $0x48] ss:$16 sps:$4 sm:$0xff]   ;;  %v8200_v60 = vld [vmem:[%s11067_s9 + $0x120] ss:$16 sps:$4 sm:$0xff]  }
 0x927   : > { %v8211_v28 = vld [vmem:[%s11067_s9 + $0x14c] ss:$16 sps:$4 sm:$0xff]   ;;  %v8212_v9 = vld [vmem:[%s11067_s9 + $0x160] ss:$16 sps:$4 sm:$0x7f]  }
 0x928   : > { %v3273_v32 = vadd.f32 %v3104_v29, %v2937_v13  ;;  %v3585_v13 = vand.u32 %v8190_v4, %v9699_v41  ;;  %v8217_v20 = vld [vmem:[%s11067_s9 + $0x16c] ss:$16 sps:$4 sm:$0x7f]   ;;  %v8209_v29 = vld [vmem:[%s11067_s9 + $0x148] ss:$16 sps:$4 sm:$0xff]  }
 0x929   : > { %v8245_v4 = vld [vmem:[%s11067_s9 + $0x288] ss:$16 sps:$4 sm:$0xff]  }
 0x92b   : > { %v3156_v55 = vpop.f32.mrb[32].mxu1 }
 0x92c   : > { %v7671_v31 = vpop.f32.mrb[33].mxu1 }
 0x92d   : > { %v3159_v36 = vpop.f32.mrb[34].mxu1  ;;  %v3783_v31 = vand.u32 %v8217_v20, %v9699_v41  ;;  %v8269_v20 = vld [vmem:[%s11067_s9 + $0x208] ss:$16 sps:$4 sm:$0xff]  }
 0x92e   : > { %v7672_v38 = vpop.f32.mrb[35].mxu1 }
 0x933   : > { %v3208_v7 = vpop.f32.mrb[36].mxu1 }
 0x934   : > { %v3209_v45 = vadd.f32 %v3208_v7, %v3156_v55  ;;  %v7677_v46 = vpop.f32.mrb[37].mxu1  ;;  %v3777_v55 = vand.u32 %v8214_v6, %v9699_v41  ;;  %v8220_v7 = vld [vmem:[%s11067_s9 + $0x184] ss:$16 sps:$4 sm:$0xff]   ;;  %v8266_v6 = vld [vmem:[%s11067_s9 + $0x200] ss:$16 sps:$4 sm:$0xff]  }
 0x935   : > { %v3211_v61 = vpop.f32.mrb[38].mxu1  ;;  %v8218_v46 = vld [vmem:[%s11067_s9 + $0x180] ss:$16 sps:$4 sm:$0xff]  }
 0x936   : > { %v3212_v49 = vadd.f32 %v3211_v61, %v3159_v36  ;;  %v7678_v35 = vpop.f32.mrb[39].mxu1  ;;  %v3774_v36 = vand.u32 %v8212_v9, %v9699_v41  ;;  %v8221_v61 = vld [vmem:[%s11067_s9 + $0x188] ss:$16 sps:$4 sm:$0xff]   ;;  %v8277_v9 = vld [vmem:[%s11067_s9 + $0x22c] ss:$16 sps:$4 sm:$0xff]  }
 0x937   : > { %v8226_v35 = vld [vmem:[%s11067_s9 + $0x1a4] ss:$16 sps:$4 sm:$0xff]  }
 0x93b   : > { %v3263_v42 = vpop.f32.mrb[40].mxu1 }
 0x93c   : > { %v3270_v34 = vadd.f32 %v3263_v42, %v3209_v45  ;;  %v7683_v50 = vpop.f32.mrb[41].mxu1  ;;  %v8223_v45 = vld [vmem:[%s11067_s9 + $0x18c] ss:$16 sps:$4 sm:$0xff]  }
 0x93d   : > { %v3266_v5 = vpop.f32.mrb[42].mxu1  ;;  %v8229_v42 = vld [vmem:[%s11067_s9 + $0x1ac] ss:$16 sps:$4 sm:$0xff]   ;;  %v8227_v50 = vld [vmem:[%s11067_s9 + $0x1a8] ss:$16 sps:$4 sm:$0xff]  }
 0x93e   : > { %v3274_v16 = vadd.f32 %v3272_v33, %v3270_v34  ;;  %v3271_v56 = vadd.f32 %v3266_v5, %v3212_v49  ;;  %v7684_v11 = vpop.f32.mrb[43].mxu1  ;;  %v8206_v33 = vld [vmem:[%s11067_s9 + $0x140] ss:$16 sps:$4 sm:$0xff]   ;;  %v8232_v5 = vld [vmem:[%s11067_s9 + $0x1c4] ss:$16 sps:$4 sm:$0xff]  }
 0x93f   : > { %v8224_v34 = vld [vmem:[%s11067_s9 + $0x1a0] ss:$16 sps:$4 sm:$0xff]   ;;  %v8241_v11 = vld [vmem:[%s11067_s9 + $0x1ec] ss:$16 sps:$4 sm:$0x7f]  }
 0x940   : > { %v3288_v57 = vadd.f32 %v3281_v39, %v3274_v16  ;;  %v9843_v58 = vadd.f32 %v3273_v32, %v3271_v56  ;;  %v8215_v32 = vld [vmem:[%s11067_s9 + $0x168] ss:$16 sps:$4 sm:$0x7f]   ;;  %v8235_v16 = vld [vmem:[%s11067_s9 + $0x1cc] ss:$16 sps:$4 sm:$0xff]  }
 0x941   : > { %v3780_v38 = vand.u32 %v8215_v32, %v9699_v41  ;;  %v8238_v56 = vld [vmem:[%s11067_s9 + $0x1e4] ss:$16 sps:$4 sm:$0x7f]   ;;  %v8230_v39 = vld [vmem:[%s11067_s9 + $0x1c0] ss:$16 sps:$4 sm:$0xff]  }
 0x942   : > { %v3290_v48 = vmax.f32 %v3288_v57, 0.0  ;;  %v8233_v57 = vld [vmem:[%s11067_s9 + $0x1c8] ss:$16 sps:$4 sm:$0xff]   ;;  %v8272_v32 = vld [vmem:[%s11067_s9 + $0x220] ss:$16 sps:$4 sm:$0xff]  }
 0x944   : > { %v9845_v62 = vpack.c.bf16 %v3290_v48, %v3290_v48  ;;  %v8236_v48 = vld [vmem:[%s11067_s9 + $0x1e0] ss:$16 sps:$4 sm:$0x7f]  }
 0x946   : > { %v9854_v21 = vshrl.u32 %v9845_v62, 16  ;;  %v3693_v49 = vrot.slane %v9845_v62, 1 }
 0x948   : > { %7027 = vmatmul.mubr.msk.bf16.vlgmr.msra.gmra.mrb[44].mxu1 %vm3405_vm3, %v9854_v21  ;;  %7028 = vmatmul.mubr.msk.bf16.vlgmr.msra.gmra.mrb[8].mxu0 %vm3405_vm3, %v9854_v21  ;;  %v3888_v3 = vrot.slane %v9854_v21, 1 }
 0x949   : > { %3594 = vmatpush1.bf16.msra.mxu1 %v8170_v30  ;;  %3635 = vmatpush1.bf16.msra.mxu0 %v8173_v63  ;;  %v8239_v30 = vld [vmem:[%s11067_s9 + $0x1e8] ss:$16 sps:$4 sm:$0x7f]   ;;  %v3972_v63 = vand.u32 %v8238_v56, %v9699_v41  ;;  %v8290_v56 = vld [vmem:[%s11067_s9 + $0x300] ss:$16 sps:$4 sm:$0xff]  }
 0x94a   : > { %3595 = vmatprep.subr.bf16.mxu1 %v8178_v1  ;;  %3636 = vmatprep.subr.bf16.mxu0 %v8181_v0  ;;  %v3978_v1 = vand.u32 %v8241_v11, %v9699_v41  ;;  %v3969_v0 = vand.u32 %v8236_v48, %v9699_v41  ;;  %v8293_v11 = vld [vmem:[%s11067_s9 + $0x308] ss:$16 sps:$4 sm:$0xff]   ;;  %v8301_v48 = vld [vmem:[%s11067_s9 + $0x32c] ss:$16 sps:$4 sm:$0xff]  }
 0x94b   : > { %3625 = vmatprep.mubr.bf16.mxu1 %v8594_v2  ;;  %3666 = vmatprep.mubr.bf16.mxu0 %v8594_v2 }
 0x94d   : > { %3596 = vmatpush1.bf16.msra.mxu1 %v8176_v52  ;;  %3637 = vmatpush1.bf16.msra.mxu0 %v8179_v53  ;;  %v3975_v52 = vand.u32 %v8239_v30, %v9699_v41  ;;  %v8244_v53 = vld [vmem:[%s11067_s9 + $0x284] ss:$16 sps:$4 sm:$0xff]   ;;  %v8296_v30 = vld [vmem:[%s11067_s9 + $0x320] ss:$16 sps:$4 sm:$0xff]  }
 0x94e   : > { %3597 = vmatprep.subr.bf16.mxu1 %v8184_v59  ;;  %3638 = vmatprep.subr.bf16.mxu0 %v8187_v24  ;;  %v8247_v59 = vld [vmem:[%s11067_s9 + $0x28c] ss:$16 sps:$4 sm:$0xff]   ;;  %v8242_v24 = vld [vmem:[%s11067_s9 + $0x280] ss:$16 sps:$4 sm:$0xff]  }
 0x951   : > { %3598 = vmatpush1.bf16.msra.mxu1 %v8182_v37  ;;  %3639 = vmatpush1.bf16.msra.mxu0 %v8185_v18  ;;  %v8250_v37 = vld [vmem:[%s11067_s9 + $0x2a4] ss:$16 sps:$4 sm:$0xff]   ;;  %v8253_v18 = vld [vmem:[%s11067_s9 + $0x2ac] ss:$16 sps:$4 sm:$0xff]  }
 0x952   : > { %3599 = vmatprep.subr.bf16.mxu1 %v3585_v13  ;;  %3640 = vmatprep.subr.bf16.mxu0 %v3591_v27  ;;  %v8256_v13 = vld [vmem:[%s11067_s9 + $0x2c4] ss:$16 sps:$4 sm:$0xff]   ;;  %v8259_v27 = vld [vmem:[%s11067_s9 + $0x2cc] ss:$16 sps:$4 sm:$0xff]  }
 0x955   : > { %3600 = vmatpush1.bf16.msra.mxu1 %v3582_v51  ;;  %3641 = vmatpush1.bf16.msra.mxu0 %v3588_v12  ;;  %v8262_v51 = vld [vmem:[%s11067_s9 + $0x2e4] ss:$16 sps:$4 sm:$0x7f]   ;;  %v8265_v12 = vld [vmem:[%s11067_s9 + $0x2ec] ss:$16 sps:$4 sm:$0x7f]  }
 0x956   : > { %3785 = vmatprep.subr.bf16.mxu1 %v8196_v54  ;;  %3826 = vmatprep.subr.bf16.mxu0 %v8199_v43  ;;  %v8254_v54 = vld [vmem:[%s11067_s9 + $0x2c0] ss:$16 sps:$4 sm:$0xff]   ;;  %v8257_v43 = vld [vmem:[%s11067_s9 + $0x2c8] ss:$16 sps:$4 sm:$0xff]  }
 0x958   : > { %7045 = vmatmul.mubr.msk.bf16.vlgmr.msra.gmra.mrb[48].mxu1 %vm3405_vm3, %v9845_v62  ;;  %7046 = vmatmul.mubr.msk.bf16.vlgmr.msra.gmra.mrb[12].mxu0 %vm3405_vm3, %v9845_v62 }
 0x959   : > { %3786 = vmatpush1.bf16.msra.mxu1 %v8194_v10  ;;  %3827 = vmatpush1.bf16.msra.mxu0 %v8197_v17  ;;  %v8260_v10 = vld [vmem:[%s11067_s9 + $0x2e0] ss:$16 sps:$4 sm:$0x7f]   ;;  %v8263_v17 = vld [vmem:[%s11067_s9 + $0x2e8] ss:$16 sps:$4 sm:$0x7f]  }
 0x95a   : > { %3787 = vmatprep.subr.bf16.mxu1 %v8202_v25  ;;  %3828 = vmatprep.subr.bf16.mxu0 %v8205_v8  ;;  %v4184_v25 = vand.u32 %v8262_v51, %v9699_v41  ;;  %v4190_v8 = vand.u32 %v8265_v12, %v9699_v41  ;;  %v8314_v51 = vld [vmem:[%s11067_s9 + $0x380] ss:$16 sps:$4 sm:$0xff]   ;;  %v8317_v12 = vld [vmem:[%s11067_s9 + $0x388] ss:$16 sps:$4 sm:$0xff]  }
 0x95b   : > { %3817 = vmatprep.mubr.bf16.mxu1 %v8594_v2  ;;  %3858 = vmatprep.mubr.bf16.mxu0 %v8594_v2 }
 0x95d   : > { %3788 = vmatpush1.bf16.msra.mxu1 %v8200_v60  ;;  %3829 = vmatpush1.bf16.msra.mxu0 %v8203_v47  ;;  %v4181_v60 = vand.u32 %v8260_v10, %v9699_v41  ;;  %v4187_v47 = vand.u32 %v8263_v17, %v9699_v41  ;;  %v8325_v10 = vld [vmem:[%s11067_s9 + $0x3ac] ss:$16 sps:$4 sm:$0xff]   ;;  %v8320_v17 = vld [vmem:[%s11067_s9 + $0x3a0] ss:$16 sps:$4 sm:$0xff]  }
 0x95e   : > { %3789 = vmatprep.subr.bf16.mxu1 %v8208_v40  ;;  %3830 = vmatprep.subr.bf16.mxu0 %v8211_v28  ;;  %v8268_v40 = vld [vmem:[%s11067_s9 + $0x204] ss:$16 sps:$4 sm:$0xff]   ;;  %v8271_v28 = vld [vmem:[%s11067_s9 + $0x20c] ss:$16 sps:$4 sm:$0xff]  }
 0x961   : > { %3790 = vmatpush1.bf16.msra.mxu1 %v8206_v33  ;;  %3831 = vmatpush1.bf16.msra.mxu0 %v8209_v29  ;;  %v4100_v33 = vrot.slane %v9854_v21, 2  ;;  %v8274_v29 = vld [vmem:[%s11067_s9 + $0x224] ss:$16 sps:$4 sm:$0xff]  }
 0x962   : > { %3791 = vmatprep.subr.bf16.mxu1 %v3777_v55  ;;  %3832 = vmatprep.subr.bf16.mxu0 %v3783_v31  ;;  %v8275_v55 = vld [vmem:[%s11067_s9 + $0x228] ss:$16 sps:$4 sm:$0xff]   ;;  %v8280_v31 = vld [vmem:[%s11067_s9 + $0x244] ss:$16 sps:$4 sm:$0xff]  }
 0x965   : > { %3792 = vmatpush1.bf16.msra.mxu1 %v3774_v36  ;;  %3833 = vmatpush1.bf16.msra.mxu0 %v3780_v38  ;;  %v8283_v36 = vld [vmem:[%s11067_s9 + $0x24c] ss:$16 sps:$4 sm:$0xff]   ;;  %v8286_v38 = vld [vmem:[%s11067_s9 + $0x264] ss:$16 sps:$4 sm:$0x7f]  }
 0x966   : > { %3980 = vmatprep.subr.bf16.mxu1 %v8220_v7  ;;  %4021 = vmatprep.subr.bf16.mxu0 %v8223_v45  ;;  %v8289_v7 = vld [vmem:[%s11067_s9 + $0x26c] ss:$16 sps:$4 sm:$0x7f]   ;;  %v8278_v45 = vld [vmem:[%s11067_s9 + $0x240] ss:$16 sps:$4 sm:$0xff]  }
 0x968   : > { %7079 = vmatmul.mubr.msk.bf16.vlgmr.msra.gmra.mrb[52].mxu1 %vm3405_vm3, %v3693_v49  ;;  %7080 = vmatmul.mubr.msk.bf16.vlgmr.msra.gmra.mrb[16].mxu0 %vm3405_vm3, %v3693_v49  ;;  %v8287_v49 = vld [vmem:[%s11067_s9 + $0x268] ss:$16 sps:$4 sm:$0x7f]  }
 0x969   : > { %3981 = vmatpush1.bf16.msra.mxu1 %v8218_v46  ;;  %4022 = vmatpush1.bf16.msra.mxu0 %v8221_v61  ;;  %v8281_v46 = vld [vmem:[%s11067_s9 + $0x248] ss:$16 sps:$4 sm:$0xff]   ;;  %v8284_v61 = vld [vmem:[%s11067_s9 + $0x260] ss:$16 sps:$4 sm:$0x7f]  }
 0x96a   : > { %3982 = vmatprep.subr.bf16.mxu1 %v8226_v35  ;;  %4023 = vmatprep.subr.bf16.mxu0 %v8229_v42  ;;  %v4358_v35 = vand.u32 %v8286_v38, %v9699_v41  ;;  %v4364_v42 = vand.u32 %v8289_v7, %v9699_v41  ;;  %v8341_v38 = vld [vmem:[%s11067_s9 + $0x488] ss:$16 sps:$4 sm:$0xff]   ;;  %v4660_v7 = vrot.slane %v9854_v21, 3 }
 0x96b   : > { %4012 = vmatprep.mubr.bf16.mxu1 %v8594_v2  ;;  %4053 = vmatprep.mubr.bf16.mxu0 %v8594_v2  ;;  %v8347_v21 = vld [vmem:[%s11067_s9 + $0x4a8] ss:$16 sps:$4 sm:$0xff]  }
 0x96d   : > { %3983 = vmatpush1.bf16.msra.mxu1 %v8224_v34  ;;  %4024 = vmatpush1.bf16.msra.mxu0 %v8227_v50  ;;  %v4355_v34 = vand.u32 %v8284_v61, %v9699_v41  ;;  %v4361_v50 = vand.u32 %v8287_v49, %v9699_v41  ;;  %v8344_v61 = vld [vmem:[%s11067_s9 + $0x4a0] ss:$16 sps:$4 sm:$0xff]   ;;  %v3286_v49 = vpop.permute.xlu0 %3285 }
 0x96e   : > { %3984 = vmatprep.subr.bf16.mxu1 %v8232_v5  ;;  %4025 = vmatprep.subr.bf16.mxu0 %v8235_v16  ;;  %v8292_v5 = vld [vmem:[%s11067_s9 + $0x304] ss:$16 sps:$4 sm:$0xff]   ;;  %v8295_v16 = vld [vmem:[%s11067_s9 + $0x30c] ss:$16 sps:$4 sm:$0xff]  }
 0x971   : > { %3985 = vmatpush1.bf16.msra.mxu1 %v8230_v39  ;;  %4026 = vmatpush1.bf16.msra.mxu0 %v8233_v57  ;;  %v4274_v39 = vrot.slane %v9845_v62, 2  ;;  %v8298_v57 = vld [vmem:[%s11067_s9 + $0x324] ss:$16 sps:$4 sm:$0xff]  }
 0x972   : > { %3986 = vmatprep.subr.bf16.mxu1 %v3972_v63  ;;  %4027 = vmatprep.subr.bf16.mxu0 %v3978_v1  ;;  %v8299_v63 = vld [vmem:[%s11067_s9 + $0x328] ss:$16 sps:$4 sm:$0xff]   ;;  %v8304_v1 = vld [vmem:[%s11067_s9 + $0x344] ss:$16 sps:$4 sm:$0xff]  }
 0x975   : > { %3987 = vmatpush1.bf16.msra.mxu1 %v3969_v0  ;;  %4028 = vmatpush1.bf16.msra.mxu0 %v3975_v52  ;;  %v8307_v0 = vld [vmem:[%s11067_s9 + $0x34c] ss:$16 sps:$4 sm:$0xff]   ;;  %v8310_v52 = vld [vmem:[%s11067_s9 + $0x364] ss:$16 sps:$4 sm:$0x7f]  }
 0x976   : > { %4192 = vmatprep.subr.bf16.mxu1 %v8244_v53  ;;  %4233 = vmatprep.subr.bf16.mxu0 %v8247_v59  ;;  %v8313_v53 = vld [vmem:[%s11067_s9 + $0x36c] ss:$16 sps:$4 sm:$0x7f]   ;;  %v8302_v59 = vld [vmem:[%s11067_s9 + $0x340] ss:$16 sps:$4 sm:$0xff]  }
 0x978   : > { %7113 = vmatmul.mubr.msk.bf16.vlgmr.msra.gmra.mrb[56].mxu1 %vm3405_vm3, %v3888_v3  ;;  %7114 = vmatmul.mubr.msk.bf16.vlgmr.msra.gmra.mrb[20].mxu0 %vm3405_vm3, %v3888_v3  ;;  %v8311_v3 = vld [vmem:[%s11067_s9 + $0x368] ss:$16 sps:$4 sm:$0x7f]  }
 0x979   : > { %4193 = vmatpush1.bf16.msra.mxu1 %v8242_v24  ;;  %4234 = vmatpush1.bf16.msra.mxu0 %v8245_v4  ;;  %v8305_v24 = vld [vmem:[%s11067_s9 + $0x348] ss:$16 sps:$4 sm:$0xff]   ;;  %v8308_v4 = vld [vmem:[%s11067_s9 + $0x360] ss:$16 sps:$4 sm:$0x7f]  }
 0x97a   : > { %4194 = vmatprep.subr.bf16.mxu1 %v8250_v37  ;;  %4235 = vmatprep.subr.bf16.mxu0 %v8253_v18  ;;  %v4549_v37 = vand.u32 %v8310_v52, %v9699_v41  ;;  %v4555_v18 = vand.u32 %v8313_v53, %v9699_v41  ;;  %v8367_v52 = vld [vmem:[%s11067_s9 + $0x40c] ss:$16 sps:$4 sm:$0xff]   ;;  %v8362_v53 = vld [vmem:[%s11067_s9 + $0x400] ss:$16 sps:$4 sm:$0xff]  }
 0x97b   : > { %4224 = vmatprep.mubr.bf16.mxu1 %v8594_v2  ;;  %4265 = vmatprep.mubr.bf16.mxu0 %v8594_v2 }
 0x97d   : > { %4195 = vmatpush1.bf16.msra.mxu1 %v8248_v23  ;;  %4236 = vmatpush1.bf16.msra.mxu0 %v8251_v44  ;;  %v4546_v23 = vand.u32 %v8308_v4, %v9699_v41  ;;  %v4552_v44 = vand.u32 %v8311_v3, %v9699_v41  ;;  %v8370_v4 = vld [vmem:[%s11067_s9 + $0x424] ss:$16 sps:$4 sm:$0xff]   ;;  %v8373_v3 = vld [vmem:[%s11067_s9 + $0x42c] ss:$16 sps:$4 sm:$0xff]  }
 0x97e   : > { %4196 = vmatprep.subr.bf16.mxu1 %v8256_v13  ;;  %4237 = vmatprep.subr.bf16.mxu0 %v8259_v27  ;;  %v8316_v13 = vld [vmem:[%s11067_s9 + $0x384] ss:$16 sps:$4 sm:$0xff]   ;;  %v8319_v27 = vld [vmem:[%s11067_s9 + $0x38c] ss:$16 sps:$4 sm:$0xff]  }
 0x981   : > { %4197 = vmatpush1.bf16.msra.mxu1 %v8254_v54  ;;  %4238 = vmatpush1.bf16.msra.mxu0 %v8257_v43  ;;  %v4465_v54 = vrot.slane %v9845_v62, 3  ;;  %v8322_v43 = vld [vmem:[%s11067_s9 + $0x3a4] ss:$16 sps:$4 sm:$0xff]   ;;  %v8323_v62 = vld [vmem:[%s11067_s9 + $0x3a8] ss:$16 sps:$4 sm:$0xff]  }
 0x982   : > { %4198 = vmatprep.subr.bf16.mxu1 %v4184_v25  ;;  %4239 = vmatprep.subr.bf16.mxu0 %v4190_v8  ;;  %v8328_v25 = vld [vmem:[%s11067_s9 + $0x3c4] ss:$16 sps:$4 sm:$0xff]   ;;  %v8331_v8 = vld [vmem:[%s11067_s9 + $0x3cc] ss:$16 sps:$4 sm:$0xff]  }
 0x985   : > { %4199 = vmatpush1.bf16.msra.mxu1 %v4181_v60  ;;  %4240 = vmatpush1.bf16.msra.mxu0 %v4187_v47  ;;  %v8334_v60 = vld [vmem:[%s11067_s9 + $0x3e4] ss:$16 sps:$4 sm:$0x7f]   ;;  %v8337_v47 = vld [vmem:[%s11067_s9 + $0x3ec] ss:$16 sps:$4 sm:$0x7f]  }
 0x986   : > { %4366 = vmatprep.subr.bf16.mxu1 %v8268_v40  ;;  %4407 = vmatprep.subr.bf16.mxu0 %v8271_v28  ;;  %v8326_v40 = vld [vmem:[%s11067_s9 + $0x3c0] ss:$16 sps:$4 sm:$0xff]   ;;  %v8329_v28 = vld [vmem:[%s11067_s9 + $0x3c8] ss:$16 sps:$4 sm:$0xff]  }
 0x988   : > { %7163 = vmatmul.mubr.msk.bf16.vlgmr.msra.gmra.mrb[60].mxu1 %vm3405_vm3, %v4100_v33  ;;  %7164 = vmatmul.mubr.msk.bf16.vlgmr.msra.gmra.mrb[24].mxu0 %vm3405_vm3, %v4100_v33  ;;  %v4744_v33 = vand.u32 %v8334_v60, %v9699_v41  ;;  %v8391_v60 = vld [vmem:[%s11067_s9 + $0x50c] ss:$16 sps:$4 sm:$0xff]  }
 0x989   : > { %4367 = vmatpush1.bf16.msra.mxu1 %v8266_v6  ;;  %4408 = vmatpush1.bf16.msra.mxu0 %v8269_v20  ;;  %v8332_v6 = vld [vmem:[%s11067_s9 + $0x3e0] ss:$16 sps:$4 sm:$0x7f]   ;;  %v8335_v20 = vld [vmem:[%s11067_s9 + $0x3e8] ss:$16 sps:$4 sm:$0x7f]  }
 0x98a   : > { %4368 = vmatprep.subr.bf16.mxu1 %v8274_v29  ;;  %4409 = vmatprep.subr.bf16.mxu0 %v8277_v9  ;;  %v4750_v29 = vand.u32 %v8337_v47, %v9699_v41  ;;  %v4741_v9 = vand.u32 %v8332_v6, %v9699_v41  ;;  %v8386_v47 = vld [vmem:[%s11067_s9 + $0x500] ss:$16 sps:$4 sm:$0xff]   ;;  %v8397_v6 = vld [vmem:[%s11067_s9 + $0x52c] ss:$16 sps:$4 sm:$0xff]  }
 0x98b   : > { %4398 = vmatprep.mubr.bf16.mxu1 %v8594_v2  ;;  %4439 = vmatprep.mubr.bf16.mxu0 %v8594_v2 }
 0x98d   : > { %4369 = vmatpush1.bf16.msra.mxu1 %v8272_v32  ;;  %4410 = vmatpush1.bf16.msra.mxu0 %v8275_v55  ;;  %v4747_v32 = vand.u32 %v8335_v20, %v9699_v41  ;;  %v8340_v55 = vld [vmem:[%s11067_s9 + $0x484] ss:$16 sps:$4 sm:$0xff]   ;;  %v8392_v20 = vld [vmem:[%s11067_s9 + $0x520] ss:$16 sps:$4 sm:$0xff]  }
 0x98e   : > { %4370 = vmatprep.subr.bf16.mxu1 %v8280_v31  ;;  %4411 = vmatprep.subr.bf16.mxu0 %v8283_v36  ;;  %v8343_v31 = vld [vmem:[%s11067_s9 + $0x48c] ss:$16 sps:$4 sm:$0xff]   ;;  %v8338_v36 = vld [vmem:[%s11067_s9 + $0x480] ss:$16 sps:$4 sm:$0xff]  }
 0x991   : > { %4371 = vmatpush1.bf16.msra.mxu1 %v8278_v45  ;;  %4412 = vmatpush1.bf16.msra.mxu0 %v8281_v46  ;;  %v8346_v45 = vld [vmem:[%s11067_s9 + $0x4a4] ss:$16 sps:$4 sm:$0xff]   ;;  %v8349_v46 = vld [vmem:[%s11067_s9 + $0x4ac] ss:$16 sps:$4 sm:$0xff]  }
 0x992   : > { %4372 = vmatprep.subr.bf16.mxu1 %v4358_v35  ;;  %4413 = vmatprep.subr.bf16.mxu0 %v4364_v42  ;;  %v8352_v35 = vld [vmem:[%s11067_s9 + $0x4c4] ss:$16 sps:$4 sm:$0xff]   ;;  %v8355_v42 = vld [vmem:[%s11067_s9 + $0x4cc] ss:$16 sps:$4 sm:$0xff]  }
 0x995   : > { %4373 = vmatpush1.bf16.msra.mxu1 %v4355_v34  ;;  %4414 = vmatpush1.bf16.msra.mxu0 %v4361_v50  ;;  %v3289_v34 = vadd.f32 %v3286_v49, %v9843_v58  ;;  %v8358_v50 = vld [vmem:[%s11067_s9 + $0x4e4] ss:$16 sps:$4 sm:$0x7f]   ;;  %v8353_v58 = vld [vmem:[%s11067_s9 + $0x4c8] ss:$16 sps:$4 sm:$0xff]  }
 0x996   : > { %4557 = vmatprep.subr.bf16.mxu1 %v8292_v5  ;;  %4598 = vmatprep.subr.bf16.mxu0 %v8295_v16  ;;  %v8361_v5 = vld [vmem:[%s11067_s9 + $0x4ec] ss:$16 sps:$4 sm:$0x7f]   ;;  %v8350_v16 = vld [vmem:[%s11067_s9 + $0x4c0] ss:$16 sps:$4 sm:$0xff]  }
 0x998   : > { %7181 = vmatmul.mubr.msk.bf16.vlgmr.msra.gmra.mrb[64].mxu1 %vm3405_vm3, %v4274_v39  ;;  %7182 = vmatmul.mubr.msk.bf16.vlgmr.msra.gmra.mrb[28].mxu0 %vm3405_vm3, %v4274_v39  ;;  %v3291_v39 = vmax.f32 %v3289_v34, 0.0  ;;  %v8413_v34 = vld [vmem:[%s11067_s9 + $0x588] ss:$16 sps:$4 sm:$0xff]  }
 0x999   : > { %4558 = vmatpush1.bf16.msra.mxu1 %v8290_v56  ;;  %4599 = vmatpush1.bf16.msra.mxu0 %v8293_v11  ;;  %v8356_v56 = vld [vmem:[%s11067_s9 + $0x4e0] ss:$16 sps:$4 sm:$0x7f]   ;;  %v8359_v11 = vld [vmem:[%s11067_s9 + $0x4e8] ss:$16 sps:$4 sm:$0x7f]  }
 0x99a   : > { %4559 = vmatprep.subr.bf16.mxu1 %v8298_v57  ;;  %4600 = vmatprep.subr.bf16.mxu0 %v8301_v48  ;;  %v4959_v57 = vand.u32 %v8358_v50, %v9699_v41  ;;  %v4965_v48 = vand.u32 %v8361_v5, %v9699_v41  ;;  %v8418_v5 = vld [vmem:[%s11067_s9 + $0x5a4] ss:$16 sps:$4 sm:$0xff]  }
 0x99b   : > { %4589 = vmatprep.mubr.bf16.mxu1 %v8594_v2  ;;  %4630 = vmatprep.mubr.bf16.mxu0 %v8594_v2 }
 0x99d   : > { %4560 = vmatpush1.bf16.msra.mxu1 %v8296_v30  ;;  %4601 = vmatpush1.bf16.msra.mxu0 %v8299_v63  ;;  %v4956_v30 = vand.u32 %v8356_v56, %v9699_v41  ;;  %v4962_v63 = vand.u32 %v8359_v11, %v9699_v41  ;;  %v8419_v56 = vld [vmem:[%s11067_s9 + $0x5a8] ss:$16 sps:$4 sm:$0xff]   ;;  %v8424_v11 = vld [vmem:[%s11067_s9 + $0x5c4] ss:$16 sps:$4 sm:$0xff]  }
 0x99e   : > { %4561 = vmatprep.subr.bf16.mxu1 %v8304_v1  ;;  %4602 = vmatprep.subr.bf16.mxu0 %v8307_v0  ;;  %v10303_v1 = vpack.c.bf16 %v3291_v39, %v3291_v39  ;;  %v8364_v0 = vld [vmem:[%s11067_s9 + $0x404] ss:$16 sps:$4 sm:$0xff]   ;;  %v8427_v39 = vld [vmem:[%s11067_s9 + $0x5cc] ss:$16 sps:$4 sm:$0xff]  }
 0x9a0   : > { %v5239_v50 = vrot.slane %v10303_v1, 1 }
 0x9a1   : > { %4562 = vmatpush1.bf16.msra.mxu1 %v8302_v59  ;;  %4603 = vmatpush1.bf16.msra.mxu0 %v8305_v24  ;;  %v8365_v59 = vld [vmem:[%s11067_s9 + $0x408] ss:$16 sps:$4 sm:$0xff]   ;;  %v10318_v24 = vshrl.u32 %v10303_v1, 16 }
 0x9a2   : > { %4563 = vmatprep.subr.bf16.mxu1 %v4549_v37  ;;  %4604 = vmatprep.subr.bf16.mxu0 %v4555_v18  ;;  %v8368_v37 = vld [vmem:[%s11067_s9 + $0x420] ss:$16 sps:$4 sm:$0xff]   ;;  %v8371_v18 = vld [vmem:[%s11067_s9 + $0x428] ss:$16 sps:$4 sm:$0xff]  }
 0x9a5   : > { %4564 = vmatpush1.bf16.msra.mxu1 %v4546_v23  ;;  %4605 = vmatpush1.bf16.msra.mxu0 %v4552_v44  ;;  %v8376_v23 = vld [vmem:[%s11067_s9 + $0x444] ss:$16 sps:$4 sm:$0xff]   ;;  %v8379_v44 = vld [vmem:[%s11067_s9 + $0x44c] ss:$16 sps:$4 sm:$0xff]  }
 0x9a6   : > { %4752 = vmatprep.subr.bf16.mxu1 %v8316_v13  ;;  %4793 = vmatprep.subr.bf16.mxu0 %v8319_v27  ;;  %v8382_v13 = vld [vmem:[%s11067_s9 + $0x464] ss:$16 sps:$4 sm:$0x7f]   ;;  %v8385_v27 = vld [vmem:[%s11067_s9 + $0x46c] ss:$16 sps:$4 sm:$0x7f]  }
 0x9a8   : > { %7215 = vmatmul.mubr.msk.bf16.vlgmr.msra.gmra.mrb[68].mxu1 %vm3405_vm3, %v4465_v54  ;;  %7216 = vmatmul.mubr.msk.bf16.vlgmr.msra.gmra.mrb[32].mxu0 %vm3405_vm3, %v4465_v54  ;;  %v8380_v54 = vld [vmem:[%s11067_s9 + $0x460] ss:$16 sps:$4 sm:$0x7f]  }
 0x9a9   : > { %4753 = vmatpush1.bf16.msra.mxu1 %v8314_v51  ;;  %4794 = vmatpush1.bf16.msra.mxu0 %v8317_v12  ;;  %v8374_v51 = vld [vmem:[%s11067_s9 + $0x440] ss:$16 sps:$4 sm:$0xff]   ;;  %v8377_v12 = vld [vmem:[%s11067_s9 + $0x448] ss:$16 sps:$4 sm:$0xff]  }
 0x9aa   : > { %4754 = vmatprep.subr.bf16.mxu1 %v8322_v43  ;;  %4795 = vmatprep.subr.bf16.mxu0 %v8325_v10  ;;  %v8383_v43 = vld [vmem:[%s11067_s9 + $0x468] ss:$16 sps:$4 sm:$0x7f]   ;;  %v5131_v10 = vand.u32 %v8382_v13, %v9699_v41  ;;  %v5434_v13 = vrot.slane %v10318_v24, 1 }
 0x9ab   : > { %4784 = vmatprep.mubr.bf16.mxu1 %v8594_v2  ;;  %4825 = vmatprep.mubr.bf16.mxu0 %v8594_v2 }
 0x9ad   : > { %4755 = vmatpush1.bf16.msra.mxu1 %v8320_v17  ;;  %4796 = vmatpush1.bf16.msra.mxu0 %v8323_v62  ;;  %v5137_v17 = vand.u32 %v8385_v27, %v9699_v41  ;;  %v5128_v62 = vand.u32 %v8380_v54, %v9699_v41  ;;  %v8442_v27 = vld [vmem:[%s11067_s9 + $0x6a4] ss:$16 sps:$4 sm:$0xff]   ;;  %v8443_v54 = vld [vmem:[%s11067_s9 + $0x6a8] ss:$16 sps:$4 sm:$0xff]  }
 0x9ae   : > { %4756 = vmatprep.subr.bf16.mxu1 %v8328_v25  ;;  %4797 = vmatprep.subr.bf16.mxu0 %v8331_v8  ;;  %v5134_v25 = vand.u32 %v8383_v43, %v9699_v41  ;;  %v8388_v8 = vld [vmem:[%s11067_s9 + $0x504] ss:$16 sps:$4 sm:$0xff]  }
 0x9af   : > { %v8448_v43 = vld [vmem:[%s11067_s9 + $0x6c4] ss:$16 sps:$4 sm:$0xff]  }
 0x9b1   : > { %4757 = vmatpush1.bf16.msra.mxu1 %v8326_v40  ;;  %4798 = vmatpush1.bf16.msra.mxu0 %v8329_v28  ;;  %v8389_v40 = vld [vmem:[%s11067_s9 + $0x508] ss:$16 sps:$4 sm:$0xff]   ;;  %v8394_v28 = vld [vmem:[%s11067_s9 + $0x524] ss:$16 sps:$4 sm:$0xff]  }
 0x9b2   : > { %4758 = vmatprep.subr.bf16.mxu1 %v4744_v33  ;;  %4799 = vmatprep.subr.bf16.mxu0 %v4750_v29  ;;  %v8395_v33 = vld [vmem:[%s11067_s9 + $0x528] ss:$16 sps:$4 sm:$0xff]   ;;  %v8400_v29 = vld [vmem:[%s11067_s9 + $0x544] ss:$16 sps:$4 sm:$0xff]  }
 0x9b5   : > { %4759 = vmatpush1.bf16.msra.mxu1 %v4741_v9  ;;  %4800 = vmatpush1.bf16.msra.mxu0 %v4747_v32  ;;  %v8403_v9 = vld [vmem:[%s11067_s9 + $0x54c] ss:$16 sps:$4 sm:$0xff]   ;;  %v8406_v32 = vld [vmem:[%s11067_s9 + $0x564] ss:$16 sps:$4 sm:$0x7f]  }
 0x9b6   : > { %4967 = vmatprep.subr.bf16.mxu1 %v8340_v55  ;;  %5008 = vmatprep.subr.bf16.mxu0 %v8343_v31  ;;  %v8409_v55 = vld [vmem:[%s11067_s9 + $0x56c] ss:$16 sps:$4 sm:$0x7f]   ;;  %v8398_v31 = vld [vmem:[%s11067_s9 + $0x540] ss:$16 sps:$4 sm:$0xff]  }
 0x9b8   : > { %7249 = vmatmul.mubr.msk.bf16.vlgmr.msra.gmra.mrb[72].mxu1 %vm3405_vm3, %v4660_v7  ;;  %7250 = vmatmul.mubr.msk.bf16.vlgmr.msra.gmra.mrb[36].mxu0 %vm3405_vm3, %v4660_v7  ;;  %v8407_v7 = vld [vmem:[%s11067_s9 + $0x568] ss:$16 sps:$4 sm:$0x7f]  }
 0x9b9   : > { %4968 = vmatpush1.bf16.msra.mxu1 %v8338_v36  ;;  %5009 = vmatpush1.bf16.msra.mxu0 %v8341_v38  ;;  %v8401_v36 = vld [vmem:[%s11067_s9 + $0x548] ss:$16 sps:$4 sm:$0xff]   ;;  %v8404_v38 = vld [vmem:[%s11067_s9 + $0x560] ss:$16 sps:$4 sm:$0x7f]   ;;  %v5326_v49 = vand.u32 %v8407_v7, %v9699_v41 }
 0x9ba   : > { %4969 = vmatprep.subr.bf16.mxu1 %v8346_v45  ;;  %5010 = vmatprep.subr.bf16.mxu0 %v8349_v46  ;;  %v5323_v45 = vand.u32 %v8406_v32, %v9699_v41  ;;  %v5329_v46 = vand.u32 %v8409_v55, %v9699_v41  ;;  %v8461_v32 = vld [vmem:[%s11067_s9 + $0x608] ss:$16 sps:$4 sm:$0xff]   ;;  %v5646_v55 = vrot.slane %v10318_v24, 2 }
 0x9bb   : > { %4999 = vmatprep.mubr.bf16.mxu1 %v8594_v2  ;;  %5040 = vmatprep.mubr.bf16.mxu0 %v8594_v2  ;;  %v8467_v7 = vld [vmem:[%s11067_s9 + $0x628] ss:$16 sps:$4 sm:$0xff]  }
 0x9bd   : > { %4970 = vmatpush1.bf16.msra.mxu1 %v8344_v61  ;;  %5011 = vmatpush1.bf16.msra.mxu0 %v8347_v21  ;;  %v5320_v61 = vand.u32 %v8404_v38, %v9699_v41  ;;  %v8412_v21 = vld [vmem:[%s11067_s9 + $0x584] ss:$16 sps:$4 sm:$0xff]   ;;  %v8464_v38 = vld [vmem:[%s11067_s9 + $0x620] ss:$16 sps:$4 sm:$0xff]  }
 0x9be   : > { %4971 = vmatprep.subr.bf16.mxu1 %v8352_v35  ;;  %5012 = vmatprep.subr.bf16.mxu0 %v8355_v42  ;;  %v8415_v35 = vld [vmem:[%s11067_s9 + $0x58c] ss:$16 sps:$4 sm:$0xff]   ;;  %v8410_v42 = vld [vmem:[%s11067_s9 + $0x580] ss:$16 sps:$4 sm:$0xff]  }
 0x9c1   : > { %4972 = vmatpush1.bf16.msra.mxu1 %v8350_v16  ;;  %5013 = vmatpush1.bf16.msra.mxu0 %v8353_v58  ;;  %v8421_v16 = vld [vmem:[%s11067_s9 + $0x5ac] ss:$16 sps:$4 sm:$0xff]   ;;  %v8416_v58 = vld [vmem:[%s11067_s9 + $0x5a0] ss:$16 sps:$4 sm:$0xff]  }
 0x9c2   : > { %4973 = vmatprep.subr.bf16.mxu1 %v4959_v57  ;;  %5014 = vmatprep.subr.bf16.mxu0 %v4965_v48  ;;  %v8430_v57 = vld [vmem:[%s11067_s9 + $0x5e4] ss:$16 sps:$4 sm:$0x7f]   ;;  %v8433_v48 = vld [vmem:[%s11067_s9 + $0x5ec] ss:$16 sps:$4 sm:$0x7f]  }
 0x9c5   : > { %4974 = vmatpush1.bf16.msra.mxu1 %v4956_v30  ;;  %5015 = vmatpush1.bf16.msra.mxu0 %v4962_v63  ;;  %v8422_v30 = vld [vmem:[%s11067_s9 + $0x5c0] ss:$16 sps:$4 sm:$0xff]   ;;  %v8425_v63 = vld [vmem:[%s11067_s9 + $0x5c8] ss:$16 sps:$4 sm:$0xff]  }
 0x9c6   : > { %5139 = vmatprep.subr.bf16.mxu1 %v8364_v0  ;;  %5180 = vmatprep.subr.bf16.mxu0 %v8367_v52  ;;  %v8428_v0 = vld [vmem:[%s11067_s9 + $0x5e0] ss:$16 sps:$4 sm:$0x7f]   ;;  %v8431_v52 = vld [vmem:[%s11067_s9 + $0x5e8] ss:$16 sps:$4 sm:$0x7f]  }
 0x9c8   : > { %7299 = vmatmul.mubr.msk.bf16.vlgmr.msra.gmra.mrb[76].mxu1 %vm3405_vm3, %v10318_v24  ;;  %7300 = vmatmul.mubr.msk.bf16.vlgmr.msra.gmra.mrb[40].mxu0 %vm3405_vm3, %v10318_v24 }
 0x9c9   : > { %5140 = vmatpush1.bf16.msra.mxu1 %v8362_v53  ;;  %5181 = vmatpush1.bf16.msra.mxu0 %v8365_v59  ;;  %v5518_v53 = vand.u32 %v8430_v57, %v9699_v41  ;;  %v5524_v59 = vand.u32 %v8433_v48, %v9699_v41  ;;  %v8485_v57 = vld [vmem:[%s11067_s9 + $0x708] ss:$16 sps:$4 sm:$0xff]   ;;  %v5820_v48 = vrot.slane %v10303_v1, 2 }
 0x9ca   : > { %5141 = vmatprep.subr.bf16.mxu1 %v8370_v4  ;;  %5182 = vmatprep.subr.bf16.mxu0 %v8373_v3  ;;  %v5515_v4 = vand.u32 %v8428_v0, %v9699_v41  ;;  %v5521_v3 = vand.u32 %v8431_v52, %v9699_v41  ;;  %v8488_v0 = vld [vmem:[%s11067_s9 + $0x720] ss:$16 sps:$4 sm:$0xff]   ;;  %v8491_v52 = vld [vmem:[%s11067_s9 + $0x728] ss:$16 sps:$4 sm:$0xff]  }
 0x9cb   : > { %5171 = vmatprep.mubr.bf16.mxu1 %v8594_v2  ;;  %5212 = vmatprep.mubr.bf16.mxu0 %v8594_v2 }
 0x9cd   : > { %5142 = vmatpush1.bf16.msra.mxu1 %v8368_v37  ;;  %5183 = vmatpush1.bf16.msra.mxu0 %v8371_v18  ;;  %v8436_v37 = vld [vmem:[%s11067_s9 + $0x684] ss:$16 sps:$4 sm:$0xff]   ;;  %v8439_v18 = vld [vmem:[%s11067_s9 + $0x68c] ss:$16 sps:$4 sm:$0xff]  }
 0x9ce   : > { %5143 = vmatprep.subr.bf16.mxu1 %v8376_v23  ;;  %5184 = vmatprep.subr.bf16.mxu0 %v8379_v44  ;;  %v8434_v23 = vld [vmem:[%s11067_s9 + $0x680] ss:$16 sps:$4 sm:$0xff]   ;;  %v8437_v44 = vld [vmem:[%s11067_s9 + $0x688] ss:$16 sps:$4 sm:$0xff]  }
 0x9d1   : > { %5144 = vmatpush1.bf16.msra.mxu1 %v8374_v51  ;;  %5185 = vmatpush1.bf16.msra.mxu0 %v8377_v12  ;;  %v8445_v51 = vld [vmem:[%s11067_s9 + $0x6ac] ss:$16 sps:$4 sm:$0xff]   ;;  %v8440_v12 = vld [vmem:[%s11067_s9 + $0x6a0] ss:$16 sps:$4 sm:$0xff]  }
 0x9d2   : > { %5145 = vmatprep.subr.bf16.mxu1 %v5131_v10  ;;  %5186 = vmatprep.subr.bf16.mxu0 %v5137_v17  ;;  %v8451_v10 = vld [vmem:[%s11067_s9 + $0x6cc] ss:$16 sps:$4 sm:$0xff]   ;;  %v8454_v17 = vld [vmem:[%s11067_s9 + $0x6e4] ss:$16 sps:$4 sm:$0x7f]  }
 0x9d5   : > { %5146 = vmatpush1.bf16.msra.mxu1 %v5128_v62  ;;  %5187 = vmatpush1.bf16.msra.mxu0 %v5134_v25  ;;  %v8457_v62 = vld [vmem:[%s11067_s9 + $0x6ec] ss:$16 sps:$4 sm:$0x7f]   ;;  %v8446_v25 = vld [vmem:[%s11067_s9 + $0x6c0] ss:$16 sps:$4 sm:$0xff]  }
 0x9d6   : > { %5331 = vmatprep.subr.bf16.mxu1 %v8388_v8  ;;  %5372 = vmatprep.subr.bf16.mxu0 %v8391_v60  ;;  %v8449_v8 = vld [vmem:[%s11067_s9 + $0x6c8] ss:$16 sps:$4 sm:$0xff]   ;;  %v8452_v60 = vld [vmem:[%s11067_s9 + $0x6e0] ss:$16 sps:$4 sm:$0x7f]  }
 0x9d8   : > { %7317 = vmatmul.mubr.msk.bf16.vlgmr.msra.gmra.mrb[80].mxu1 %vm3405_vm3, %v10303_v1  ;;  %7318 = vmatmul.mubr.msk.bf16.vlgmr.msra.gmra.mrb[44].mxu0 %vm3405_vm3, %v10303_v1 }
 0x9d9   : > { %5332 = vmatpush1.bf16.msra.mxu1 %v8386_v47  ;;  %5373 = vmatpush1.bf16.msra.mxu0 %v8389_v40  ;;  %v8455_v47 = vld [vmem:[%s11067_s9 + $0x6e8] ss:$16 sps:$4 sm:$0x7f]   ;;  %v5730_v40 = vand.u32 %v8454_v17, %v9699_v41 }
 0x9da   : > { %5333 = vmatprep.subr.bf16.mxu1 %v8394_v28  ;;  %5374 = vmatprep.subr.bf16.mxu0 %v8397_v6  ;;  %v5736_v28 = vand.u32 %v8457_v62, %v9699_v41  ;;  %v5727_v6 = vand.u32 %v8452_v60, %v9699_v41 }
 0x9db   : > { %5363 = vmatprep.mubr.bf16.mxu1 %v8594_v2  ;;  %5404 = vmatprep.mubr.bf16.mxu0 %v8594_v2 }
 0x9dd   : > { %5334 = vmatpush1.bf16.msra.mxu1 %v8392_v20  ;;  %5375 = vmatpush1.bf16.msra.mxu0 %v8395_v33  ;;  %v5733_v20 = vand.u32 %v8455_v47, %v9699_v41  ;;  %v8460_v33 = vld [vmem:[%s11067_s9 + $0x604] ss:$16 sps:$4 sm:$0xff]  }
 0x9de   : > { %5335 = vmatprep.subr.bf16.mxu1 %v8400_v29  ;;  %5376 = vmatprep.subr.bf16.mxu0 %v8403_v9  ;;  %v8463_v29 = vld [vmem:[%s11067_s9 + $0x60c] ss:$16 sps:$4 sm:$0xff]   ;;  %v8458_v9 = vld [vmem:[%s11067_s9 + $0x600] ss:$16 sps:$4 sm:$0xff]   ;;  %v8508_v47 = vld [vmem:[%s11067_s9 + $0x784] ss:$16 sps:$4 sm:$0xff]  }
 0x9e1   : > { %5336 = vmatpush1.bf16.msra.mxu1 %v8398_v31  ;;  %5377 = vmatpush1.bf16.msra.mxu0 %v8401_v36  ;;  %v8466_v31 = vld [vmem:[%s11067_s9 + $0x624] ss:$16 sps:$4 sm:$0xff]   ;;  %v8469_v36 = vld [vmem:[%s11067_s9 + $0x62c] ss:$16 sps:$4 sm:$0xff]  }
 0x9e2   : > { %5337 = vmatprep.subr.bf16.mxu1 %v5323_v45  ;;  %5378 = vmatprep.subr.bf16.mxu0 %v5329_v46  ;;  %v8472_v45 = vld [vmem:[%s11067_s9 + $0x644] ss:$16 sps:$4 sm:$0xff]   ;;  %v8475_v46 = vld [vmem:[%s11067_s9 + $0x64c] ss:$16 sps:$4 sm:$0xff]  }
 0x9e5   : > { %5338 = vmatpush1.bf16.msra.mxu1 %v5320_v61  ;;  %5379 = vmatpush1.bf16.msra.mxu0 %v5326_v49  ;;  %v8478_v61 = vld [vmem:[%s11067_s9 + $0x664] ss:$16 sps:$4 sm:$0x7f]   ;;  %v8481_v49 = vld [vmem:[%s11067_s9 + $0x66c] ss:$16 sps:$4 sm:$0x7f]  }
 0x9e6   : > { %5526 = vmatprep.subr.bf16.mxu1 %v8412_v21  ;;  %5567 = vmatprep.subr.bf16.mxu0 %v8415_v35  ;;  %v8470_v21 = vld [vmem:[%s11067_s9 + $0x640] ss:$16 sps:$4 sm:$0xff]   ;;  %v8473_v35 = vld [vmem:[%s11067_s9 + $0x648] ss:$16 sps:$4 sm:$0xff]  }
 0x9e8   : > { %7351 = vmatmul.mubr.msk.bf16.vlgmr.msra.gmra.mrb[84].mxu1 %vm3405_vm3, %v5239_v50  ;;  %7352 = vmatmul.mubr.msk.bf16.vlgmr.msra.gmra.mrb[48].mxu0 %vm3405_vm3, %v5239_v50  ;;  %v5904_v50 = vand.u32 %v8478_v61, %v9699_v41 }
 0x9e9   : > { %5527 = vmatpush1.bf16.msra.mxu1 %v8410_v42  ;;  %5568 = vmatpush1.bf16.msra.mxu0 %v8413_v34  ;;  %v8476_v42 = vld [vmem:[%s11067_s9 + $0x660] ss:$16 sps:$4 sm:$0x7f]   ;;  %v8479_v34 = vld [vmem:[%s11067_s9 + $0x668] ss:$16 sps:$4 sm:$0x7f]  }
 0x9ea   : > { %5528 = vmatprep.subr.bf16.mxu1 %v8418_v5  ;;  %5569 = vmatprep.subr.bf16.mxu0 %v8421_v16  ;;  %v5910_v5 = vand.u32 %v8481_v49, %v9699_v41  ;;  %v5901_v16 = vand.u32 %v8476_v42, %v9699_v41  ;;  %v8524_v42 = vld [vmem:[%s11067_s9 + $0x7e0] ss:$16 sps:$4 sm:$0x7f]  }
 0x9eb   : > { %5558 = vmatprep.mubr.bf16.mxu1 %v8594_v2  ;;  %5599 = vmatprep.mubr.bf16.mxu0 %v8594_v2 }
 0x9ed   : > { %5529 = vmatpush1.bf16.msra.mxu1 %v8416_v58  ;;  %5570 = vmatpush1.bf16.msra.mxu0 %v8419_v56  ;;  %v5907_v58 = vand.u32 %v8479_v34, %v9699_v41  ;;  %v8484_v56 = vld [vmem:[%s11067_s9 + $0x704] ss:$16 sps:$4 sm:$0xff]  }
 0x9ee   : > { %5530 = vmatprep.subr.bf16.mxu1 %v8424_v11  ;;  %5571 = vmatprep.subr.bf16.mxu0 %v8427_v39  ;;  %v8487_v11 = vld [vmem:[%s11067_s9 + $0x70c] ss:$16 sps:$4 sm:$0xff]   ;;  %v8482_v39 = vld [vmem:[%s11067_s9 + $0x700] ss:$16 sps:$4 sm:$0xff]  }
 0x9f1   : > { %5531 = vmatpush1.bf16.msra.mxu1 %v8422_v30  ;;  %5572 = vmatpush1.bf16.msra.mxu0 %v8425_v63  ;;  %v8490_v30 = vld [vmem:[%s11067_s9 + $0x724] ss:$16 sps:$4 sm:$0xff]   ;;  %v8493_v63 = vld [vmem:[%s11067_s9 + $0x72c] ss:$16 sps:$4 sm:$0xff]  }
 0x9f2   : > { %5532 = vmatprep.subr.bf16.mxu1 %v5518_v53  ;;  %5573 = vmatprep.subr.bf16.mxu0 %v5524_v59  ;;  %v8496_v53 = vld [vmem:[%s11067_s9 + $0x744] ss:$16 sps:$4 sm:$0xff]   ;;  %v8499_v59 = vld [vmem:[%s11067_s9 + $0x74c] ss:$16 sps:$4 sm:$0xff]  }
 0x9f5   : > { %5533 = vmatpush1.bf16.msra.mxu1 %v5515_v4  ;;  %5574 = vmatpush1.bf16.msra.mxu0 %v5521_v3  ;;  %v8502_v4 = vld [vmem:[%s11067_s9 + $0x764] ss:$16 sps:$4 sm:$0x7f]   ;;  %v8505_v3 = vld [vmem:[%s11067_s9 + $0x76c] ss:$16 sps:$4 sm:$0x7f]  }
 0x9f6   : > { %5738 = vmatprep.subr.bf16.mxu1 %v8436_v37  ;;  %5779 = vmatprep.subr.bf16.mxu0 %v8439_v18  ;;  %v6095_v62 = vand.u32 %v8502_v4, %v9699_v41 }
 0x9f8   : > { %7385 = vmatmul.mubr.msk.bf16.vlgmr.msra.gmra.mrb[88].mxu1 %vm3405_vm3, %v5434_v13  ;;  %7386 = vmatmul.mubr.msk.bf16.vlgmr.msra.gmra.mrb[52].mxu0 %vm3405_vm3, %v5434_v13 }
 0x9f9   : > { %5739 = vmatpush1.bf16.msra.mxu1 %v8434_v23  ;;  %5780 = vmatpush1.bf16.msra.mxu0 %v8437_v44  ;;  %v8494_v23 = vld [vmem:[%s11067_s9 + $0x740] ss:$16 sps:$4 sm:$0xff]   ;;  %v8497_v44 = vld [vmem:[%s11067_s9 + $0x748] ss:$16 sps:$4 sm:$0xff]  }
 0x9fa   : > { %5740 = vmatprep.subr.bf16.mxu1 %v8442_v27  ;;  %5781 = vmatprep.subr.bf16.mxu0 %v8445_v51  ;;  %v8500_v51 = vld [vmem:[%s11067_s9 + $0x760] ss:$16 sps:$4 sm:$0x7f]  }
 0x9fb   : > { %5770 = vmatprep.mubr.bf16.mxu1 %v8594_v2  ;;  %5811 = vmatprep.mubr.bf16.mxu0 %v8594_v2 }
 0x9fd   : > { %5741 = vmatpush1.bf16.msra.mxu1 %v8440_v12  ;;  %5782 = vmatpush1.bf16.msra.mxu0 %v8443_v54 }
 0x9fe   : > { %5742 = vmatprep.subr.bf16.mxu1 %v8448_v43  ;;  %5783 = vmatprep.subr.bf16.mxu0 %v8451_v10  ;;  %v8503_v43 = vld [vmem:[%s11067_s9 + $0x768] ss:$16 sps:$4 sm:$0x7f]  }
 0x9ff   : > { %v6098_v60 = vand.u32 %v8503_v43, %v9699_v41 }
 0xa01   : > { %5743 = vmatpush1.bf16.msra.mxu1 %v8446_v25  ;;  %5784 = vmatpush1.bf16.msra.mxu0 %v8449_v8  ;;  %v6101_v25 = vand.u32 %v8505_v3, %v9699_v41  ;;  %v6092_v8 = vand.u32 %v8500_v51, %v9699_v41 }
 0xa02   : > { %5744 = vmatprep.subr.bf16.mxu1 %v5730_v40  ;;  %5785 = vmatprep.subr.bf16.mxu0 %v5736_v28  ;;  %v8511_v40 = vld [vmem:[%s11067_s9 + $0x78c] ss:$16 sps:$4 sm:$0xff]   ;;  %v8506_v28 = vld [vmem:[%s11067_s9 + $0x780] ss:$16 sps:$4 sm:$0xff]  }
 0xa05   : > { %5745 = vmatpush1.bf16.msra.mxu1 %v5727_v6  ;;  %5786 = vmatpush1.bf16.msra.mxu0 %v5733_v20  ;;  %v8509_v6 = vld [vmem:[%s11067_s9 + $0x788] ss:$16 sps:$4 sm:$0xff]   ;;  %v6011_v20 = vrot.slane %v10303_v1, 3 }
 0xa06   : > { %5912 = vmatprep.subr.bf16.mxu1 %v8460_v33  ;;  %5953 = vmatprep.subr.bf16.mxu0 %v8463_v29  ;;  %v8514_v33 = vld [vmem:[%s11067_s9 + $0x7a4] ss:$16 sps:$4 sm:$0xff]   ;;  %v8517_v29 = vld [vmem:[%s11067_s9 + $0x7ac] ss:$16 sps:$4 sm:$0xff]   ;;  %v8515_v1 = vld [vmem:[%s11067_s9 + $0x7a8] ss:$16 sps:$4 sm:$0xff]  }
 0xa08   : > { %7435 = vmatmul.mubr.msk.bf16.vlgmr.msra.gmra.mrb[92].mxu1 %vm3405_vm3, %v5646_v55  ;;  %7436 = vmatmul.mubr.msk.bf16.vlgmr.msra.gmra.mrb[56].mxu0 %vm3405_vm3, %v5646_v55  ;;  %v8523_v55 = vld [vmem:[%s11067_s9 + $0x7cc] ss:$16 sps:$4 sm:$0xff]  }
 0xa09   : > { %5913 = vmatpush1.bf16.msra.mxu1 %v8458_v9  ;;  %5954 = vmatpush1.bf16.msra.mxu0 %v8461_v32  ;;  %v8512_v9 = vld [vmem:[%s11067_s9 + $0x7a0] ss:$16 sps:$4 sm:$0xff]   ;;  %v8520_v32 = vld [vmem:[%s11067_s9 + $0x7c4] ss:$16 sps:$4 sm:$0xff]  }
 0xa0a   : > { %5914 = vmatprep.subr.bf16.mxu1 %v8466_v31  ;;  %5955 = vmatprep.subr.bf16.mxu0 %v8469_v36  ;;  %v8526_v31 = vld [vmem:[%s11067_s9 + $0x7e4] ss:$16 sps:$4 sm:$0x7f]   ;;  %v8529_v36 = vld [vmem:[%s11067_s9 + $0x7ec] ss:$16 sps:$4 sm:$0x7f]  }
 0xa0b   : > { %5944 = vmatprep.mubr.bf16.mxu1 %v8594_v2  ;;  %5985 = vmatprep.mubr.bf16.mxu0 %v8594_v2 }
 0xa0d   : > { %5915 = vmatpush1.bf16.msra.mxu1 %v8464_v38  ;;  %5956 = vmatpush1.bf16.msra.mxu0 %v8467_v7 }
 0xa0e   : > { %5916 = vmatprep.subr.bf16.mxu1 %v8472_v45  ;;  %5957 = vmatprep.subr.bf16.mxu0 %v8475_v46  ;;  %v8518_v45 = vld [vmem:[%s11067_s9 + $0x7c0] ss:$16 sps:$4 sm:$0xff]   ;;  %v8521_v46 = vld [vmem:[%s11067_s9 + $0x7c8] ss:$16 sps:$4 sm:$0xff]  }
 0xa11   : > { %5917 = vmatpush1.bf16.msra.mxu1 %v8470_v21  ;;  %5958 = vmatpush1.bf16.msra.mxu0 %v8473_v35 }
 0xa12   : > { %5918 = vmatprep.subr.bf16.mxu1 %v5904_v50  ;;  %5959 = vmatprep.subr.bf16.mxu0 %v5910_v5 }
 0xa15   : > { %5919 = vmatpush1.bf16.msra.mxu1 %v5901_v16  ;;  %5960 = vmatpush1.bf16.msra.mxu0 %v5907_v58  ;;  %v8527_v58 = vld [vmem:[%s11067_s9 + $0x7e8] ss:$16 sps:$4 sm:$0x7f]  }
 0xa16   : > { %6103 = vmatprep.subr.bf16.mxu1 %v8484_v56  ;;  %6144 = vmatprep.subr.bf16.mxu0 %v8487_v11  ;;  %v6290_v11 = vand.u32 %v8526_v31, %v9699_v41 }
 0xa18   : > { %7453 = vmatmul.mubr.msk.bf16.vlgmr.msra.gmra.mrb[96].mxu1 %vm3405_vm3, %v5820_v48  ;;  %7454 = vmatmul.mubr.msk.bf16.vlgmr.msra.gmra.mrb[60].mxu0 %vm3405_vm3, %v5820_v48  ;;  %v6293_v48 = vand.u32 %v8527_v58, %v9699_v41 }
 0xa19   : > { %6104 = vmatpush1.bf16.msra.mxu1 %v8482_v39  ;;  %6145 = vmatpush1.bf16.msra.mxu0 %v8485_v57  ;;  %v6296_v39 = vand.u32 %v8529_v36, %v9699_v41  ;;  %v6287_v57 = vand.u32 %v8524_v42, %v9699_v41  ;;  %v6474_v42 = vld [vmem:[%s11069_s11 + $0x180] sm:$0xff] }
 0xa1a   : > { %6105 = vmatprep.subr.bf16.mxu1 %v8490_v30  ;;  %6146 = vmatprep.subr.bf16.mxu0 %v8493_v63  ;;  %v6206_v30 = vrot.slane %v10318_v24, 3 }
 0xa1b   : > { %v3455_v37 = vpop.f32.mrb[44].mxu1  ;;  %v3496_v18 = vpop.f32.mrb[8].mxu0  ;;  %6135 = vmatprep.mubr.bf16.mxu1 %v8594_v2  ;;  %6176 = vmatprep.mubr.bf16.mxu0 %v8594_v2 }
 0xa1c   : > { %v3457_v13 = vpop.f32.mrb[45].mxu1  ;;  %v3498_v27 = vpop.f32.mrb[9].mxu0 }
 0xa1d   : > { %6106 = vmatpush1.bf16.msra.mxu1 %v8488_v0  ;;  %6147 = vmatpush1.bf16.msra.mxu0 %v8491_v52  ;;  %v3459_v12 = vpop.f32.mrb[46].mxu1  ;;  %v3500_v54 = vpop.f32.mrb[10].mxu0 }
 0xa1e   : > { %v3460_v10 = vpop.f32.mrb[47].mxu1  ;;  %v3501_v17 = vpop.f32.mrb[11].mxu0  ;;  %6107 = vmatprep.subr.bf16.mxu1 %v8496_v53  ;;  %6148 = vmatprep.subr.bf16.mxu0 %v8499_v59 }
 0xa21   : > { %6108 = vmatpush1.bf16.msra.mxu1 %v8494_v23  ;;  %6149 = vmatpush1.bf16.msra.mxu0 %v8497_v44 }
 0xa22   : > { %6109 = vmatprep.subr.bf16.mxu1 %v6095_v62  ;;  %6150 = vmatprep.subr.bf16.mxu0 %v6101_v25 }
 0xa25   : > { %6110 = vmatpush1.bf16.msra.mxu1 %v6092_v8  ;;  %6151 = vmatpush1.bf16.msra.mxu0 %v6098_v60 }
 0xa26   : > { %6298 = vmatprep.subr.bf16.mxu1 %v8508_v47  ;;  %6339 = vmatprep.subr.bf16.mxu0 %v8511_v40 }
 0xa28   : > { %7487 = vmatmul.mubr.msk.bf16.vlgmr.msra.gmra.mrb[100].mxu1 %vm3405_vm3, %v6011_v20  ;;  %7488 = vmatmul.mubr.msk.bf16.vlgmr.msra.gmra.mrb[64].mxu0 %vm3405_vm3, %v6011_v20 }
 0xa29   : > { %6299 = vmatpush1.bf16.msra.mxu1 %v8506_v28  ;;  %6340 = vmatpush1.bf16.msra.mxu0 %v8509_v6 }
 0xa2a   : > { %6300 = vmatprep.subr.bf16.mxu1 %v8514_v33  ;;  %6341 = vmatprep.subr.bf16.mxu0 %v8517_v29 }
 0xa2b   : > { %v3627_v38 = vpop.f32.mrb[48].mxu1  ;;  %v3668_v7 = vpop.f32.mrb[12].mxu0  ;;  %6330 = vmatprep.mubr.bf16.mxu1 %v8594_v2  ;;  %6371 = vmatprep.mubr.bf16.mxu0 %v8594_v2 }
 0xa2c   : > { %v3628_v61 = vadd.f32 %v3627_v38, %v3455_v37  ;;  %v3669_v49 = vadd.f32 %v3668_v7, %v3496_v18  ;;  %v3629_v21 = vpop.f32.mrb[49].mxu1  ;;  %v3670_v35 = vpop.f32.mrb[13].mxu0 }
 0xa2d   : > { %v3630_v34 = vadd.f32 %v3629_v21, %v3457_v13  ;;  %v3671_v50 = vadd.f32 %v3670_v35, %v3498_v27  ;;  %v3631_v5 = vpop.f32.mrb[50].mxu1  ;;  %v3672_v16 = vpop.f32.mrb[14].mxu0  ;;  %6301 = vmatpush1.bf16.msra.mxu1 %v8512_v9  ;;  %6342 = vmatpush1.bf16.msra.mxu0 %v8515_v1  ;;  %v6442_v21 = vld [vmem:[%s11069_s11 + $0x80] sm:$0xff]  ;;  %v6443_v35 = vld [vmem:[%s11069_s11 + $0x88] sm:$0xff] }
 0xa2e   : > { %v3632_v56 = vpop.f32.mrb[51].mxu1  ;;  %v3673_v2 = vpop.f32.mrb[15].mxu0  ;;  %6302 = vmatprep.subr.bf16.mxu1 %v8520_v32  ;;  %6343 = vmatprep.subr.bf16.mxu0 %v8523_v55  ;;  %v6426_v5 = vld [vmem:[%s11069_s11] sm:$0xff]  ;;  %v6427_v16 = vld [vmem:[%s11069_s11 + $0x8] sm:$0xff] }
 0xa2f   : > { %v7722_v56 = vpack.c.bf16 %v6427_v16, %v6426_v5  ;;  %v6458_v2 = vld [vmem:[%s11069_s11 + $0x100] sm:$0xff]  ;;  %v6451_v5 = vld [vmem:[%s11069_s11 + $0xc8] sm:$0xff] }
 0xa31   : > { %6303 = vmatpush1.bf16.msra.mxu1 %v8518_v45  ;;  %6344 = vmatpush1.bf16.msra.mxu0 %v8521_v46 }
 0xa32   : > { %6304 = vmatprep.subr.bf16.mxu1 %v6290_v11  ;;  %6345 = vmatprep.subr.bf16.mxu0 %v6296_v39  ;;  %v6459_v11 = vld [vmem:[%s11069_s11 + $0x108] sm:$0xff] }
 0xa33   : > { %v7754_v39 = vpack.c.bf16 %v6459_v11, %v6458_v2  ;;  %v6483_v2 = vld [vmem:[%s11069_s11 + $0x1c8] sm:$0xff]  ;;  %v6434_v11 = vld [vmem:[%s11069_s11 + $0x40] sm:$0xff] }
 0xa35   : > { %6305 = vmatpush1.bf16.msra.mxu1 %v6287_v57  ;;  %6346 = vmatpush1.bf16.msra.mxu0 %v6293_v48 }
 0xa38   : > { %7521 = vmatmul.mubr.msk.bf16.vlgmr.msra.gmra.mrb[104].mxu1 %vm3405_vm3, %v6206_v30  ;;  %7522 = vmatmul.mubr.msk.bf16.vlgmr.msra.gmra.mrb[68].mxu0 %vm3405_vm3, %v6206_v30  ;;  %v6444_v30 = vld [vmem:[%s11069_s11 + $0x90] sm:$0xff] }
 0xa3b   : > { %v3819_v63 = vpop.f32.mrb[52].mxu1  ;;  %v3860_v0 = vpop.f32.mrb[16].mxu0 }
 0xa3c   : > { %v3867_v52 = vadd.f32 %v3819_v63, %v3628_v61  ;;  %v3869_v53 = vadd.f32 %v3860_v0, %v3669_v49  ;;  %v3821_v59 = vpop.f32.mrb[53].mxu1  ;;  %v3862_v4 = vpop.f32.mrb[17].mxu0  ;;  %v6445_v63 = vld [vmem:[%s11069_s11 + $0x98] sm:$0xff]  ;;  %v6476_v0 = vld [vmem:[%s11069_s11 + $0x190] sm:$0xff] }
 0xa3d   : > { %v3868_v3 = vadd.f32 %v3821_v59, %v3630_v34  ;;  %v3870_v37 = vadd.f32 %v3862_v4, %v3671_v50  ;;  %v3823_v18 = vpop.f32.mrb[54].mxu1  ;;  %v3864_v41 = vpop.f32.mrb[18].mxu0  ;;  %v7720_v34 = vpack.c.bf16 %v6443_v35, %v6442_v21  ;;  %v6475_v50 = vld [vmem:[%s11069_s11 + $0x188] sm:$0xff]  ;;  %v6433_v21 = vld [vmem:[%s11069_s11 + $0x38] sm:$0xff]  ;;  %v6464_v35 = vld [vmem:[%s11069_s11 + $0x130] sm:$0xff] }
 0xa3e   : > { %v3824_v23 = vpop.f32.mrb[55].mxu1  ;;  %v3865_v44 = vpop.f32.mrb[19].mxu0  ;;  %v7752_v58 = vpack.c.bf16 %v6475_v50, %v6474_v42  ;;  %v6428_v18 = vld [vmem:[%s11069_s11 + $0x10] sm:$0xff]  ;;  %v6429_v41 = vld [vmem:[%s11069_s11 + $0x18] sm:$0xff]  ;;  %v6450_v50 = vld [vmem:[%s11069_s11 + $0xc0] sm:$0xff] }
 0xa3f   : > { %7721 = vmatprep.subr.bf16.mxu1 %v7720_v34  ;;  %v6465_v34 = vld [vmem:[%s11069_s11 + $0x138] sm:$0xff] }
 0xa40   : > { %7753 = vmatprep.subr.bf16.mxu0 %v7752_v58  ;;  %7723 = vmatpush3.bf16.msra.mxu1 %v7722_v56  ;;  %v7766_v16 = vpack.c.bf16 %v6465_v34, %v6464_v35  ;;  %v7736_v58 = vpack.c.bf16 %v6451_v5, %v6450_v50  ;;  %v6482_v56 = vld [vmem:[%s11069_s11 + $0x1c0] sm:$0xff]  ;;  %v6440_v34 = vld [vmem:[%s11069_s11 + $0x70] sm:$0xff]  ;;  %v6441_v50 = vld [vmem:[%s11069_s11 + $0x78] sm:$0xff] }
 0xa41   : > { %7755 = vmatpush3.bf16.msra.mxu0 %v7754_v39  ;;  %v7768_v39 = vpack.c.bf16 %v6483_v2, %v6482_v56  ;;  %v6473_v56 = vld [vmem:[%s11069_s11 + $0x178] sm:$0xff] }
 0xa4b   : > { %v4014_v13 = vpop.f32.mrb[56].mxu1  ;;  %v4055_v27 = vpop.f32.mrb[20].mxu0 }
 0xa4c   : > { %v10712_v51 = vadd.f32 %v4014_v13, %v3867_v52  ;;  %v10714_v24 = vadd.f32 %v4055_v27, %v3869_v53  ;;  %v4016_v12 = vpop.f32.mrb[57].mxu1  ;;  %v4057_v54 = vpop.f32.mrb[21].mxu0 }
 0xa4d   : > { %v10716_v43 = vadd.f32 %v4016_v12, %v3868_v3  ;;  %v10718_v10 = vadd.f32 %v4057_v54, %v3870_v37  ;;  %v4018_v17 = vpop.f32.mrb[58].mxu1  ;;  %v4059_v62 = vpop.f32.mrb[22].mxu0  ;;  %v7724_v3 = vpack.c.bf16 %v6445_v63, %v6444_v30  ;;  %v6477_v37 = vld [vmem:[%s11069_s11 + $0x198] sm:$0xff]  ;;  %v7726_v54 = vpack.c.bf16 %v6429_v41, %v6428_v18  ;;  %v6467_v30 = vld [vmem:[%s11069_s11 + $0x148] sm:$0xff]  ;;  %v6484_v18 = vld [vmem:[%s11069_s11 + $0x1d0] sm:$0xff] }
 0xa4e   : > { %v4019_v25 = vpop.f32.mrb[59].mxu1  ;;  %v4060_v8 = vpop.f32.mrb[23].mxu0  ;;  %v7756_v12 = vpack.c.bf16 %v6477_v37, %v6476_v0  ;;  %v6460_v17 = vld [vmem:[%s11069_s11 + $0x110] sm:$0xff]  ;;  %v6461_v62 = vld [vmem:[%s11069_s11 + $0x118] sm:$0xff] }
 0xa4f   : > { %7725 = vmatprep.subr.bf16.mxu1 %v7724_v3  ;;  %v6452_v3 = vld [vmem:[%s11069_s11 + $0xd0] sm:$0xff]  ;;  %v6453_v37 = vld [vmem:[%s11069_s11 + $0xd8] sm:$0xff] }
 0xa50   : > { %7757 = vmatprep.subr.bf16.mxu0 %v7756_v12  ;;  %7727 = vmatpush3.bf16.msra.mxu1 %v7726_v54  ;;  %v7740_v54 = vpack.c.bf16 %v6453_v37, %v6452_v3 }
 0xa5b   : > { %v4226_v60 = vpop.f32.mrb[60].mxu1  ;;  %v4267_v47 = vpop.f32.mrb[24].mxu0 }
 0xa5c   : > { %v4228_v40 = vpop.f32.mrb[61].mxu1  ;;  %v4269_v28 = vpop.f32.mrb[25].mxu0 }
 0xa5d   : > { %v4230_v6 = vpop.f32.mrb[62].mxu1  ;;  %v4271_v20 = vpop.f32.mrb[26].mxu0 }
 0xa5e   : > { %v4231_v33 = vpop.f32.mrb[63].mxu1  ;;  %v4272_v29 = vpop.f32.mrb[27].mxu0  ;;  %v6479_v20 = vld [vmem:[%s11069_s11 + $0x1a8] sm:$0xff] }
 0xa5f   : > { %v6430_v33 = vld [vmem:[%s11069_s11 + $0x20] sm:$0xff]  ;;  %v6431_v29 = vld [vmem:[%s11069_s11 + $0x28] sm:$0xff] }
 0xa6b   : > { %v4400_v9 = vpop.f32.mrb[64].mxu1  ;;  %v4441_v1 = vpop.f32.mrb[28].mxu0 }
 0xa6c   : > { %v4401_v32 = vadd.f32 %v4400_v9, %v4226_v60  ;;  %v4442_v55 = vadd.f32 %v4441_v1, %v4267_v47  ;;  %v4402_v31 = vpop.f32.mrb[65].mxu1  ;;  %v4443_v36 = vpop.f32.mrb[29].mxu0  ;;  %v7758_v60 = vpack.c.bf16 %v6461_v62, %v6460_v17  ;;  %v6446_v47 = vld [vmem:[%s11069_s11 + $0xa0] sm:$0xff]  ;;  %v7730_v1 = vpack.c.bf16 %v6431_v29, %v6430_v33  ;;  %v6485_v17 = vld [vmem:[%s11069_s11 + $0x1d8] sm:$0xff]  ;;  %v6436_v62 = vld [vmem:[%s11069_s11 + $0x50] sm:$0xff] }
 0xa6d   : > { %v4403_v38 = vadd.f32 %v4402_v31, %v4228_v40  ;;  %v4444_v7 = vadd.f32 %v4443_v36, %v4269_v28  ;;  %v4404_v45 = vpop.f32.mrb[66].mxu1  ;;  %v4445_v46 = vpop.f32.mrb[30].mxu0  ;;  %v6447_v40 = vld [vmem:[%s11069_s11 + $0xa8] sm:$0xff]  ;;  %v6478_v28 = vld [vmem:[%s11069_s11 + $0x1a0] sm:$0xff]  ;;  %v6448_v31 = vld [vmem:[%s11069_s11 + $0xb0] sm:$0xff] }
 0xa6e   : > { %v4405_v61 = vpop.f32.mrb[67].mxu1  ;;  %v4446_v49 = vpop.f32.mrb[31].mxu0  ;;  %v7728_v6 = vpack.c.bf16 %v6447_v40, %v6446_v47  ;;  %7759 = vmatpush3.bf16.msra.mxu0 %v7758_v60  ;;  %v7760_v9 = vpack.c.bf16 %v6479_v20, %v6478_v28  ;;  %v6481_v45 = vld [vmem:[%s11069_s11 + $0x1b8] sm:$0xff]  ;;  %v7772_v47 = vpack.c.bf16 %v6485_v17, %v6484_v18  ;;  %v6468_v28 = vld [vmem:[%s11069_s11 + $0x150] sm:$0xff] }
 0xa6f   : > { %v6432_v49 = vld [vmem:[%s11069_s11 + $0x30] sm:$0xff] }
 0xa70   : > { %7729 = vmatprep.subr.bf16.mxu1 %v7728_v6  ;;  %7761 = vmatprep.subr.bf16.mxu0 %v7760_v9  ;;  %v7734_v42 = vpack.c.bf16 %v6433_v21, %v6432_v49  ;;  %v6469_v6 = vld [vmem:[%s11069_s11 + $0x158] sm:$0xff]  ;;  %v6488_v21 = vld [vmem:[%s11069_s11 + $0x1f0] sm:$0xff] }
 0xa71   : > { %7731 = vmatpush3.bf16.msra.mxu1 %v7730_v1  ;;  %v7774_v29 = vpack.c.bf16 %v6469_v6, %v6468_v28  ;;  %v6457_v49 = vld [vmem:[%s11069_s11 + $0xf8] sm:$0xff] }
 0xa7b   : > { %v4591_v57 = vpop.f32.mrb[68].mxu1  ;;  %v4632_v48 = vpop.f32.mrb[32].mxu0 }
 0xa7c   : > { %v10753_v52 = vadd.f32 %v4591_v57, %v4401_v32  ;;  %v10755_v53 = vadd.f32 %v4632_v48, %v4442_v55  ;;  %v4593_v59 = vpop.f32.mrb[69].mxu1  ;;  %v4634_v4 = vpop.f32.mrb[33].mxu0  ;;  %v6462_v32 = vld [vmem:[%s11069_s11 + $0x120] sm:$0xff]  ;;  %v6463_v55 = vld [vmem:[%s11069_s11 + $0x128] sm:$0xff] }
 0xa7d   : > { %v10766_v23 = vadd.f32 %v4593_v59, %v4403_v38  ;;  %v10768_v44 = vadd.f32 %v4634_v4, %v4444_v7  ;;  %v4595_v13 = vpop.f32.mrb[70].mxu1  ;;  %v4636_v27 = vpop.f32.mrb[34].mxu0  ;;  %v7762_v36 = vpack.c.bf16 %v6463_v55, %v6462_v32  ;;  %v6449_v38 = vld [vmem:[%s11069_s11 + $0xb8] sm:$0xff]  ;;  %v6480_v7 = vld [vmem:[%s11069_s11 + $0x1b0] sm:$0xff]  ;;  %v6435_v57 = vld [vmem:[%s11069_s11 + $0x48] sm:$0xff] }
 0xa7e   : > { %v4596_v25 = vpop.f32.mrb[71].mxu1  ;;  %v4637_v8 = vpop.f32.mrb[35].mxu0  ;;  %v7732_v46 = vpack.c.bf16 %v6449_v38, %v6448_v31  ;;  %v7764_v61 = vpack.c.bf16 %v6481_v45, %v6480_v7  ;;  %v6466_v48 = vld [vmem:[%s11069_s11 + $0x140] sm:$0xff]  ;;  %v7738_v63 = vpack.c.bf16 %v6435_v57, %v6434_v11  ;;  %v6471_v7 = vld [vmem:[%s11069_s11 + $0x168] sm:$0xff]  ;;  %v8613_v11 = vmov 0.0|0.0  }
 0xa7f   : > { %7763 = vmatpush3.bf16.msra.mxu0 %v7762_v36  ;;  %v7770_v0 = vpack.c.bf16 %v6467_v30, %v6466_v48  ;;  %v6437_v25 = vld [vmem:[%s11069_s11 + $0x58] sm:$0xff]  ;;  %v6486_v32 = vld [vmem:[%s11069_s11 + $0x1e0] sm:$0xff]  ;;  %v6439_v36 = vld [vmem:[%s11069_s11 + $0x68] sm:$0xff] }
 0xa80   : > { %7733 = vmatprep.subr.bf16.mxu1 %v7732_v46  ;;  %7765 = vmatprep.subr.bf16.mxu0 %v7764_v61  ;;  %v7742_v40 = vpack.c.bf16 %v6437_v25, %v6436_v62  ;;  %v6438_v55 = vld [vmem:[%s11069_s11 + $0x60] sm:$0xff]  ;;  %v6456_v61 = vld [vmem:[%s11069_s11 + $0xf0] sm:$0xff] }
 0xa81   : > { %7735 = vmatpush3.bf16.msra.mxu1 %v7734_v42  ;;  %v6470_v38 = vld [vmem:[%s11069_s11 + $0x160] sm:$0xff]  ;;  %v7746_v45 = vpack.c.bf16 %v6439_v36, %v6438_v55  ;;  %v7748_v35 = vpack.c.bf16 %v6457_v49, %v6456_v61  ;;  %v6489_v42 = vld [vmem:[%s11069_s11 + $0x1f8] sm:$0xff] }
 0xa82   : > { %7737 = vmatprep.subr.bf16.mxu1 %v7736_v58  ;;  %v7778_v46 = vpack.c.bf16 %v6471_v7, %v6470_v38  ;;  %v7780_v5 = vpack.c.bf16 %v6489_v42, %v6488_v21  ;;  %v6472_v58 = vld [vmem:[%s11069_s11 + $0x170] sm:$0xff] }
 0xa83   : > { %7767 = vmatpush3.bf16.msra.mxu0 %v7766_v16  ;;  %v7750_v16 = vpack.c.bf16 %v6441_v50, %v6440_v34  ;;  %v7782_v2 = vpack.c.bf16 %v6473_v56, %v6472_v58 }
 0xa84   : > { %7769 = vmatprep.subr.bf16.mxu0 %v7768_v39 }
 0xa85   : > { %7739 = vmatpush3.bf16.msra.mxu1 %v7738_v63 }
 0xa86   : > { %7741 = vmatprep.subr.bf16.mxu1 %v7740_v54 }
 0xa87   : > { %7771 = vmatpush3.bf16.msra.mxu0 %v7770_v0 }
 0xa88   : > { %7773 = vmatprep.subr.bf16.mxu0 %v7772_v47 }
 0xa89   : > { %7743 = vmatpush3.bf16.msra.mxu1 %v7742_v40 }
 0xa8b   : > { %v4786_v59 = vpop.f32.mrb[72].mxu1  ;;  %v4827_v4 = vpop.f32.mrb[36].mxu0  ;;  %7775 = vmatpush3.bf16.msra.mxu0 %v7774_v29 }
 0xa8c   : > { %v4834_v41 = vadd.f32 %v4786_v59, %v10753_v52  ;;  %v4836_v13 = vadd.f32 %v4827_v4, %v10755_v53  ;;  %v4788_v27 = vpop.f32.mrb[73].mxu1  ;;  %v4829_v12 = vpop.f32.mrb[37].mxu0 }
 0xa8d   : > { %v4835_v52 = vadd.f32 %v4788_v27, %v10766_v23  ;;  %v4837_v53 = vadd.f32 %v4829_v12, %v10768_v44  ;;  %v4790_v8 = vpop.f32.mrb[74].mxu1  ;;  %v4831_v60 = vpop.f32.mrb[38].mxu0 }
 0xa8e   : > { %v10877_v20 = vadd.f32 %v4834_v41, %v10712_v51  ;;  %v10880_v33 = vadd.f32 %v4836_v13, %v10714_v24  ;;  %v4791_v23 = vpop.f32.mrb[75].mxu1  ;;  %v4832_v44 = vpop.f32.mrb[39].mxu0  ;;  %v6454_v51 = vld [vmem:[%s11069_s11 + $0xe0] sm:$0xff]  ;;  %v6455_v24 = vld [vmem:[%s11069_s11 + $0xe8] sm:$0xff] }
 0xa8f   : > { %v10883_v9 = vadd.f32 %v4835_v52, %v10716_v43  ;;  %v10886_v1 = vadd.f32 %v4837_v53, %v10718_v10  ;;  %v7744_v43 = vpack.c.bf16 %v6455_v24, %v6454_v51  ;;  %v6487_v10 = vld [vmem:[%s11069_s11 + $0x1e8] sm:$0xff] }
 0xa90   : > { %v7776_v31 = vpack.c.bf16 %v6487_v10, %v6486_v32 }
 0xa91   : > { %7745 = vmatprep.subr.bf16.mxu1 %v7744_v43 }
 0xa92   : > { %7777 = vmatprep.subr.bf16.mxu0 %v7776_v31  ;;  %7747 = vmatpush3.bf16.msra.mxu1 %v7746_v45 }
 0xa93   : > { %7779 = vmatpush3.bf16.msra.mxu0 %v7778_v46  ;;  %7749 = vmatprep.subr.bf16.mxu1 %v7748_v35 }
 0xa94   : > { %7781 = vmatprep.subr.bf16.mxu0 %v7780_v5 }
 0xa96   : > { %7751 = vmatpush3.bf16.msra.mxu1 %v7750_v16 }
 0xa97   : > { %7783 = vmatpush3.bf16.msra.mxu0 %v7782_v2  ;;  %7784 = vmatprep.subr.bf16.mxu1 %v8613_v11 }
 0xa9b   : > { %v5001_v39 = vpop.f32.mrb[76].mxu1  ;;  %v5042_v57 = vpop.f32.mrb[40].mxu0 }
 0xa9c   : > { %v5003_v48 = vpop.f32.mrb[77].mxu1  ;;  %v5044_v30 = vpop.f32.mrb[41].mxu0 }
 0xa9d   : > { %v5005_v63 = vpop.f32.mrb[78].mxu1  ;;  %v5046_v0 = vpop.f32.mrb[42].mxu0 }
 0xa9e   : > { %v5006_v59 = vpop.f32.mrb[79].mxu1  ;;  %v5047_v4 = vpop.f32.mrb[43].mxu0 }
 0xaab   : > { %v5173_v3 = vpop.f32.mrb[80].mxu1  ;;  %v5214_v37 = vpop.f32.mrb[44].mxu0 }
 0xaac   : > { %v5174_v18 = vadd.f32 %v5173_v3, %v5001_v39  ;;  %v5215_v41 = vadd.f32 %v5214_v37, %v5042_v57  ;;  %v5175_v13 = vpop.f32.mrb[81].mxu1  ;;  %v5216_v27 = vpop.f32.mrb[45].mxu0 }
 0xaad   : > { %v5176_v12 = vadd.f32 %v5175_v13, %v5003_v48  ;;  %v5217_v54 = vadd.f32 %v5216_v27, %v5044_v30  ;;  %v5177_v17 = vpop.f32.mrb[82].mxu1  ;;  %v5218_v62 = vpop.f32.mrb[46].mxu0 }
 0xaae   : > { %v5178_v25 = vpop.f32.mrb[83].mxu1  ;;  %v5219_v52 = vpop.f32.mrb[47].mxu0 }
 0xabb   : > { %v5365_v53 = vpop.f32.mrb[84].mxu1  ;;  %v5406_v8 = vpop.f32.mrb[48].mxu0 }
 0xabc   : > { %v5413_v60 = vadd.f32 %v5365_v53, %v5174_v18  ;;  %v5415_v47 = vadd.f32 %v5406_v8, %v5215_v41  ;;  %v5367_v40 = vpop.f32.mrb[85].mxu1  ;;  %v5408_v28 = vpop.f32.mrb[49].mxu0 }
 0xabd   : > { %v5414_v6 = vadd.f32 %v5367_v40, %v5176_v12  ;;  %v5416_v23 = vadd.f32 %v5408_v28, %v5217_v54  ;;  %v5369_v44 = vpop.f32.mrb[86].mxu1  ;;  %v5410_v29 = vpop.f32.mrb[50].mxu0 }
 0xabe   : > { %v5370_v51 = vpop.f32.mrb[87].mxu1  ;;  %v5411_v24 = vpop.f32.mrb[51].mxu0 }
 0xacb   : > { %v5560_v32 = vpop.f32.mrb[88].mxu1  ;;  %v5601_v43 = vpop.f32.mrb[52].mxu0 }
 0xacc   : > { %v5608_v10 = vadd.f32 %v5560_v32, %v5413_v60  ;;  %v5610_v55 = vadd.f32 %v5601_v43, %v5415_v47  ;;  %v5562_v31 = vpop.f32.mrb[89].mxu1  ;;  %v5603_v36 = vpop.f32.mrb[53].mxu0  ;;  %v6396_v47 = vld [vmem:[%s11068_s10] sm:$0xf] }
 0xacd   : > { %v5609_v38 = vadd.f32 %v5562_v31, %v5414_v6  ;;  %v5611_v7 = vadd.f32 %v5603_v36, %v5416_v23  ;;  %v5564_v45 = vpop.f32.mrb[90].mxu1  ;;  %v5605_v46 = vpop.f32.mrb[54].mxu0  ;;  %v6401_v31 = vrot.slane %v6396_v47, %v8805_v22 }
 0xace   : > { %v5565_v61 = vpop.f32.mrb[91].mxu1  ;;  %v5606_v49 = vpop.f32.mrb[55].mxu0  ;;  %v6409_v45 = vrot.slane %v6396_v47, %v8786_v14  ;;  %v6632_v14 = vld [vmem:[%s11071_s13] sm:$0xff] }
 0xadb   : > { %v5772_v21 = vpop.f32.mrb[92].mxu1  ;;  %v5813_v35 = vpop.f32.mrb[56].mxu0 }
 0xadc   : > { %v5774_v42 = vpop.f32.mrb[93].mxu1  ;;  %v5815_v34 = vpop.f32.mrb[57].mxu0 }
 0xadd   : > { %v5776_v50 = vpop.f32.mrb[94].mxu1  ;;  %v5817_v5 = vpop.f32.mrb[58].mxu0 }
 0xade   : > { %v5777_v16 = vpop.f32.mrb[95].mxu1  ;;  %v5818_v58 = vpop.f32.mrb[59].mxu0 }
 0xaeb   : > { %v5946_v56 = vpop.f32.mrb[96].mxu1  ;;  %v5987_v2 = vpop.f32.mrb[60].mxu0 }
 0xaec   : > { %v5947_v39 = vadd.f32 %v5946_v56, %v5772_v21  ;;  %v5988_v57 = vadd.f32 %v5987_v2, %v5813_v35  ;;  %v5948_v48 = vpop.f32.mrb[97].mxu1  ;;  %v5989_v30 = vpop.f32.mrb[61].mxu0  ;;  %v6405_v35 = vrot.slane %v6396_v47, %v8789_v15  ;;  %v6633_v15 = vld [vmem:[%s11071_s13 + $0x8] sm:$0xff]  ;;  %v6636_v2 = vld [vmem:[%s11071_s13 + $0x20] sm:$0xff] }
 0xaed   : > { %v5949_v63 = vadd.f32 %v5948_v48, %v5774_v42  ;;  %v5990_v0 = vadd.f32 %v5989_v30, %v5815_v34  ;;  %v5950_v59 = vpop.f32.mrb[98].mxu1  ;;  %v5991_v4 = vpop.f32.mrb[62].mxu0  ;;  %v6413_v42 = vrot.slane %v6396_v47, %v8799_v19  ;;  %v7785_v16 = vpack.c.bf16 %v6633_v15, %v6632_v14  ;;  %v6638_v48 = vld [vmem:[%s11071_s13 + $0x30] sm:$0xff] }
 0xaee   : > { %v5951_v3 = vpop.f32.mrb[99].mxu1  ;;  %v5992_v37 = vpop.f32.mrb[63].mxu0  ;;  %v6642_v4 = vld [vmem:[%s11071_s13 + $0x50] sm:$0xff] }
 0xaef   : > { %v6643_v3 = vld [vmem:[%s11071_s13 + $0x58] sm:$0xff] }
 0xaf0   : > { %v7800_v37 = vpack.c.bf16 %v6643_v3, %v6642_v4 }
 0xafb   : > { %v6137_v18 = vpop.f32.mrb[100].mxu1  ;;  %v6178_v41 = vpop.f32.mrb[64].mxu0 }
 0xafc   : > { %v6185_v13 = vadd.f32 %v6137_v18, %v5947_v39  ;;  %v6187_v27 = vadd.f32 %v6178_v41, %v5988_v57  ;;  %v6139_v12 = vpop.f32.mrb[101].mxu1  ;;  %v6180_v54 = vpop.f32.mrb[65].mxu0  ;;  %v6637_v39 = vld [vmem:[%s11071_s13 + $0x28] sm:$0xff]  ;;  %v6644_v18 = vld [vmem:[%s11071_s13 + $0x60] sm:$0xff] }
 0xafd   : > { %v6186_v17 = vadd.f32 %v6139_v12, %v5949_v63  ;;  %v6188_v62 = vadd.f32 %v6180_v54, %v5990_v0  ;;  %v6141_v25 = vpop.f32.mrb[102].mxu1  ;;  %v6182_v52 = vpop.f32.mrb[66].mxu0  ;;  %v7791_v57 = vpack.c.bf16 %v6637_v39, %v6636_v2  ;;  %v6640_v63 = vld [vmem:[%s11071_s13 + $0x40] sm:$0xff]  ;;  %v6641_v0 = vld [vmem:[%s11071_s13 + $0x48] sm:$0xff]  ;;  %v6647_v12 = vld [vmem:[%s11071_s13 + $0x78] sm:$0xff] }
 0xafe   : > { %v6142_v53 = vpop.f32.mrb[103].mxu1  ;;  %v6183_v8 = vpop.f32.mrb[67].mxu0  ;;  %v7797_v59 = vpack.c.bf16 %v6641_v0, %v6640_v63  ;;  %v6645_v41 = vld [vmem:[%s11071_s13 + $0x68] sm:$0xff]  ;;  %v6490_v25 = vld [vmem:[%s11070_s12] sm:$0x1] }
 0xb0b   : > { %v6332_v60 = vpop.f32.mrb[104].mxu1  ;;  %v6373_v40 = vpop.f32.mrb[68].mxu0 }
 0xb0c   : > { %v6380_v28 = vadd.f32 %v6332_v60, %v6185_v13  ;;  %v6382_v6 = vadd.f32 %v6373_v40, %v6187_v27  ;;  %v6334_v23 = vpop.f32.mrb[105].mxu1  ;;  %v6375_v44 = vpop.f32.mrb[69].mxu0  ;;  %v7803_v13 = vpack.c.bf16 %v6645_v41, %v6644_v18  ;;  %v6646_v27 = vld [vmem:[%s11071_s13 + $0x70] sm:$0xff] }
 0xb0d   : > { %v6381_v29 = vadd.f32 %v6334_v23, %v6186_v17  ;;  %v6383_v51 = vadd.f32 %v6375_v44, %v6188_v62  ;;  %v6336_v24 = vpop.f32.mrb[106].mxu1  ;;  %v6377_v32 = vpop.f32.mrb[70].mxu0  ;;  %v7806_v54 = vpack.c.bf16 %v6647_v12, %v6646_v27 }
 0xb0e   : > { %v6388_v43 = vadd.f32 %v6380_v28, %v5608_v10  ;;  %v6390_v36 = vadd.f32 %v6382_v6, %v5610_v55  ;;  %v6337_v46 = vpop.f32.mrb[107].mxu1  ;;  %v6378_v61 = vpop.f32.mrb[71].mxu0  ;;  %v6648_v28 = vld [vmem:[%s11072_s14] sm:$0x1] }
 0xb0f   : > { %v6389_v49 = vadd.f32 %v6381_v29, %v5609_v38  ;;  %v6391_v21 = vadd.f32 %v6383_v51, %v5611_v7 }
 0xb10   : > { %v6392_v34 = vadd.f32 %v6388_v43, %v10877_v20  ;;  %v6394_v50 = vadd.f32 %v6390_v36, %v10880_v33 }
 0xb11   : > { %v6393_v5 = vadd.f32 %v6389_v49, %v10883_v9  ;;  %v6395_v10 = vadd.f32 %v6391_v21, %v10886_v1  ;;  %v6634_v9 = vld [vmem:[%s11071_s13 + $0x10] sm:$0xff]  ;;  %v6635_v1 = vld [vmem:[%s11071_s13 + $0x18] sm:$0xff] }
 0xb12   : > { %v6418_v22 = vadd.f32 %v6401_v31, %v6392_v34  ;;  %v6420_v55 = vadd.f32 %v6409_v45, %v6394_v50  ;;  %v7788_v56 = vpack.c.bf16 %v6635_v1, %v6634_v9 }
 0xb13   : > { %v6419_v38 = vadd.f32 %v6405_v35, %v6393_v5  ;;  %v6421_v19 = vadd.f32 %v6413_v42, %v6395_v10 }
 0xb14   : > { %v6422_v33 = vmax.f32 %v6418_v22, 0.0  ;;  %v6424_v58 = vmax.f32 %v6420_v55, 0.0 }
 0xb15   : > { %v6423_v7 = vmax.f32 %v6419_v38, 0.0  ;;  %v6425_v20 = vmax.f32 %v6421_v19, 0.0 }
 0xb17   : > { %6555 = vmatprep.mubr.f32.mxu1 %v6423_v7  ;;  %6625 = vmatprep.mubr.f32.mxu0 %v6425_v20 }
 0xb18   : > { %6556 = vmatmul.mubr.f32.vlgmr.msra.gmra.mrb[108].mxu1 %v6422_v33  ;;  %6626 = vmatmul.mubr.f32.vlgmr.msra.gmra.mrb[72].mxu0 %v6424_v58 }
 0xb19   : > { %7786 = vmatpush3.bf16.msra.mxu1 %v7785_v16  ;;  %7717 = vmatprep.mubr.msk.f32.mxu1 %vm8607_vm1, %v8606_v26  ;;  %v6639_v26 = vld [vmem:[%s11071_s13 + $0x38] sm:$0xff] }
 0xb1a   : > { %7787 = vmatprep.subr.bf16.mxu1 %v8613_v11  ;;  %v7794_v30 = vpack.c.bf16 %v6639_v26, %v6638_v48 }
 0xb1d   : > { %7789 = vmatpush3.bf16.msra.mxu1 %v7788_v56 }
 0xb1e   : > { %7790 = vmatprep.subr.bf16.mxu1 %v8613_v11 }
 0xb21   : > { %7792 = vmatpush3.bf16.msra.mxu1 %v7791_v57 }
 0xb22   : > { %7793 = vmatprep.subr.bf16.mxu1 %v8613_v11 }
 0xb25   : > { %7795 = vmatpush3.bf16.msra.mxu1 %v7794_v30 }
 0xb26   : > { %7796 = vmatprep.subr.bf16.mxu1 %v8613_v11 }
 0xb29   : > { %7798 = vmatpush3.bf16.msra.mxu1 %v7797_v59 }
 0xb2a   : > { %7799 = vmatprep.subr.bf16.mxu1 %v8613_v11 }
 0xb2d   : > { %7801 = vmatpush3.bf16.msra.mxu1 %v7800_v37 }
 0xb2e   : > { %7802 = vmatprep.subr.bf16.mxu1 %v8613_v11 }
 0xb31   : > { %7804 = vmatpush3.bf16.msra.mxu1 %v7803_v13 }
 0xb32   : > { %7805 = vmatprep.subr.bf16.mxu1 %v8613_v11 }
 0xb35   : > { %7807 = vmatpush3.bf16.msra.mxu1 %v7806_v54 }
 0xbeb   : > { %v7576_v17 = vpop.f32.mrb[108].mxu1  ;;  %v7611_v62 = vpop.f32.mrb[72].mxu0 }
 0xbec   : > { %v7577_v52 = vpop.f32.mrb[109].mxu1  ;;  %v7612_v11 = vpop.f32.mrb[73].mxu0 }
 0xbed   : > { %v7578_v53 = vadd.f32 %v7577_v52, %v7576_v17  ;;  %v7613_v8 = vadd.f32 %v7612_v11, %v7611_v62 }
 0xbef   : > { %v6558_v60 = vadd.f32 %v7578_v53, %v6490_v25 }
 0xbf1   : > { %v6628_v47 = vadd.f32 %v7613_v8, %v6558_v60 }
 0xbf3   : > { %v6631_v40 = vmax.f32 %v6628_v47, 0.0 }
 0xbf5   : > { %7718 = vmatmul.mubr.f32.vlgmr.msra.gmra.mrb[110].mxu1 %v6631_v40 }
 0xcc8   : > { %v6715_v6 = vpop.f32.mrb[110].mxu1 }
 0xcc9   : > { %v6716_v23 = vadd.f32 %v6715_v6, %v6648_v28  ;;  %v7719_v44 = vpop.f32.mrb[111].mxu1 }
 0xccb   : > { %6719 = vst [vmem:[%s484_s18] sm:$0x1] %v6716_v23 }
 0xccc   : > { %8543 = shalt.err (!%p8540_p3)
}
 0xccd   : > { %s8544_s26 = scalar_lea.hbm %s11016_s29, 16  ;;  %s8548_s16 = scalar_lea.hbm %s11073_s15, 32 }
 0xcce   : > { %p8545_p4 = scmp.ne.s32.totalorder %s11016_s29, %s8544_s26  ;;  %p8549_p9 = scmp.lt.u32.totalorder %s11016_s29, %s11073_s15 }
 0xccf   : > { %p8550_p10 = scmp.lt.u32.totalorder %s8548_s16, %s8544_s26  ;;  %p8552_p12 = scmp.lt.u32.totalorder %s8544_s26, %s11016_s29 }
 0xcd0   : > { %p8546_p7 = pnand %p8545_p4, %p8733_p5 }
 0xcd1   : > { %p8551_p11 = por %p8550_p10, %p8549_p9 }
 0xcd2   : > { %p8547_p8 = pneg %p8546_p7 }
 0xcd3   : > { %p8553_p13 = por %p8552_p12, %p8551_p11 }
 0xcd5   : > { %p8554_p0 = pnand %p8553_p13, %p8547_p8 }
 0xcd7   : > { %8557 = shalt.err (!%p8554_p0)
}
 0xcd8   : > { %7852 = dma.vmem_to_hbm [thread:$0]  (%p8733_p5), %s11018_s17, 16, %s11016_s29, %s6721_s23  }
 0xcd9 PF: > { %s11092_s20 = sld [smem:[#allocation5_spill]]  ;;  %p7858_p1 = scmp.ge.s32.totalorder %s8592_s21, 2 }
 0xcdb   : > { %p7855_p2 = pnand %p7858_p1, %p8737_p6 }
 0xcdf   : > { %s6745_s27 = sand.u32 1, %s11092_s20  }
 0xce0   : > { %s6746_s30 = scalar_lea.sflag [#allocation3], %s6745_s27 }
 0xce1   : > { %8575 = dma.done.wait (!%p7855_p2), %s6746_s30, 16  }
 0xce2   : > { %8577 = vsyncadd (!%p7855_p2), %s6746_s30, 4294967280  ;;  %s11094_s21 = sld [smem:[#allocation7_spill]]  ;;  %s11095_s26 = sld [smem:[#allocation6_spill]] }
 0xce3   : > { %s11096_s20 = sld [smem:[#allocation8_spill]]  ;;  %s11097_s18 = smov %s8584_s19 }
 0xce8   : > { %p25_p3 = scmp.ge.s32.totalorder %s11094_s21, 4   ;;  %s11098_s19 = smov %s11095_s26 }
 0xcea   :  { %27 = sbr.rel (!%p25_p3) target bundleno = 3 (0x3), region = 154 }
 0xcf1   :  { %6750 = vsyncpa [#allocation3], 1 }
 0xcf2   :  { %6752 = vsyncpa [#allocation3 + $0x1], 1 }

</bundles_post_ra>
